<compile_context>
chip_gen: v5e
topology: v5e:2x2
jax: 0.10.0
libtpu: 0.0.40
codegen_flags: <defaults>
</compile_context>

<pallas_src>
import jax
import jax.numpy as jnp
from jax import lax
from jax.experimental import pallas as pl
from jax.experimental.pallas import tpu as pltpu

BN_EPS = 1e-5  # nn.BatchNorm1d default


def _round_up(x, m):
    return (x + m - 1) // m * m


def _encoder_kernel(feats_ref, w_ref, b_ref, gamma_ref, beta_ref, out_ref, acc_ref):
    # Grid = (J over embed tiles [parallel, default 1], K over channel tiles [arbitrary]).
    # feats_ref: (B, Ct, S)   bf16 layer4 maps, native NCHW layout (S = H*W on lanes)
    # w_ref:     (Ct, Et)     bf16 Linear weight tile (host-transposed to (C, E))
    # b_ref:     (1, Et)      f32 Linear bias tile
    # gamma_ref: (1, Et)      f32 BatchNorm1d weight tile
    # beta_ref:  (1, Et)      f32 BatchNorm1d bias tile
    # out_ref:   (B, Et)      f32 output
    # acc_ref:   (B, Et)      f32 VMEM accumulator (resident across the K axis)
    k = pl.program_id(1)

    @pl.when(k == 0)
    def _init():
        acc_ref[...] = jnp.zeros_like(acc_ref)

    # Global-avg-pool: plain SUM over the contiguous spatial axis, f32 accumulation fused
    # into the reduction (no f32 copy of the block). The 1/S scale is applied in finalize.
    # NOTE: S is never tiled -- the block always covers the full H*W extent; tiling S would
    # silently break the inv_s scale below.
    pooled = jnp.sum(feats_ref[...], axis=-1, dtype=jnp.float32)            # (B, Ct)

    # Partial Linear on the MXU: bf16 x bf16 with f32 accumulation (native fast path).
    acc_ref[...] += jnp.dot(pooled.astype(jnp.bfloat16), w_ref[...],
                            preferred_element_type=jnp.float32)

    @pl.when(k == pl.num_programs(1) - 1)
    def _finalize():
        inv_s = 1.0 / feats_ref.shape[-1]                                   # static: full H*W
        y = acc_ref[...] * inv_s + b_ref[...]                               # (B, Et)

        # BatchNorm1d, training mode: biased batch statistics over the FULL batch axis.
        mu = jnp.mean(y, axis=0, keepdims=True)                             # (1, Et)
        var = jnp.mean((y - mu) ** 2, axis=0, keepdims=True)                # (1, Et)
        inv_std = lax.rsqrt(var + BN_EPS)
        out_ref[...] = (gamma_ref[...] * (y - mu) * inv_std
                        + beta_ref[...]).astype(out_ref.dtype)


def encoder_cnn_forward(features_nchw, w, b, gamma, beta, *,
                        tile_c=None, tile_e=None, vmem_budget_bytes=24 << 20):
    """features_nchw: (B, C, Hf, Wf) backbone feature maps (NCHW, like PyTorch), bf16/f32.
    w: (E, C) Linear weight (PyTorch convention); b/gamma/beta: (E,)."""
    B, C, Hf, Wf = features_nchw.shape
    E = w.shape[0]
    S = Hf * Wf

    # Wrapper glue (all cheap / layout-free):
    #  - (B, C, H, W) -> (B, C, S) merges contiguous trailing dims: no data movement.
    #  - Only the tiny (E, C) weight is transposed + downcast to bf16; features stay bf16.
    feats = features_nchw.reshape(B, C, S)
    if feats.dtype != jnp.bfloat16:
        feats = feats.astype(jnp.bfloat16)
    w_t = jnp.transpose(w, (1, 0)).astype(jnp.bfloat16)                     # (C, E) bf16
    b2 = b.reshape(1, E).astype(jnp.float32)
    g2 = gamma.reshape(1, E).astype(jnp.float32)
    be2 = beta.reshape(1, E).astype(jnp.float32)

    # One embed tile by default: the feature maps are read exactly once. (On v7x, pass
    # tile_e = E // 2 to split Linear+BN columns across the two TensorCores; BN stats are
    # per-feature so the split is exact, at the cost of reading feats twice.)
    if tile_e is None:
        tile_e = E
    assert E % tile_e == 0 and (tile_e == E or tile_e % 128 == 0), (E, tile_e)

    def padded_footprint(tc):
        # Lane/sublane-padded VMEM bytes: S pads to 128 lanes, bf16 sublanes pad to 16.
        feats_buf = B * _round_up(tc, 16) * _round_up(S, 128) * 2           # bf16
        w_buf = _round_up(tc, 16) * _round_up(tile_e, 128) * 2              # bf16
        out_buf = _round_up(B, 8) * _round_up(tile_e, 128) * 4              # f32
        vec_buf = 3 * 8 * _round_up(tile_e, 128) * 4                        # bias/gamma/beta
        acc_buf = _round_up(B, 8) * _round_up(tile_e, 128) * 4              # f32 scratch
        return 2 * (feats_buf + w_buf + out_buf + vec_buf) + acc_buf        # double-buffered

    if tile_c is None:
        # Largest divisor of C (8-aligned, or C itself) whose padded footprint fits the
        # budget -> for realistic shapes this is tile_c = C and the grid is a single step.
        candidates = [d for d in range(C, 0, -1) if C % d == 0 and (d == C or d % 8 == 0)]
        tile_c = next((d for d in candidates if padded_footprint(d) <= vmem_budget_bytes),
                      candidates[-1])
    assert C % tile_c == 0, (C, tile_c)

    grid = (E // tile_e, C // tile_c)                                       # reduction axis last
    vmem_limit = min(64 << 20, max(32 << 20, padded_footprint(tile_c) + (4 << 20)))

    return pl.pallas_call(
        _encoder_kernel,
        out_shape=jax.ShapeDtypeStruct((B, E), jnp.float32),
        grid_spec=pltpu.PrefetchScalarGridSpec(
            num_scalar_prefetch=0,
            grid=grid,
            in_specs=[
                pl.BlockSpec((B, tile_c, S), lambda j, k: (0, k, 0)),       # feats (NCHW native)
                pl.BlockSpec((tile_c, tile_e), lambda j, k: (k, j)),        # W^T tile (bf16)
                pl.BlockSpec((1, tile_e), lambda j, k: (0, j)),             # bias
                pl.BlockSpec((1, tile_e), lambda j, k: (0, j)),             # gamma
                pl.BlockSpec((1, tile_e), lambda j, k: (0, j)),             # beta
            ],
            out_specs=pl.BlockSpec((B, tile_e), lambda j, k: (0, j)),
            scratch_shapes=[pltpu.VMEM((B, tile_e), jnp.float32)],
        ),
        compiler_params=pltpu.CompilerParams(
            dimension_semantics=("parallel", "arbitrary"),
            vmem_limit_bytes=vmem_limit,
        ),
    )(feats, w_t, b2, g2, be2)


def _reference(features_nchw, w, b, gamma, beta):
    # Pure-f32 reference (f32 weights, f32 pooling) of pool -> Linear -> BatchNorm1d(train).
    pooled = jnp.mean(features_nchw.astype(jnp.float32), axis=(2, 3))       # (B, C)
    y = pooled @ w.T.astype(jnp.float32) + b
    mu = jnp.mean(y, axis=0, keepdims=True)
    var = jnp.mean((y - mu) ** 2, axis=0, keepdims=True)
    return gamma * (y - mu) / jnp.sqrt(var + BN_EPS) + beta


if __name__ == "__main__":
    # Small shapes consistent with the module (scaled-down resnet layer4 output / embed_size).
    B, C, Hf, Wf = 8, 256, 4, 4    # C stands in for resnet.fc.in_features = 2048
    EMBED = 128                     # embed_size

    key = jax.random.PRNGKey(0)
    k_feat, k_w, k_b = jax.random.split(key, 3)

    # Feature maps travel bf16 through HBM (kernel accumulates in f32).
    features = jax.random.normal(k_feat, (B, C, Hf, Wf), dtype=jnp.float32).astype(jnp.bfloat16)

    # Deterministic param init (shapes from __init__: Linear(C, EMBED), BatchNorm1d(EMBED)).
    bound = 1.0 / (C ** 0.5)
    w = jax.random.uniform(k_w, (EMBED, C), minval=-bound, maxval=bound, dtype=jnp.float32)
    b = jax.random.uniform(k_b, (EMBED,), minval=-bound, maxval=bound, dtype=jnp.float32)
    gamma = jnp.ones((EMBED,), dtype=jnp.float32)   # BatchNorm1d weight init
    beta = jnp.zeros((EMBED,), dtype=jnp.float32)   # BatchNorm1d bias init

    out = jax.block_until_ready(encoder_cnn_forward(features, w, b, gamma, beta))

    ref = _reference(features, w, b, gamma, beta)
    assert out.shape == (B, EMBED), out.shape
    # Tolerance covers the deliberate bf16 weight/activation quantization into the MXU vs the
    # pure-f32 reference; outputs are batch-standardized (O(1)), so this is an absolute check.
    assert jnp.allclose(out, ref, atol=5e-2, rtol=5e-2), float(jnp.max(jnp.abs(out - ref)))

    print("KERNEL_OK")
</pallas_src>

<mosaic_0001>
module attributes {stable_mosaic.version = 11 : i64} {
  func.func @_encoder_kernel(%arg0: i32, %arg1: i32, %arg2: memref<8x256x16xbf16, #tpu.memory_space<vmem>>, %arg3: memref<256x128xbf16, #tpu.memory_space<vmem>>, %arg4: memref<1x128xf32, #tpu.memory_space<vmem>>, %arg5: memref<1x128xf32, #tpu.memory_space<vmem>>, %arg6: memref<1x128xf32, #tpu.memory_space<vmem>>, %arg7: memref<8x128xf32, #tpu.memory_space<vmem>>, %arg8: memref<8x128xf32, #tpu.memory_space<vmem>>) attributes {dimension_semantics = [#tpu.dimension_semantics<parallel>, #tpu.dimension_semantics<arbitrary>], iteration_bounds = array<i64: 1, 1>, scalar_prefetch = 0 : i64, scratch_operands = 1 : i64, tpu.core_type = #tpu.core_type<tc>, window_params = [{transform_indices = @transform_0, window_bounds = array<i64: 8, 256, 16>}, {transform_indices = @transform_1, window_bounds = array<i64: 256, 128>}, {transform_indices = @transform_2, window_bounds = array<i64: 1, 128>}, {transform_indices = @transform_3, window_bounds = array<i64: 1, 128>}, {transform_indices = @transform_4, window_bounds = array<i64: 1, 128>}, {transform_indices = @transform_5, window_bounds = array<i64: 8, 128>}]} {
    %c0_i32 = arith.constant 0 : i32
    %0 = arith.cmpi eq, %arg1, %c0_i32 : i32
    %1 = arith.extui %0 : i1 to i32
    %c0_i32_0 = arith.constant 0 : i32
    %2 = arith.cmpi ne, %1, %c0_i32_0 : i32
    scf.if %2 {
      %cst_12 = arith.constant 0.000000e+00 : f32
      %15 = vector.broadcast %cst_12 : f32 to vector<8x128xf32>
      %c0_13 = arith.constant 0 : index
      %c0_14 = arith.constant 0 : index
      %16 = vector.load %arg8[%c0_13, %c0_14] : memref<8x128xf32, #tpu.memory_space<vmem>>, vector<8x128xf32>
      tpu.vector_store %arg8[%c0_13, %c0_14], %15 {strides = array<i32>} : memref<8x128xf32, #tpu.memory_space<vmem>>, vector<8x128xf32>,
    } else {
    }
    %c0 = arith.constant 0 : index
    %c0_1 = arith.constant 0 : index
    %c0_2 = arith.constant 0 : index
    %3 = vector.load %arg2[%c0, %c0_1, %c0_2] : memref<8x256x16xbf16, #tpu.memory_space<vmem>>, vector<8x256x16xbf16>
    %4 = arith.extf %3 : vector<8x256x16xbf16> to vector<8x256x16xf32>
    %cst = arith.constant dense<0.000000e+00> : vector<8x256xf32>
    %5 = vector.multi_reduction <add>, %4, %cst [2] : vector<8x256x16xf32> to vector<8x256xf32>
    %c0_3 = arith.constant 0 : index
    %c0_4 = arith.constant 0 : index
    %6 = vector.load %arg8[%c0_3, %c0_4] : memref<8x128xf32, #tpu.memory_space<vmem>>, vector<8x128xf32>
    %7 = arith.truncf %5 : vector<8x256xf32> to vector<8x256xbf16>
    %c0_5 = arith.constant 0 : index
    %c0_6 = arith.constant 0 : index
    %8 = vector.load %arg3[%c0_5, %c0_6] : memref<256x128xbf16, #tpu.memory_space<vmem>>, vector<256x128xbf16>
    %cst_7 = arith.constant dense<0.000000e+00> : vector<8x128xf32>
    %9 = tpu.matmul %7, %8, %cst_7 {dimension_numbers = #tpu.dot_dimension_numbers<[1], [0], [0], [1], [0, 0, 1, 1], [], []>} : vector<8x256xbf16>, vector<256x128xbf16>, vector<8x128xf32> -> vector<8x128xf32>
    %10 = arith.addf %6, %9 : vector<8x128xf32>
    %c0_8 = arith.constant 0 : index
    %c0_9 = arith.constant 0 : index
    %11 = vector.load %arg8[%c0_8, %c0_9] : memref<8x128xf32, #tpu.memory_space<vmem>>, vector<8x128xf32>
    tpu.vector_store %arg8[%c0_8, %c0_9], %10 {strides = array<i32>} : memref<8x128xf32, #tpu.memory_space<vmem>>, vector<8x128xf32>,
    %c0_i32_10 = arith.constant 0 : i32
    %12 = arith.cmpi eq, %arg1, %c0_i32_10 : i32
    %13 = arith.extui %12 : i1 to i32
    %c0_i32_11 = arith.constant 0 : i32
    %14 = arith.cmpi ne, %13, %c0_i32_11 : i32
    scf.if %14 {
      %c0_12 = arith.constant 0 : index
      %c0_13 = arith.constant 0 : index
      %15 = vector.load %arg8[%c0_12, %c0_13] : memref<8x128xf32, #tpu.memory_space<vmem>>, vector<8x128xf32>
      %cst_14 = arith.constant 6.250000e-02 : f32
      %16 = vector.broadcast %cst_14 : f32 to vector<8x128xf32>
      %17 = arith.mulf %15, %16 : vector<8x128xf32>
      %c0_15 = arith.constant 0 : index
      %c0_16 = arith.constant 0 : index
      %18 = vector.load %arg4[%c0_15, %c0_16] : memref<1x128xf32, #tpu.memory_space<vmem>>, vector<1x128xf32>
      %19 = vector.broadcast %18 : vector<1x128xf32> to vector<8x128xf32>
      %20 = arith.addf %17, %19 : vector<8x128xf32>
      %cst_17 = arith.constant dense<0.000000e+00> : vector<128xf32>
      %21 = vector.multi_reduction <add>, %20, %cst_17 [0] : vector<8x128xf32> to vector<128xf32>
      %22 = vector.shape_cast %21 : vector<128xf32> to vector<1x128xf32>
      %cst_18 = arith.constant 8.000000e+00 : f32
      %23 = vector.broadcast %cst_18 : f32 to vector<1x128xf32>
      %24 = arith.divf %22, %23 : vector<1x128xf32>
      %25 = vector.broadcast %24 : vector<1x128xf32> to vector<8x128xf32>
      %26 = arith.subf %20, %25 : vector<8x128xf32>
      %27 = arith.mulf %26, %26 : vector<8x128xf32>
      %cst_19 = arith.constant dense<0.000000e+00> : vector<128xf32>
      %28 = vector.multi_reduction <add>, %27, %cst_19 [0] : vector<8x128xf32> to vector<128xf32>
      %29 = vector.shape_cast %28 : vector<128xf32> to vector<1x128xf32>
      %cst_20 = arith.constant 8.000000e+00 : f32
      %30 = vector.broadcast %cst_20 : f32 to vector<1x128xf32>
      %31 = arith.divf %29, %30 : vector<1x128xf32>
      %cst_21 = arith.constant 9.99999974E-6 : f32
      %32 = vector.broadcast %cst_21 : f32 to vector<1x128xf32>
      %33 = arith.addf %31, %32 : vector<1x128xf32>
      %34 = math.rsqrt %33 : vector<1x128xf32>
      %c0_22 = arith.constant 0 : index
      %c0_23 = arith.constant 0 : index
      %35 = vector.load %arg5[%c0_22, %c0_23] : memref<1x128xf32, #tpu.memory_space<vmem>>, vector<1x128xf32>
      %36 = vector.broadcast %24 : vector<1x128xf32> to vector<8x128xf32>
      %37 = arith.subf %20, %36 : vector<8x128xf32>
      %38 = vector.broadcast %35 : vector<1x128xf32> to vector<8x128xf32>
      %39 = arith.mulf %38, %37 : vector<8x128xf32>
      %40 = vector.broadcast %34 : vector<1x128xf32> to vector<8x128xf32>
      %41 = arith.mulf %39, %40 : vector<8x128xf32>
      %c0_24 = arith.constant 0 : index
      %c0_25 = arith.constant 0 : index
      %42 = vector.load %arg6[%c0_24, %c0_25] : memref<1x128xf32, #tpu.memory_space<vmem>>, vector<1x128xf32>
      %43 = vector.broadcast %42 : vector<1x128xf32> to vector<8x128xf32>
      %44 = arith.addf %41, %43 : vector<8x128xf32>
      %c0_26 = arith.constant 0 : index
      %c0_27 = arith.constant 0 : index
      %45 = vector.load %arg7[%c0_26, %c0_27] : memref<8x128xf32, #tpu.memory_space<vmem>>, vector<8x128xf32>
      tpu.vector_store %arg7[%c0_26, %c0_27], %44 {strides = array<i32>} : memref<8x128xf32, #tpu.memory_space<vmem>>, vector<8x128xf32>,
    } else {
    }
    return
  }
  func.func @transform_0(%arg0: i32, %arg1: i32) -> (i32, i32, i32) {
    %c0_i32 = arith.constant 0 : i32
    %c0_i32_0 = arith.constant 0 : i32
    %c0_i32_1 = arith.constant 0 : i32
    return %c0_i32, %arg1, %c0_i32_0 : i32, i32, i32
  }
  func.func @transform_1(%arg0: i32, %arg1: i32) -> (i32, i32) {
    %c0_i32 = arith.constant 0 : i32
    return %arg1, %arg0 : i32, i32
  }
  func.func @transform_2(%arg0: i32, %arg1: i32) -> (i32, i32) {
    %c0_i32 = arith.constant 0 : i32
    %c0_i32_0 = arith.constant 0 : i32
    return %c0_i32, %arg0 : i32, i32
  }
  func.func @transform_3(%arg0: i32, %arg1: i32) -> (i32, i32) {
    %c0_i32 = arith.constant 0 : i32
    %c0_i32_0 = arith.constant 0 : i32
    return %c0_i32, %arg0 : i32, i32
  }
  func.func @transform_4(%arg0: i32, %arg1: i32) -> (i32, i32) {
    %c0_i32 = arith.constant 0 : i32
    %c0_i32_0 = arith.constant 0 : i32
    return %c0_i32, %arg0 : i32, i32
  }
  func.func @transform_5(%arg0: i32, %arg1: i32) -> (i32, i32) {
    %c0_i32 = arith.constant 0 : i32
    %c0_i32_0 = arith.constant 0 : i32
    return %c0_i32, %arg0 : i32, i32
  }
}

</mosaic_0001>

<bundles_post_ra>
// kernel: tpu_custom_call.1
= control target key start
LH: loop header
LB: loop body
LE: loop exit
PB: predicated region body
PF: predicated region fallthrough
CT: control target
= control target key end

     0   :  { %vm538_vm0 = vcmask 130048   ;;  %s5149_s0 = inlined_call_operand.vmem [shape: bf16[8,256,16], index: 0, kind: input, shape index: {}]   ;;  %s5150_s1 = inlined_call_operand.vmem [shape: bf16[256,128], index: 1, kind: input, shape index: {}]   ;;  %s5151_s2 = inlined_call_operand.vmem [shape: f32[1,128], index: 2, kind: input, shape index: {}]   ;;  %s5152_s3 = inlined_call_operand.vmem [shape: f32[1,128], index: 3, kind: input, shape index: {}]   ;;  %s5153_s4 = inlined_call_operand.vmem [shape: f32[1,128], index: 4, kind: input, shape index: {}]   ;;  %s5154_s5 = inlined_call_operand.hbm [shape: f32[8,128], index: 5, kind: output, shape index: {}]  }
   0x1   :  { %v3194_v0 = vld [vmem:[%s5149_s0 + $0x10] sm:$0xff]   ;;  %v3193_v1 = vld [vmem:[%s5149_s0 + $0x8] sm:$0xff]   ;;  %v2682_v2 = vld [vmem:[%s5149_s0] sm:$0xff]  }
   0x2   :  { %v2691_v3 = vunpack.c.l.bf16 %v3194_v0  ;;  %v2687_v4 = vunpack.c.l.bf16 %v3193_v1  ;;  %v2683_v5 = vunpack.c.l.bf16 %v2682_v2 }
   0x4   :  { %v551_v6 = vsel %vm538_vm0, %v2691_v3, 0.0  ;;  %v545_v7 = vsel %vm538_vm0, %v2687_v4, 0.0  ;;  %v539_v8 = vsel %vm538_vm0, %v2683_v5, 0.0 }
   0x5   :  { %10 = vsyncpa [#allocation4], 0  ;;  %552 = vadd.xlane.f32.xlu2 %v551_v6  ;;  %546 = vadd.xlane.f32.xlu1 %v545_v7  ;;  %v2692_v9 = vunpack.c.h.bf16 %v3194_v0  ;;  %v2688_v10 = vunpack.c.h.bf16 %v3193_v1  ;;  %v2684_v11 = vunpack.c.h.bf16 %v2682_v2  ;;  %v3196_v15 = vld [vmem:[%s5149_s0 + $0x20] sm:$0xff]   ;;  %v3195_v16 = vld [vmem:[%s5149_s0 + $0x18] sm:$0xff]   ;;  %vm5155_vm1 = vcmask 130112   ;;  %s3357_s10 = smov [#allocation3]  }
   0x6   :  { %540 = vadd.xlane.f32.xlu0 %v539_v8  ;;  %v2699_v17 = vunpack.c.l.bf16 %v3196_v15  ;;  %v2696_v18 = vunpack.c.h.bf16 %v3195_v16  ;;  %v2695_v19 = vunpack.c.l.bf16 %v3195_v16  ;;  %v3197_v23 = vld [vmem:[%s5149_s0 + $0x28] sm:$0xff]   ;;  %v2700_v26 = vunpack.c.h.bf16 %v3196_v15  ;;  %v3199_v30 = vld [vmem:[%s5149_s0 + $0x38] sm:$0xff]   ;;  %v3198_v31 = vld [vmem:[%s5149_s0 + $0x30] sm:$0xff]   ;;  %s2590_s11 = sshll.u32 %s3357_s10, 4  ;;  %s2592_s14 = sshll.u32 %s5154_s5, 4  ;;  %s2591_s11 = int_to_ptr.vmem [resolvable:$true] %s2590_s11  ;;  %s2593_s14 = int_to_ptr.hbm [resolvable:$true] %s2592_s14 }
   0x7   :  { %v554_v12 = vsel %vm538_vm0, %v2692_v9, 0.0  ;;  %v548_v13 = vsel %vm538_vm0, %v2688_v10, 0.0  ;;  %v542_v14 = vsel %vm538_vm0, %v2684_v11, 0.0  ;;  %v2704_v24 = vunpack.c.h.bf16 %v3197_v23  ;;  %v3200_v38 = vld [vmem:[%s5149_s0 + $0x40] sm:$0xff]   ;;  %v3202_v45 = vld [vmem:[%s5149_s0 + $0x50] sm:$0xff]   ;;  %v3201_v46 = vld [vmem:[%s5149_s0 + $0x48] sm:$0xff]  }
   0x8   :  { %v563_v20 = vsel %vm538_vm0, %v2699_v17, 0.0  ;;  %v560_v21 = vsel %vm538_vm0, %v2696_v18, 0.0  ;;  %v557_v22 = vsel %vm538_vm0, %v2695_v19, 0.0  ;;  %v2703_v25 = vunpack.c.l.bf16 %v3197_v23  ;;  %v3203_v53 = vld [vmem:[%s5149_s0 + $0x58] sm:$0xff]   ;;  %v3205_v60 = vld [vmem:[%s5149_s0 + $0x68] sm:$0xff]   ;;  %v3204_v61 = vld [vmem:[%s5149_s0 + $0x60] sm:$0xff]  }
   0x9   :  { %v572_v27 = vsel %vm538_vm0, %v2704_v24, 0.0  ;;  %v566_v29 = vsel %vm538_vm0, %v2700_v26, 0.0  ;;  %v2711_v32 = vunpack.c.l.bf16 %v3199_v30  ;;  %v2708_v33 = vunpack.c.h.bf16 %v3198_v31  ;;  %v3206_v4 = vld [vmem:[%s5149_s0 + $0x70] sm:$0xff]   ;;  %v3208_v11 = vld [vmem:[%s5149_s0 + $0x80] sm:$0xff]   ;;  %v3209_v19 = vld [vmem:[%s5149_s0 + $0x88] sm:$0xff]  }
   0xa   :  { %v569_v28 = vsel %vm538_vm0, %v2703_v25, 0.0  ;;  %v2707_v34 = vunpack.c.l.bf16 %v3198_v31  ;;  %v2716_v39 = vunpack.c.h.bf16 %v3200_v38  ;;  %v2715_v40 = vunpack.c.l.bf16 %v3200_v38  ;;  %v3211_v26 = vld [vmem:[%s5149_s0 + $0x98] sm:$0xff]  }
   0xb   :  { %v581_v35 = vsel %vm538_vm0, %v2711_v32, 0.0  ;;  %v578_v36 = vsel %vm538_vm0, %v2708_v33, 0.0  ;;  %v2712_v41 = vunpack.c.h.bf16 %v3199_v30  ;;  %v2723_v47 = vunpack.c.l.bf16 %v3202_v45 }
   0xc   :  { %v575_v37 = vsel %vm538_vm0, %v2707_v34, 0.0  ;;  %v590_v42 = vsel %vm538_vm0, %v2716_v39, 0.0  ;;  %v587_v43 = vsel %vm538_vm0, %v2715_v40, 0.0  ;;  %v2720_v48 = vunpack.c.h.bf16 %v3201_v46  ;;  %v3212_v34 = vld [vmem:[%s5149_s0 + $0xa0] sm:$0xff]  }
   0xd   :  { %555 = vadd.xlane.f32.xlu2 %v554_v12  ;;  %549 = vadd.xlane.f32.xlu1 %v548_v13  ;;  %v584_v44 = vsel %vm538_vm0, %v2712_v41, 0.0  ;;  %v2719_v49 = vunpack.c.l.bf16 %v3201_v46  ;;  %v599_v50 = vsel %vm538_vm0, %v2723_v47, 0.0  ;;  %v2728_v54 = vunpack.c.h.bf16 %v3203_v53  ;;  %v3207_v12 = vld [vmem:[%s5149_s0 + $0x78] sm:$0xff]   ;;  %v3214_v41 = vld [vmem:[%s5149_s0 + $0xb0] sm:$0xff]  }
   0xe   :  { %543 = vadd.xlane.f32.xlu0 %v542_v14  ;;  %v596_v51 = vsel %vm538_vm0, %v2720_v48, 0.0  ;;  %v2727_v55 = vunpack.c.l.bf16 %v3203_v53  ;;  %v2724_v56 = vunpack.c.h.bf16 %v3202_v45  ;;  %v2735_v62 = vunpack.c.l.bf16 %v3205_v60 }
   0xf   :  { %v593_v52 = vsel %vm538_vm0, %v2719_v49, 0.0  ;;  %v608_v57 = vsel %vm538_vm0, %v2728_v54, 0.0  ;;  %v2732_v63 = vunpack.c.h.bf16 %v3204_v61  ;;  %v2731_v0 = vunpack.c.l.bf16 %v3204_v61  ;;  %v3215_v49 = vld [vmem:[%s5149_s0 + $0xb8] sm:$0xff]  }
  0x10   :  { %v605_v58 = vsel %vm538_vm0, %v2727_v55, 0.0  ;;  %v602_v59 = vsel %vm538_vm0, %v2724_v56, 0.0  ;;  %v617_v1 = vsel %vm538_vm0, %v2735_v62, 0.0  ;;  %v2740_v5 = vunpack.c.h.bf16 %v3206_v4 }
  0x11   :  { %v614_v2 = vsel %vm538_vm0, %v2732_v63, 0.0  ;;  %v611_v3 = vsel %vm538_vm0, %v2731_v0, 0.0  ;;  %v2739_v6 = vunpack.c.l.bf16 %v3206_v4  ;;  %v2736_v7 = vunpack.c.h.bf16 %v3205_v60  ;;  %v3216_v60 = vld [vmem:[%s5149_s0 + $0xc0] sm:$0xff]  }
  0x12   :  { %v626_v8 = vsel %vm538_vm0, %v2740_v5, 0.0  ;;  %v2747_v13 = vunpack.c.l.bf16 %v3208_v11  ;;  %v2744_v14 = vunpack.c.h.bf16 %v3207_v12  ;;  %v2743_v15 = vunpack.c.l.bf16 %v3207_v12 }
  0x13   :  { %v623_v9 = vsel %vm538_vm0, %v2739_v6, 0.0  ;;  %v620_v10 = vsel %vm538_vm0, %v2736_v7, 0.0  ;;  %v2780_v62 = vunpack.c.h.bf16 %v3216_v60  ;;  %v2779_v63 = vunpack.c.l.bf16 %v3216_v60  ;;  %v3218_v6 = vld [vmem:[%s5149_s0 + $0xd0] sm:$0xff]  }
  0x14   :  { %v635_v16 = vsel %vm538_vm0, %v2747_v13, 0.0  ;;  %v632_v17 = vsel %vm538_vm0, %v2744_v14, 0.0  ;;  %v629_v18 = vsel %vm538_vm0, %v2743_v15, 0.0  ;;  %v2788_v7 = vunpack.c.h.bf16 %v3218_v6 }
  0x15   :  { %564 = vadd.xlane.f32.xlu2 %v563_v20  ;;  %561 = vadd.xlane.f32.xlu1 %v560_v21  ;;  %v2752_v20 = vunpack.c.h.bf16 %v3209_v19  ;;  %v2751_v21 = vunpack.c.l.bf16 %v3209_v19  ;;  %v686_v4 = vsel %vm538_vm0, %v2780_v62, 0.0  ;;  %v683_v5 = vsel %vm538_vm0, %v2779_v63, 0.0  ;;  %v3225_v62 = vld [vmem:[%s5149_s0 + $0x108] sm:$0xff]  }
  0x16   :  { %558 = vadd.xlane.f32.xlu0 %v557_v22  ;;  %v2748_v22 = vunpack.c.h.bf16 %v3208_v11  ;;  %v698_v13 = vsel %vm538_vm0, %v2788_v7, 0.0  ;;  %vm1861_vm2 = vcmask 195712   ;;  %vm1865_vm3 = vcmask 261312  }
  0x17   :  { %v644_v23 = vsel %vm538_vm0, %v2752_v20, 0.0  ;;  %v641_v24 = vsel %vm538_vm0, %v2751_v21, 0.0  ;;  %vm1869_vm4 = vcmask 326912   ;;  %vm1873_vm5 = vcmask 392512  }
  0x18   :  { %v638_v25 = vsel %vm538_vm0, %v2748_v22, 0.0  ;;  %vm1877_vm6 = vcmask 458112   ;;  %vm5160_vm7 = vcmask 523712   ;;  %vm1885_vm8 = vcmask 589312  }
  0x19   :  { %vm1889_vm9 = vcmask 654912   ;;  %vm5161_vm10 = vcmask 720512   ;;  %vm5157_vm11 = vcmask 786112   ;;  %vm1901_vm12 = vcmask 851712  }
  0x1a   :  { %vm5159_vm13 = vcmask 917312   ;;  %vm1909_vm14 = vcmask 982912   ;;  %vm1913_vm15 = vcmask 1048512  }
  0x1d   :  { %573 = vadd.xlane.f32.xlu2 %v572_v27  ;;  %570 = vadd.xlane.f32.xlu1 %v569_v28  ;;  %v3210_v27 = vld [vmem:[%s5149_s0 + $0x90] sm:$0xff]   ;;  %v2759_v28 = vunpack.c.l.bf16 %v3211_v26 }
  0x1e   :  { %567 = vadd.xlane.f32.xlu0 %v566_v29  ;;  %v2756_v29 = vunpack.c.h.bf16 %v3210_v27  ;;  %v2755_v30 = vunpack.c.l.bf16 %v3210_v27  ;;  %v3221_v27 = vld [vmem:[%s5149_s0 + $0xe8] sm:$0xff]  }
  0x1f   :  { %v653_v31 = vsel %vm538_vm0, %v2759_v28, 0.0  ;;  %v2800_v28 = vunpack.c.h.bf16 %v3221_v27 }
  0x20   :  { %v650_v32 = vsel %vm538_vm0, %v2756_v29, 0.0  ;;  %v647_v33 = vsel %vm538_vm0, %v2755_v30, 0.0  ;;  %v2799_v29 = vunpack.c.l.bf16 %v3221_v27  ;;  %v3229_v27 = vld [vmem:[%s5149_s0 + $0x128] sm:$0xff]  }
  0x25   :  { %582 = vadd.xlane.f32.xlu2 %v581_v35  ;;  %579 = vadd.xlane.f32.xlu1 %v578_v36  ;;  %v2764_v35 = vunpack.c.h.bf16 %v3212_v34  ;;  %v2763_v36 = vunpack.c.l.bf16 %v3212_v34  ;;  %v716_v34 = vsel %vm538_vm0, %v2800_v28, 0.0  ;;  %v3228_v28 = vld [vmem:[%s5149_s0 + $0x120] sm:$0xff]  }
  0x26   :  { %576 = vadd.xlane.f32.xlu0 %v575_v37  ;;  %v2760_v37 = vunpack.c.h.bf16 %v3211_v26 }
  0x27   :  { %v662_v38 = vsel %vm538_vm0, %v2764_v35, 0.0  ;;  %v659_v39 = vsel %vm538_vm0, %v2763_v36, 0.0  ;;  %v713_v35 = vsel %vm538_vm0, %v2799_v29, 0.0  ;;  %v2831_v29 = vunpack.c.l.bf16 %v3229_v27 }
  0x28   :  { %v656_v40 = vsel %vm538_vm0, %v2760_v37, 0.0  ;;  %v3223_v37 = vld [vmem:[%s5149_s0 + $0xf8] sm:$0xff]  }
  0x2d   :  { %591 = vadd.xlane.f32.xlu2 %v590_v42  ;;  %588 = vadd.xlane.f32.xlu1 %v587_v43  ;;  %v3213_v42 = vld [vmem:[%s5149_s0 + $0xa8] sm:$0xff]   ;;  %v2771_v43 = vunpack.c.l.bf16 %v3214_v41 }
  0x2e   :  { %585 = vadd.xlane.f32.xlu0 %v584_v44  ;;  %v2768_v44 = vunpack.c.h.bf16 %v3213_v42  ;;  %v2767_v45 = vunpack.c.l.bf16 %v3213_v42 }
  0x2f   :  { %v671_v46 = vsel %vm538_vm0, %v2771_v43, 0.0 }
  0x30   :  { %v668_v47 = vsel %vm538_vm0, %v2768_v44, 0.0  ;;  %v665_v48 = vsel %vm538_vm0, %v2767_v45, 0.0 }
  0x35   :  { %600 = vadd.xlane.f32.xlu2 %v599_v50  ;;  %597 = vadd.xlane.f32.xlu1 %v596_v51  ;;  %v2776_v50 = vunpack.c.h.bf16 %v3215_v49  ;;  %v2775_v51 = vunpack.c.l.bf16 %v3215_v49 }
  0x36   :  { %594 = vadd.xlane.f32.xlu0 %v593_v52  ;;  %v2772_v52 = vunpack.c.h.bf16 %v3214_v41 }
  0x37   :  { %v680_v56 = vsel %vm538_vm0, %v2776_v50, 0.0 }
  0x3d   :  { %609 = vadd.xlane.f32.xlu2 %v608_v57  ;;  %606 = vadd.xlane.f32.xlu1 %v605_v58  ;;  %v677_v57 = vsel %vm538_vm0, %v2775_v51, 0.0  ;;  %v674_v58 = vsel %vm538_vm0, %v2772_v52, 0.0  ;;  %v2808_v51 = vunpack.c.h.bf16 %v3223_v37 }
  0x3e   :  { %603 = vadd.xlane.f32.xlu0 %v602_v59  ;;  %v3217_v59 = vld [vmem:[%s5149_s0 + $0xc8] sm:$0xff]  }
  0x3f   :  { %v2783_v61 = vunpack.c.l.bf16 %v3217_v59  ;;  %v728_v60 = vsel %vm538_vm0, %v2808_v51, 0.0 }
  0x45   :  { %618 = vadd.xlane.f32.xlu2 %v617_v1  ;;  %615 = vadd.xlane.f32.xlu1 %v614_v2 }
  0x46   :  { %612 = vadd.xlane.f32.xlu0 %v611_v3  ;;  %v689_v3 = vsel %vm538_vm0, %v2783_v61, 0.0  ;;  %v3226_v61 = vld [vmem:[%s5149_s0 + $0x110] sm:$0xff]  }
  0x47   :  { %v2819_v63 = vunpack.c.l.bf16 %v3226_v61 }
  0x4d   :  { %627 = vadd.xlane.f32.xlu2 %v626_v8  ;;  %624 = vadd.xlane.f32.xlu1 %v623_v9  ;;  %v2787_v8 = vunpack.c.l.bf16 %v3218_v6  ;;  %v2784_v9 = vunpack.c.h.bf16 %v3217_v59 }
  0x4e   :  { %621 = vadd.xlane.f32.xlu0 %v620_v10 }
  0x4f   :  { %v695_v14 = vsel %vm538_vm0, %v2787_v8, 0.0  ;;  %v692_v15 = vsel %vm538_vm0, %v2784_v9, 0.0  ;;  %v743_v8 = vsel %vm538_vm0, %v2819_v63, 0.0 }
  0x55   :  { %636 = vadd.xlane.f32.xlu2 %v635_v16  ;;  %633 = vadd.xlane.f32.xlu1 %v632_v17  ;;  %v3220_v16 = vld [vmem:[%s5149_s0 + $0xe0] sm:$0xff]   ;;  %v3219_v17 = vld [vmem:[%s5149_s0 + $0xd8] sm:$0xff]  }
  0x56   :  { %630 = vadd.xlane.f32.xlu0 %v629_v18  ;;  %v2795_v18 = vunpack.c.l.bf16 %v3220_v16  ;;  %v2792_v19 = vunpack.c.h.bf16 %v3219_v17  ;;  %v2791_v20 = vunpack.c.l.bf16 %v3219_v17  ;;  %v2796_v30 = vunpack.c.h.bf16 %v3220_v16 }
  0x57   :  { %v2820_v17 = vunpack.c.h.bf16 %v3226_v61  ;;  %v3231_v61 = vld [vmem:[%s5149_s0 + $0x138] sm:$0xff]  }
  0x58   :  { %v701_v26 = vsel %vm538_vm0, %v2791_v20, 0.0  ;;  %v710_v36 = vsel %vm538_vm0, %v2796_v30, 0.0  ;;  %v2828_v30 = vunpack.c.h.bf16 %v3228_v28  ;;  %v2840_v63 = vunpack.c.h.bf16 %v3231_v61 }
  0x5d   :  { %645 = vadd.xlane.f32.xlu2 %v644_v23  ;;  %642 = vadd.xlane.f32.xlu1 %v641_v24  ;;  %v707_v24 = vsel %vm538_vm0, %v2795_v18, 0.0 }
  0x5e   :  { %639 = vadd.xlane.f32.xlu0 %v638_v25  ;;  %v704_v25 = vsel %vm538_vm0, %v2792_v19, 0.0 }
  0x65   :  { %654 = vadd.xlane.f32.xlu2 %v653_v31  ;;  %651 = vadd.xlane.f32.xlu1 %v650_v32 }
  0x66   :  { %648 = vadd.xlane.f32.xlu0 %v647_v33 }
  0x6d   :  { %663 = vadd.xlane.f32.xlu2 %v662_v38  ;;  %660 = vadd.xlane.f32.xlu1 %v659_v39  ;;  %v3222_v38 = vld [vmem:[%s5149_s0 + $0xf0] sm:$0xff]   ;;  %v2807_v39 = vunpack.c.l.bf16 %v3223_v37 }
  0x6e   :  { %657 = vadd.xlane.f32.xlu0 %v656_v40  ;;  %v2804_v40 = vunpack.c.h.bf16 %v3222_v38  ;;  %v2803_v41 = vunpack.c.l.bf16 %v3222_v38  ;;  %v761_v38 = vsel %vm538_vm0, %v2831_v29, 0.0 }
  0x6f   :  { %v725_v45 = vsel %vm538_vm0, %v2807_v39, 0.0  ;;  %v758_v39 = vsel %vm538_vm0, %v2828_v30, 0.0 }
  0x75   :  { %672 = vadd.xlane.f32.xlu2 %v671_v46  ;;  %669 = vadd.xlane.f32.xlu1 %v668_v47  ;;  %v722_v46 = vsel %vm538_vm0, %v2804_v40, 0.0  ;;  %v719_v47 = vsel %vm538_vm0, %v2803_v41, 0.0  ;;  %v3230_v41 = vld [vmem:[%s5149_s0 + $0x130] sm:$0xff]  }
  0x76   :  { %666 = vadd.xlane.f32.xlu0 %v665_v48  ;;  %v3224_v48 = vld [vmem:[%s5149_s0 + $0x100] sm:$0xff]  }
  0x77   :  { %v2812_v49 = vunpack.c.h.bf16 %v3224_v48  ;;  %v2811_v50 = vunpack.c.l.bf16 %v3224_v48 }
  0x78   :  { %v3505_v53 = vpop.xlane.xlu2 %552  ;;  %v3507_v54 = vpop.xlane.xlu1 %546 }
  0x79   :  { %v3509_v55 = vpop.xlane.xlu0 %540  ;;  %v731_v59 = vsel %vm538_vm0, %v2811_v50, 0.0 }
  0x7d   :  { %681 = vadd.xlane.f32.xlu2 %v680_v56  ;;  %678 = vadd.xlane.f32.xlu1 %v677_v57 }
  0x7e   :  { %675 = vadd.xlane.f32.xlu0 %v674_v58  ;;  %v734_v58 = vsel %vm538_vm0, %v2812_v49, 0.0 }
  0x80   :  { %v3520_v0 = vpop.xlane.xlu2 %555  ;;  %v3522_v1 = vpop.xlane.xlu1 %549 }
  0x81   :  { %v3524_v2 = vpop.xlane.xlu0 %543 }
  0x85   :  { %690 = vadd.xlane.f32.xlu2 %v689_v3  ;;  %687 = vadd.xlane.f32.xlu1 %v686_v4  ;;  %v2816_v3 = vunpack.c.h.bf16 %v3225_v62  ;;  %v2815_v4 = vunpack.c.l.bf16 %v3225_v62 }
  0x86   :  { %684 = vadd.xlane.f32.xlu0 %v683_v5 }
  0x87   :  { %v740_v9 = vsel %vm538_vm0, %v2816_v3, 0.0  ;;  %v2839_v3 = vunpack.c.l.bf16 %v3231_v61  ;;  %v3236_v61 = vld [vmem:[%s5149_s0 + $0x160] sm:$0xff]  }
  0x88   :  { %v3532_v10 = vpop.xlane.xlu2 %564  ;;  %v3534_v11 = vpop.xlane.xlu1 %561 }
  0x89   :  { %v3536_v12 = vpop.xlane.xlu0 %558 }
  0x8d   :  { %699 = vadd.xlane.f32.xlu2 %v698_v13  ;;  %696 = vadd.xlane.f32.xlu1 %v695_v14  ;;  %v737_v13 = vsel %vm538_vm0, %v2815_v4, 0.0  ;;  %v3227_v14 = vld [vmem:[%s5149_s0 + $0x118] sm:$0xff]  }
  0x8e   :  { %693 = vadd.xlane.f32.xlu0 %v692_v15  ;;  %v2824_v15 = vunpack.c.h.bf16 %v3227_v14  ;;  %v2823_v16 = vunpack.c.l.bf16 %v3227_v14  ;;  %v776_v14 = vsel %vm538_vm0, %v2840_v63, 0.0  ;;  %v2859_v63 = vunpack.c.l.bf16 %v3236_v61 }
  0x90   :  { %v3547_v21 = vpop.xlane.xlu2 %573  ;;  %v3549_v22 = vpop.xlane.xlu1 %570 }
  0x91   :  { %v3551_v23 = vpop.xlane.xlu0 %567 }
  0x95   :  { %708 = vadd.xlane.f32.xlu2 %v707_v24  ;;  %705 = vadd.xlane.f32.xlu1 %v704_v25  ;;  %v752_v24 = vsel %vm538_vm0, %v2824_v15, 0.0  ;;  %v749_v25 = vsel %vm538_vm0, %v2823_v16, 0.0  ;;  %v773_v15 = vsel %vm538_vm0, %v2839_v3, 0.0  ;;  %v3233_v16 = vld [vmem:[%s5149_s0 + $0x148] sm:$0xff]  }
  0x96   :  { %702 = vadd.xlane.f32.xlu0 %v701_v26  ;;  %v746_v26 = vsel %vm538_vm0, %v2820_v17, 0.0  ;;  %v2848_v17 = vunpack.c.h.bf16 %v3233_v16 }
  0x98   :  { %v3559_v31 = vpop.xlane.xlu2 %582  ;;  %v3561_v32 = vpop.xlane.xlu1 %579  ;;  %v788_v29 = vsel %vm538_vm0, %v2848_v17, 0.0  ;;  %v803_v17 = vsel %vm538_vm0, %v2859_v63, 0.0 }
  0x99   :  { %v3563_v33 = vpop.xlane.xlu0 %576 }
  0x9d   :  { %717 = vadd.xlane.f32.xlu2 %v716_v34  ;;  %714 = vadd.xlane.f32.xlu1 %v713_v35  ;;  %v2827_v34 = vunpack.c.l.bf16 %v3228_v28 }
  0x9e   :  { %711 = vadd.xlane.f32.xlu0 %v710_v36 }
  0x9f   :  { %v755_v40 = vsel %vm538_vm0, %v2827_v34, 0.0 }
  0xa0   :  { %v3574_v42 = vpop.xlane.xlu2 %591  ;;  %v3576_v43 = vpop.xlane.xlu1 %588 }
  0xa1   :  { %v3578_v44 = vpop.xlane.xlu0 %585 }
  0xa5   :  { %726 = vadd.xlane.f32.xlu2 %v725_v45  ;;  %723 = vadd.xlane.f32.xlu1 %v722_v46  ;;  %v2836_v45 = vunpack.c.h.bf16 %v3230_v41  ;;  %v2835_v46 = vunpack.c.l.bf16 %v3230_v41 }
  0xa6   :  { %720 = vadd.xlane.f32.xlu0 %v719_v47  ;;  %v2832_v47 = vunpack.c.h.bf16 %v3229_v27 }
  0xa7   :  { %v770_v51 = vsel %vm538_vm0, %v2836_v45, 0.0 }
  0xa8   :  { %v3586_v52 = vpop.xlane.xlu2 %600  ;;  %v3588_v56 = vpop.xlane.xlu1 %597 }
  0xa9   :  { %v3590_v57 = vpop.xlane.xlu0 %594 }
  0xad   :  { %735 = vadd.xlane.f32.xlu2 %v734_v58  ;;  %732 = vadd.xlane.f32.xlu1 %v731_v59  ;;  %v767_v58 = vsel %vm538_vm0, %v2835_v46, 0.0  ;;  %v764_v59 = vsel %vm538_vm0, %v2832_v47, 0.0 }
  0xae   :  { %729 = vadd.xlane.f32.xlu0 %v728_v60  ;;  %v3232_v60 = vld [vmem:[%s5149_s0 + $0x140] sm:$0xff]  }
  0xaf   :  { %v2843_v62 = vunpack.c.l.bf16 %v3232_v60 }
  0xb0   :  { %v3601_v5 = vpop.xlane.xlu2 %609  ;;  %v3603_v6 = vpop.xlane.xlu1 %606 }
  0xb1   :  { %v3605_v7 = vpop.xlane.xlu0 %603 }
  0xb5   :  { %744 = vadd.xlane.f32.xlu2 %v743_v8  ;;  %741 = vadd.xlane.f32.xlu1 %v740_v9 }
  0xb6   :  { %738 = vadd.xlane.f32.xlu0 %v737_v13  ;;  %v779_v13 = vsel %vm538_vm0, %v2843_v62, 0.0  ;;  %v2860_v62 = vunpack.c.h.bf16 %v3236_v61 }
  0xb8   :  { %v3613_v18 = vpop.xlane.xlu2 %618  ;;  %v3615_v19 = vpop.xlane.xlu1 %615 }
  0xb9   :  { %v3617_v20 = vpop.xlane.xlu0 %612 }
  0xbd   :  { %753 = vadd.xlane.f32.xlu2 %v752_v24  ;;  %750 = vadd.xlane.f32.xlu1 %v749_v25  ;;  %v2847_v24 = vunpack.c.l.bf16 %v3233_v16  ;;  %v2844_v25 = vunpack.c.h.bf16 %v3232_v60  ;;  %v806_v16 = vsel %vm538_vm0, %v2860_v62, 0.0 }
  0xbe   :  { %747 = vadd.xlane.f32.xlu0 %v746_v26 }
  0xbf   :  { %v785_v30 = vsel %vm538_vm0, %v2847_v24, 0.0  ;;  %v782_v34 = vsel %vm538_vm0, %v2844_v25, 0.0  ;;  %v3238_v25 = vld [vmem:[%s5149_s0 + $0x170] sm:$0xff]  }
  0xc0   :  { %v3628_v35 = vpop.xlane.xlu2 %627  ;;  %v3630_v36 = vpop.xlane.xlu1 %624  ;;  %v2868_v63 = vunpack.c.h.bf16 %v3238_v25 }
  0xc1   :  { %v3632_v37 = vpop.xlane.xlu0 %621 }
  0xc5   :  { %762 = vadd.xlane.f32.xlu2 %v761_v38  ;;  %759 = vadd.xlane.f32.xlu1 %v758_v39  ;;  %v3235_v38 = vld [vmem:[%s5149_s0 + $0x158] sm:$0xff]   ;;  %v3234_v39 = vld [vmem:[%s5149_s0 + $0x150] sm:$0xff]  }
  0xc6   :  { %756 = vadd.xlane.f32.xlu0 %v755_v40  ;;  %v2855_v40 = vunpack.c.l.bf16 %v3235_v38  ;;  %v2852_v41 = vunpack.c.h.bf16 %v3234_v39  ;;  %v2851_v45 = vunpack.c.l.bf16 %v3234_v39  ;;  %v2856_v3 = vunpack.c.h.bf16 %v3235_v38 }
  0xc8   :  { %v3640_v48 = vpop.xlane.xlu2 %636  ;;  %v3642_v49 = vpop.xlane.xlu1 %633  ;;  %v791_v60 = vsel %vm538_vm0, %v2851_v45, 0.0  ;;  %v800_v24 = vsel %vm538_vm0, %v2856_v3, 0.0 }
  0xc9   :  { %5162 = vst [vmem:[#allocation6_spill] sm:$0xff] %v3642_v49  ;;  %v3644_v50 = vpop.xlane.xlu0 %630 }
  0xca   :  { %5163 = vst [vmem:[#allocation7_spill] sm:$0xff] %v3644_v50 }
  0xcd   :  { %771 = vadd.xlane.f32.xlu2 %v770_v51  ;;  %768 = vadd.xlane.f32.xlu1 %v767_v58  ;;  %v797_v58 = vsel %vm538_vm0, %v2855_v40, 0.0 }
  0xce   :  { %765 = vadd.xlane.f32.xlu0 %v764_v59  ;;  %v794_v59 = vsel %vm538_vm0, %v2852_v41, 0.0 }
  0xd0   :  { %v3655_v4 = vpop.xlane.xlu2 %645  ;;  %v3657_v8 = vpop.xlane.xlu1 %642 }
  0xd1   :  { %v3659_v9 = vpop.xlane.xlu0 %639 }
  0xd5   :  { %780 = vadd.xlane.f32.xlu2 %v779_v13  ;;  %777 = vadd.xlane.f32.xlu1 %v776_v14 }
  0xd6   :  { %774 = vadd.xlane.f32.xlu0 %v773_v15 }
  0xd8   :  { %v3667_v26 = vpop.xlane.xlu2 %654  ;;  %v3669_v27 = vpop.xlane.xlu1 %651 }
  0xd9   :  { %v3671_v28 = vpop.xlane.xlu0 %648 }
  0xdd   :  { %789 = vadd.xlane.f32.xlu2 %v788_v29  ;;  %786 = vadd.xlane.f32.xlu1 %v785_v30  ;;  %v3237_v29 = vld [vmem:[%s5149_s0 + $0x168] sm:$0xff]   ;;  %v2867_v30 = vunpack.c.l.bf16 %v3238_v25  ;;  %v3240_v25 = vld [vmem:[%s5149_s0 + $0x180] sm:$0xff]  }
  0xde   :  { %783 = vadd.xlane.f32.xlu0 %v782_v34  ;;  %v2864_v34 = vunpack.c.h.bf16 %v3237_v29  ;;  %v2863_v38 = vunpack.c.l.bf16 %v3237_v29 }
  0xdf   :  { %v815_v45 = vsel %vm538_vm0, %v2867_v30, 0.0  ;;  %v818_v30 = vsel %vm538_vm0, %v2868_v63, 0.0 }
  0xe0   :  { %v3682_v46 = vpop.xlane.xlu2 %663  ;;  %v3684_v47 = vpop.xlane.xlu1 %660 }
  0xe1   :  { %5164 = vst [vmem:[#allocation8_spill] sm:$0xff] %v3682_v46  ;;  %v3686_v51 = vpop.xlane.xlu0 %657 }
  0xe2   :  { %5165 = vst [vmem:[#allocation9_spill] sm:$0xff] %v3684_v47 }
  0xe5   :  { %798 = vadd.xlane.f32.xlu2 %v797_v58  ;;  %795 = vadd.xlane.f32.xlu1 %v794_v59  ;;  %v812_v58 = vsel %vm538_vm0, %v2864_v34, 0.0  ;;  %v809_v59 = vsel %vm538_vm0, %v2863_v38, 0.0  ;;  %v3241_v34 = vld [vmem:[%s5149_s0 + $0x188] sm:$0xff]  }
  0xe6   :  { %792 = vadd.xlane.f32.xlu0 %v791_v60  ;;  %v3239_v60 = vld [vmem:[%s5149_s0 + $0x178] sm:$0xff]   ;;  %v2879_v38 = vunpack.c.l.bf16 %v3241_v34 }
  0xe7   :  { %v2872_v61 = vunpack.c.h.bf16 %v3239_v60  ;;  %v2871_v62 = vunpack.c.l.bf16 %v3239_v60 }
  0xe8   :  { %v3694_v13 = vpop.xlane.xlu2 %672  ;;  %v3696_v14 = vpop.xlane.xlu1 %669 }
  0xe9   :  { %5166 = vst [vmem:[#allocation10_spill] sm:$0xff] %v3694_v13  ;;  %v3698_v15 = vpop.xlane.xlu0 %666  ;;  %v821_v29 = vsel %vm538_vm0, %v2871_v62, 0.0  ;;  %v833_v62 = vsel %vm538_vm0, %v2879_v38, 0.0 }
  0xea   :  { %5167 = vst [vmem:[#allocation11_spill] sm:$0xff] %v3696_v14 }
  0xeb   :  { %5168 = vst [vmem:[#allocation12_spill] sm:$0xff] %v3698_v15 }
  0xed   :  { %807 = vadd.xlane.f32.xlu2 %v806_v16  ;;  %804 = vadd.xlane.f32.xlu1 %v803_v17 }
  0xee   :  { %801 = vadd.xlane.f32.xlu0 %v800_v24  ;;  %v824_v24 = vsel %vm538_vm0, %v2872_v61, 0.0 }
  0xf0   :  { %v3709_v39 = vpop.xlane.xlu2 %681  ;;  %v3711_v40 = vpop.xlane.xlu1 %678 }
  0xf1   :  { %5169 = vst [vmem:[#allocation13_spill] sm:$0xff] %v3709_v39  ;;  %v3713_v41 = vpop.xlane.xlu0 %675 }
  0xf2   :  { %5170 = vst [vmem:[#allocation14_spill] sm:$0xff] %v3711_v40 }
  0xf3   :  { %5171 = vst [vmem:[#allocation15_spill] sm:$0xff] %v3713_v41 }
  0xf5   :  { %816 = vadd.xlane.f32.xlu2 %v815_v45  ;;  %813 = vadd.xlane.f32.xlu1 %v812_v58  ;;  %v2876_v45 = vunpack.c.h.bf16 %v3240_v25 }
  0xf6   :  { %810 = vadd.xlane.f32.xlu0 %v809_v59  ;;  %v2875_v59 = vunpack.c.l.bf16 %v3240_v25 }
  0xf7   :  { %v830_v63 = vsel %vm538_vm0, %v2876_v45, 0.0 }
  0xf8   :  { %v3721_v3 = vpop.xlane.xlu2 %690  ;;  %v3723_v16 = vpop.xlane.xlu1 %687 }
  0xf9   :  { %5172 = vst [vmem:[#allocation16_spill] sm:$0xff] %v3721_v3  ;;  %v3725_v17 = vpop.xlane.xlu0 %684  ;;  %v3242_v3 = vld [vmem:[%s5149_s0 + $0x190] sm:$0xff]  }
  0xfa   :  { %5173 = vst [vmem:[#allocation17_spill] sm:$0xff] %v3723_v16 }
  0xfb   :  { %5174 = vst [vmem:[#allocation18_spill] sm:$0xff] %v3725_v17 }
  0xfd   :  { %825 = vadd.xlane.f32.xlu2 %v824_v24  ;;  %822 = vadd.xlane.f32.xlu1 %v821_v29  ;;  %v827_v24 = vsel %vm538_vm0, %v2875_v59, 0.0  ;;  %v2884_v29 = vunpack.c.h.bf16 %v3242_v3  ;;  %v3244_v59 = vld [vmem:[%s5149_s0 + $0x1a0] sm:$0xff]  }
  0xfe   :  { %819 = vadd.xlane.f32.xlu0 %v818_v30  ;;  %v2883_v30 = vunpack.c.l.bf16 %v3242_v3  ;;  %v3243_v3 = vld [vmem:[%s5149_s0 + $0x198] sm:$0xff]  }
  0xff   :  { %v842_v38 = vsel %vm538_vm0, %v2884_v29, 0.0  ;;  %v2887_v29 = vunpack.c.l.bf16 %v3243_v3 }
 0x100   :  { %v3736_v58 = vpop.xlane.xlu2 %699  ;;  %v3738_v60 = vpop.xlane.xlu1 %696  ;;  %v839_v45 = vsel %vm538_vm0, %v2883_v30, 0.0 }
 0x101   :  { %5175 = vst [vmem:[#allocation19_spill] sm:$0xff] %v3736_v58  ;;  %v3740_v61 = vpop.xlane.xlu0 %693  ;;  %v2880_v58 = vunpack.c.h.bf16 %v3241_v34  ;;  %v2891_v34 = vunpack.c.l.bf16 %v3244_v59 }
 0x102   :  { %5176 = vst [vmem:[#allocation20_spill] sm:$0xff] %v3738_v60 }
 0x103   :  { %5177 = vst [vmem:[#allocation21_spill] sm:$0xff] %v3740_v61 }
 0x105   :  { %834 = vadd.xlane.f32.xlu2 %v833_v62  ;;  %831 = vadd.xlane.f32.xlu1 %v830_v63  ;;  %v836_v62 = vsel %vm538_vm0, %v2880_v58, 0.0  ;;  %v2888_v63 = vunpack.c.h.bf16 %v3243_v3 }
 0x106   :  { %828 = vadd.xlane.f32.xlu0 %v827_v24 }
 0x107   :  { %v848_v58 = vsel %vm538_vm0, %v2888_v63, 0.0 }
 0x108   :  { %v3748_v25 = vpop.xlane.xlu2 %708  ;;  %v3750_v60 = vpop.xlane.xlu1 %705 }
 0x109   :  { %5178 = vst [vmem:[#allocation22_spill] sm:$0xff] %v3748_v25  ;;  %v3752_v61 = vpop.xlane.xlu0 %702 }
 0x10a   :  { %5179 = vst [vmem:[#allocation23_spill] sm:$0xff] %v3750_v60  ;;  %v851_v60 = vsel %vm538_vm0, %v2891_v34, 0.0 }
 0x10b   :  { %5180 = vst [vmem:[#allocation24_spill] sm:$0xff] %v3752_v61  ;;  %v3245_v61 = vld [vmem:[%s5149_s0 + $0x1a8] sm:$0xff]  }
 0x10d   :  { %843 = vadd.xlane.f32.xlu2 %v842_v38  ;;  %840 = vadd.xlane.f32.xlu1 %v839_v45  ;;  %v845_v38 = vsel %vm538_vm0, %v2887_v29, 0.0  ;;  %v2896_v45 = vunpack.c.h.bf16 %v3245_v61  ;;  %v3247_v29 = vld [vmem:[%s5149_s0 + $0x1b8] sm:$0xff]  }
 0x10e   :  { %837 = vadd.xlane.f32.xlu0 %v836_v62  ;;  %v2895_v62 = vunpack.c.l.bf16 %v3245_v61  ;;  %v3246_v61 = vld [vmem:[%s5149_s0 + $0x1b0] sm:$0xff]   ;;  %v2904_v16 = vunpack.c.h.bf16 %v3247_v29 }
 0x10f   :  { %v860_v34 = vsel %vm538_vm0, %v2896_v45, 0.0  ;;  %v2899_v45 = vunpack.c.l.bf16 %v3246_v61 }
 0x110   :  { %v3763_v24 = vpop.xlane.xlu2 %717  ;;  %v3765_v25 = vpop.xlane.xlu1 %714  ;;  %v857_v63 = vsel %vm538_vm0, %v2895_v62, 0.0 }
 0x111   :  { %5181 = vst [vmem:[#allocation25_spill] sm:$0xff] %v3763_v24  ;;  %v3767_v30 = vpop.xlane.xlu0 %711  ;;  %v2892_v24 = vunpack.c.h.bf16 %v3244_v59  ;;  %v2903_v59 = vunpack.c.l.bf16 %v3247_v29 }
 0x112   :  { %5182 = vst [vmem:[#allocation26_spill] sm:$0xff] %v3765_v25 }
 0x113   :  { %5183 = vst [vmem:[#allocation27_spill] sm:$0xff] %v3767_v30 }
 0x115   :  { %852 = vadd.xlane.f32.xlu2 %v851_v60  ;;  %849 = vadd.xlane.f32.xlu1 %v848_v58  ;;  %v854_v60 = vsel %vm538_vm0, %v2892_v24, 0.0  ;;  %v2900_v58 = vunpack.c.h.bf16 %v3246_v61 }
 0x116   :  { %846 = vadd.xlane.f32.xlu0 %v845_v38 }
 0x117   :  { %v866_v24 = vsel %vm538_vm0, %v2900_v58, 0.0 }
 0x118   :  { %v3775_v3 = vpop.xlane.xlu2 %726  ;;  %v3777_v25 = vpop.xlane.xlu1 %723 }
 0x119   :  { %5184 = vst [vmem:[#allocation28_spill] sm:$0xff] %v3775_v3  ;;  %v3779_v30 = vpop.xlane.xlu0 %720 }
 0x11a   :  { %5185 = vst [vmem:[#allocation29_spill] sm:$0xff] %v3777_v25  ;;  %v869_v25 = vsel %vm538_vm0, %v2903_v59, 0.0 }
 0x11b   :  { %5186 = vst [vmem:[#allocation30_spill] sm:$0xff] %v3779_v30  ;;  %v3248_v30 = vld [vmem:[%s5149_s0 + $0x1c0] sm:$0xff]  }
 0x11d   :  { %861 = vadd.xlane.f32.xlu2 %v860_v34  ;;  %858 = vadd.xlane.f32.xlu1 %v857_v63  ;;  %v863_v34 = vsel %vm538_vm0, %v2899_v45, 0.0  ;;  %v2908_v63 = vunpack.c.h.bf16 %v3248_v30  ;;  %v3250_v45 = vld [vmem:[%s5149_s0 + $0x1d0] sm:$0xff]  }
 0x11e   :  { %855 = vadd.xlane.f32.xlu0 %v854_v60  ;;  %v2907_v60 = vunpack.c.l.bf16 %v3248_v30  ;;  %v3249_v30 = vld [vmem:[%s5149_s0 + $0x1c8] sm:$0xff]   ;;  %v2915_v29 = vunpack.c.l.bf16 %v3250_v45 }
 0x11f   :  { %v878_v59 = vsel %vm538_vm0, %v2908_v63, 0.0  ;;  %v2911_v63 = vunpack.c.l.bf16 %v3249_v30 }
 0x120   :  { %v3790_v38 = vpop.xlane.xlu2 %735  ;;  %v3792_v3 = vpop.xlane.xlu1 %732  ;;  %v875_v58 = vsel %vm538_vm0, %v2907_v60, 0.0  ;;  %v887_v13 = vsel %vm538_vm0, %v2915_v29, 0.0 }
 0x121   :  { %5187 = vst [vmem:[#allocation31_spill] sm:$0xff] %v3790_v38  ;;  %v3794_v62 = vpop.xlane.xlu0 %729 }
 0x122   :  { %5188 = vst [vmem:[#allocation32_spill] sm:$0xff] %v3792_v3 }
 0x123   :  { %5189 = vst [vmem:[#allocation33_spill] sm:$0xff] %v3794_v62 }
 0x125   :  { %870 = vadd.xlane.f32.xlu2 %v869_v25  ;;  %867 = vadd.xlane.f32.xlu1 %v866_v24  ;;  %v872_v25 = vsel %vm538_vm0, %v2904_v16, 0.0  ;;  %v2912_v24 = vunpack.c.h.bf16 %v3249_v30 }
 0x126   :  { %864 = vadd.xlane.f32.xlu0 %v863_v34 }
 0x127   :  { %v884_v16 = vsel %vm538_vm0, %v2912_v24, 0.0 }
 0x128   :  { %v3802_v61 = vpop.xlane.xlu2 %744  ;;  %v3804_v17 = vpop.xlane.xlu1 %741 }
 0x129   :  { %5190 = vst [vmem:[#allocation34_spill] sm:$0xff] %v3802_v61  ;;  %v3806_v62 = vpop.xlane.xlu0 %738  ;;  %v3251_v61 = vld [vmem:[%s5149_s0 + $0x1d8] sm:$0xff]  }
 0x12a   :  { %5191 = vst [vmem:[#allocation35_spill] sm:$0xff] %v3804_v17 }
 0x12b   :  { %5192 = vst [vmem:[#allocation36_spill] sm:$0xff] %v3806_v62 }
 0x12d   :  { %879 = vadd.xlane.f32.xlu2 %v878_v59  ;;  %876 = vadd.xlane.f32.xlu1 %v875_v58  ;;  %v881_v59 = vsel %vm538_vm0, %v2911_v63, 0.0  ;;  %v2920_v58 = vunpack.c.h.bf16 %v3251_v61  ;;  %v3253_v63 = vld [vmem:[%s5149_s0 + $0x1e8] sm:$0xff]  }
 0x12e   :  { %873 = vadd.xlane.f32.xlu0 %v872_v25  ;;  %v2919_v25 = vunpack.c.l.bf16 %v3251_v61  ;;  %v3252_v61 = vld [vmem:[%s5149_s0 + $0x1e0] sm:$0xff]  }
 0x12f   :  { %v896_v29 = vsel %vm538_vm0, %v2920_v58, 0.0  ;;  %v2923_v58 = vunpack.c.l.bf16 %v3252_v61 }
 0x130   :  { %v3817_v34 = vpop.xlane.xlu2 %753  ;;  %v3819_v41 = vpop.xlane.xlu1 %750  ;;  %v893_v24 = vsel %vm538_vm0, %v2919_v25, 0.0 }
 0x131   :  { %5193 = vst [vmem:[#allocation37_spill] sm:$0xff] %v3817_v34  ;;  %v3821_v60 = vpop.xlane.xlu0 %747  ;;  %v2916_v34 = vunpack.c.h.bf16 %v3250_v45  ;;  %v2927_v45 = vunpack.c.l.bf16 %v3253_v63 }
 0x132   :  { %5194 = vst [vmem:[#allocation38_spill] sm:$0xff] %v3819_v41 }
 0x133   :  { %5195 = vst [vmem:[#allocation39_spill] sm:$0xff] %v3821_v60 }
 0x135   :  { %888 = vadd.xlane.f32.xlu2 %v887_v13  ;;  %885 = vadd.xlane.f32.xlu1 %v884_v16  ;;  %v890_v13 = vsel %vm538_vm0, %v2916_v34, 0.0  ;;  %v2924_v16 = vunpack.c.h.bf16 %v3252_v61 }
 0x136   :  { %882 = vadd.xlane.f32.xlu0 %v881_v59 }
 0x137   :  { %v902_v34 = vsel %vm538_vm0, %v2924_v16, 0.0 }
 0x138   :  { %v3829_v30 = vpop.xlane.xlu2 %762  ;;  %v3831_v41 = vpop.xlane.xlu1 %759 }
 0x139   :  { %5196 = vst [vmem:[#allocation40_spill] sm:$0xff] %v3829_v30  ;;  %v3833_v60 = vpop.xlane.xlu0 %756 }
 0x13a   :  { %5197 = vst [vmem:[#allocation41_spill] sm:$0xff] %v3831_v41  ;;  %v905_v41 = vsel %vm538_vm0, %v2927_v45, 0.0 }
 0x13b   :  { %5198 = vst [vmem:[#allocation42_spill] sm:$0xff] %v3833_v60  ;;  %v3254_v60 = vld [vmem:[%s5149_s0 + $0x1f0] sm:$0xff]  }
 0x13d   :  { %897 = vadd.xlane.f32.xlu2 %v896_v29  ;;  %894 = vadd.xlane.f32.xlu1 %v893_v24  ;;  %v899_v29 = vsel %vm538_vm0, %v2923_v58, 0.0  ;;  %v2932_v24 = vunpack.c.h.bf16 %v3254_v60  ;;  %v3256_v58 = vld [vmem:[%s5149_s0 + $0x200] sm:$0xff]  }
 0x13e   :  { %891 = vadd.xlane.f32.xlu0 %v890_v13  ;;  %v2931_v13 = vunpack.c.l.bf16 %v3254_v60  ;;  %v3255_v60 = vld [vmem:[%s5149_s0 + $0x1f8] sm:$0xff]  }
 0x13f   :  { %v914_v45 = vsel %vm538_vm0, %v2932_v24, 0.0  ;;  %v2935_v24 = vunpack.c.l.bf16 %v3255_v60 }
 0x140   :  { %v3844_v59 = vpop.xlane.xlu2 %771  ;;  %v3846_v30 = vpop.xlane.xlu1 %768  ;;  %v911_v16 = vsel %vm538_vm0, %v2931_v13, 0.0 }
 0x141   :  { %5199 = vst [vmem:[#allocation43_spill] sm:$0xff] %v3844_v59  ;;  %v3848_v25 = vpop.xlane.xlu0 %765  ;;  %v2928_v59 = vunpack.c.h.bf16 %v3253_v63  ;;  %v2939_v63 = vunpack.c.l.bf16 %v3256_v58 }
 0x142   :  { %5200 = vst [vmem:[#allocation44_spill] sm:$0xff] %v3846_v30 }
 0x143   :  { %5201 = vst [vmem:[#allocation45_spill] sm:$0xff] %v3848_v25 }
 0x145   :  { %906 = vadd.xlane.f32.xlu2 %v905_v41  ;;  %903 = vadd.xlane.f32.xlu1 %v902_v34  ;;  %v908_v41 = vsel %vm538_vm0, %v2928_v59, 0.0  ;;  %v2936_v34 = vunpack.c.h.bf16 %v3255_v60 }
 0x146   :  { %900 = vadd.xlane.f32.xlu0 %v899_v29 }
 0x147   :  { %v920_v59 = vsel %vm538_vm0, %v2936_v34, 0.0 }
 0x148   :  { %v3856_v61 = vpop.xlane.xlu2 %780  ;;  %v3858_v30 = vpop.xlane.xlu1 %777 }
 0x149   :  { %5202 = vst [vmem:[#allocation46_spill] sm:$0xff] %v3856_v61  ;;  %v3860_v25 = vpop.xlane.xlu0 %774 }
 0x14a   :  { %5203 = vst [vmem:[#allocation47_spill] sm:$0xff] %v3858_v30  ;;  %v923_v30 = vsel %vm538_vm0, %v2939_v63, 0.0 }
 0x14b   :  { %5204 = vst [vmem:[#allocation48_spill] sm:$0xff] %v3860_v25  ;;  %v3257_v25 = vld [vmem:[%s5149_s0 + $0x208] sm:$0xff]  }
 0x14d   :  { %915 = vadd.xlane.f32.xlu2 %v914_v45  ;;  %912 = vadd.xlane.f32.xlu1 %v911_v16  ;;  %v917_v45 = vsel %vm538_vm0, %v2935_v24, 0.0  ;;  %v2944_v16 = vunpack.c.h.bf16 %v3257_v25  ;;  %v3259_v24 = vld [vmem:[%s5149_s0 + $0x218] sm:$0xff]  }
 0x14e   :  { %909 = vadd.xlane.f32.xlu0 %v908_v41  ;;  %v2943_v41 = vunpack.c.l.bf16 %v3257_v25  ;;  %v3258_v25 = vld [vmem:[%s5149_s0 + $0x210] sm:$0xff]  }
 0x14f   :  { %v932_v63 = vsel %vm538_vm0, %v2944_v16, 0.0  ;;  %v2947_v16 = vunpack.c.l.bf16 %v3258_v25 }
 0x150   :  { %v3871_v29 = vpop.xlane.xlu2 %789  ;;  %v3873_v61 = vpop.xlane.xlu1 %786  ;;  %v929_v34 = vsel %vm538_vm0, %v2943_v41, 0.0 }
 0x151   :  { %5205 = vst [vmem:[#allocation49_spill] sm:$0xff] %v3871_v29  ;;  %v3875_v13 = vpop.xlane.xlu0 %783  ;;  %v2940_v29 = vunpack.c.h.bf16 %v3256_v58  ;;  %v2951_v58 = vunpack.c.l.bf16 %v3259_v24 }
 0x152   :  { %5206 = vst [vmem:[#allocation50_spill] sm:$0xff] %v3873_v61 }
 0x153   :  { %5207 = vst [vmem:[#allocation51_spill] sm:$0xff] %v3875_v13 }
 0x155   :  { %924 = vadd.xlane.f32.xlu2 %v923_v30  ;;  %921 = vadd.xlane.f32.xlu1 %v920_v59  ;;  %v926_v30 = vsel %vm538_vm0, %v2940_v29, 0.0  ;;  %v2948_v59 = vunpack.c.h.bf16 %v3258_v25  ;;  %v1308_v25 = vpack.c.bf16 %v3524_v2, %v3509_v55  ;;  %v3262_v2 = vld [vmem:[%s5149_s0 + $0x230] sm:$0xff]  }
 0x156   :  { %918 = vadd.xlane.f32.xlu0 %v917_v45 }
 0x157   :  { %v938_v29 = vsel %vm538_vm0, %v2948_v59, 0.0  ;;  %v1597_v40 = vunpack.c.h.b16 %v1308_v25 }
 0x158   :  { %v3883_v60 = vpop.xlane.xlu2 %798  ;;  %v3885_v61 = vpop.xlane.xlu1 %795 }
 0x159   :  { %5208 = vst [vmem:[#allocation52_spill] sm:$0xff] %v3883_v60  ;;  %v3887_v13 = vpop.xlane.xlu0 %792 }
 0x15a   :  { %5209 = vst [vmem:[#allocation53_spill] sm:$0xff] %v3885_v61  ;;  %v941_v61 = vsel %vm538_vm0, %v2951_v58, 0.0 }
 0x15b   :  { %5210 = vst [vmem:[#allocation54_spill] sm:$0xff] %v3887_v13  ;;  %v1852_v13 = vlaneseq }
 0x15d   :  { %933 = vadd.xlane.f32.xlu2 %v932_v63  ;;  %930 = vadd.xlane.f32.xlu1 %v929_v34  ;;  %v3260_v63 = vld [vmem:[%s5149_s0 + $0x220] sm:$0xff]   ;;  %v935_v34 = vsel %vm538_vm0, %v2947_v16, 0.0  ;;  %v1309_v16 = vpack.c.bf16 %v3522_v1, %v3507_v54 }
 0x15e   :  { %927 = vadd.xlane.f32.xlu0 %v926_v30  ;;  %v2956_v30 = vunpack.c.h.bf16 %v3260_v63 }
 0x15f   :  { %v1598_v1 = vunpack.c.l.b16 %v1309_v16 }
 0x160   :  { %v3898_v45 = vpop.xlane.xlu2 %807  ;;  %v3900_v60 = vpop.xlane.xlu1 %804 }
 0x161   :  { %5211 = vst [vmem:[#allocation55_spill] sm:$0xff] %v3898_v45  ;;  %v3902_v41 = vpop.xlane.xlu0 %801  ;;  %v3910_v45 = vand.u32 127, %v1852_v13 }
 0x162   :  { %5212 = vst [vmem:[#allocation56_spill] sm:$0xff] %v3900_v60  ;;  %v2955_v60 = vunpack.c.l.bf16 %v3260_v63  ;;  %v3261_v63 = vld [vmem:[%s5149_s0 + $0x228] sm:$0xff]  }
 0x163   :  { %5213 = vst [vmem:[#allocation57_spill] sm:$0xff] %v3902_v41  ;;  %v2952_v41 = vunpack.c.h.bf16 %v3259_v24  ;;  %v3924_v13 = vadd.s32 4294967288, %v3910_v45  ;;  %v3935_v54 = vadd.s32 4294967280, %v3910_v45  ;;  %v3998_v50 = vadd.s32 4294967224, %v3910_v45 }
 0x164   :  { %v947_v55 = vsel %vm538_vm0, %v2955_v60, 0.0 }
 0x165   :  { %942 = vadd.xlane.f32.xlu2 %v941_v61  ;;  %939 = vadd.xlane.f32.xlu1 %v938_v29  ;;  %v950_v61 = vsel %vm538_vm0, %v2956_v30, 0.0  ;;  %v1596_v29 = vunpack.c.l.b16 %v1308_v25  ;;  %v944_v24 = vsel %vm538_vm0, %v2952_v41, 0.0  ;;  %v1856_v60 = vperm.slane %v1597_v40, %v3924_v13 }
 0x166   :  { %936 = vadd.xlane.f32.xlu0 %v935_v34  ;;  %v2963_v34 = vunpack.c.l.bf16 %v3262_v2  ;;  %v2960_v25 = vunpack.c.h.bf16 %v3261_v63  ;;  %v2959_v41 = vunpack.c.l.bf16 %v3261_v63 }
 0x167   :  { %v1854_v30 = vperm.slane %v1596_v29, %v3910_v45  ;;  %v1860_v29 = vperm.slane %v1598_v1, %v3935_v54 }
 0x168   :  { %v3914_v58 = vpop.xlane.xlu2 %816  ;;  %v3916_v59 = vpop.xlane.xlu1 %813  ;;  %v959_v40 = vsel %vm538_vm0, %v2963_v34, 0.0  ;;  %v956_v63 = vsel %vm538_vm0, %v2960_v25, 0.0  ;;  %v3966_v25 = vadd.s32 4294967248, %v3910_v45 }
 0x169   :  { %5214 = vst [vmem:[#allocation58_spill] sm:$0xff] %v3914_v58  ;;  %v3918_v39 = vpop.xlane.xlu0 %810  ;;  %v1858_v17 = vsel %vm5155_vm1, %v1856_v60, %v1854_v30 }
 0x16a   :  { %5215 = vst [vmem:[#allocation59_spill] sm:$0xff] %v3916_v59 }
 0x16b   :  { %5216 = vst [vmem:[#allocation60_spill] sm:$0xff] %v3918_v39 }
 0x16d   :  { %951 = vadd.xlane.f32.xlu2 %v950_v61  ;;  %948 = vadd.xlane.f32.xlu1 %v947_v55  ;;  %v1310_v61 = vpack.c.bf16 %v3520_v0, %v3505_v53  ;;  %v3948_v55 = vadd.s32 4294967272, %v3910_v45  ;;  %v1311_v53 = vpack.c.bf16 %v3534_v11, %v3536_v12  ;;  %v953_v0 = vsel %vm538_vm0, %v2959_v41, 0.0 }
 0x16e   :  { %945 = vadd.xlane.f32.xlu0 %v944_v24  ;;  %v1599_v24 = vunpack.c.h.b16 %v1309_v16  ;;  %v1862_v16 = vsel %vm1861_vm2, %v1860_v29, %v1858_v17  ;;  %v1312_v12 = vpack.c.bf16 %v3551_v23, %v3532_v10  ;;  %v3980_v23 = vadd.s32 4294967232, %v3910_v45 }
 0x16f   :  { %v1600_v1 = vunpack.c.l.b16 %v1310_v61  ;;  %v1602_v11 = vunpack.c.l.b16 %v1311_v53  ;;  %v1601_v62 = vunpack.c.h.b16 %v1310_v61  ;;  %v1603_v10 = vunpack.c.h.b16 %v1311_v53  ;;  %v3986_v61 = vld [vmem:[%s5149_s0 + $0x248] sm:$0xff]   ;;  %v3264_v53 = vld [vmem:[%s5149_s0 + $0x240] sm:$0xff]  }
 0x170   :  { %v3939_v58 = vpop.xlane.xlu2 %825  ;;  %v3941_v59 = vpop.xlane.xlu1 %822  ;;  %v1864_v30 = vperm.slane %v1599_v24, %v3948_v55  ;;  %v2972_v38 = vunpack.c.h.bf16 %v3264_v53 }
 0x171   :  { %5217 = vst [vmem:[#allocation61_spill] sm:$0xff] %v3939_v58  ;;  %v3943_v39 = vpop.xlane.xlu0 %819  ;;  %v3263_v58 = vld [vmem:[%s5149_s0 + $0x238] sm:$0xff]  }
 0x172   :  { %5218 = vst [vmem:[#allocation62_spill] sm:$0xff] %v3941_v59  ;;  %v3961_v59 = vadd.s32 4294967264, %v3910_v45  ;;  %v2968_v34 = vunpack.c.h.bf16 %v3263_v58  ;;  %v2967_v60 = vunpack.c.l.bf16 %v3263_v58  ;;  %v1866_v17 = vsel %vm1865_vm3, %v1864_v30, %v1862_v16 }
 0x173   :  { %5219 = vst [vmem:[#allocation63_spill] sm:$0xff] %v3943_v39  ;;  %v2964_v39 = vunpack.c.h.bf16 %v3262_v2  ;;  %v1876_v16 = vperm.slane %v1602_v11, %v3966_v25  ;;  %v1604_v30 = vunpack.c.l.b16 %v1312_v12  ;;  %v2975_v11 = vunpack.c.l.bf16 %v3986_v61 }
 0x174   :  { %v1868_v24 = vperm.slane %v1600_v1, %v3961_v59  ;;  %v965_v2 = vsel %vm538_vm0, %v2967_v60, 0.0  ;;  %v1313_v60 = vpack.c.bf16 %v3547_v21, %v3549_v22  ;;  %v2971_v21 = vunpack.c.l.bf16 %v3264_v53 }
 0x175   :  { %960 = vadd.xlane.f32.xlu2 %v959_v40  ;;  %957 = vadd.xlane.f32.xlu1 %v956_v63  ;;  %v3971_v40 = vadd.s32 4294967256, %v3910_v45  ;;  %v968_v63 = vsel %vm538_vm0, %v2968_v34, 0.0  ;;  %v962_v34 = vsel %vm538_vm0, %v2964_v39, 0.0  ;;  %v4006_v22 = vadd.s32 4294967216, %v3910_v45 }
 0x176   :  { %954 = vadd.xlane.f32.xlu0 %v953_v0  ;;  %v3977_v0 = vadd.s32 4294967240, %v3910_v45  ;;  %v1870_v1 = vsel %vm1869_vm4, %v1868_v24, %v1866_v17  ;;  %v1605_v24 = vunpack.c.h.b16 %v1312_v12  ;;  %v971_v46 = vsel %vm538_vm0, %v2971_v21, 0.0 }
 0x177   :  { %v1872_v49 = vperm.slane %v1601_v62, %v3971_v40 }
 0x178   :  { %v835_v41 = vpop.xlane.xlu2 %834  ;;  %v832_v29 = vpop.xlane.xlu1 %831  ;;  %v1880_v17 = vperm.slane %v1603_v10, %v3977_v0  ;;  %v977_v10 = vsel %vm538_vm0, %v2975_v11, 0.0  ;;  %v4021_v11 = vadd.s32 4294967200, %v3910_v45 }
 0x179   :  { %v829_v58 = vpop.xlane.xlu0 %828  ;;  %v1874_v39 = vsel %vm1873_vm5, %v1872_v49, %v1870_v1  ;;  %v1606_v1 = vunpack.c.l.b16 %v1313_v60 }
 0x17a   :  { %v1878_v62 = vsel %vm1877_vm6, %v1876_v16, %v1874_v39  ;;  %v1356_v3 = vpack.c.bf16 %v832_v29, %v829_v58  ;;  %v1888_v29 = vperm.slane %v1605_v24, %v3998_v50  ;;  %v1607_v24 = vunpack.c.h.b16 %v1313_v60 }
 0x17b   :  { %v1882_v16 = vsel %vm5160_vm7, %v1880_v17, %v1878_v62  ;;  %v4025_v17 = vpack.c.bf16 %v3561_v32, %v3563_v33  ;;  %v1892_v62 = vperm.slane %v1606_v1, %v4006_v22  ;;  %v4036_v32 = vpack.c.bf16 %v3588_v56, %v3590_v57 }
 0x17c   :  { %v1692_v39 = vunpack.c.l.b16 %v1356_v3  ;;  %v1693_v15 = vunpack.c.h.b16 %v1356_v3  ;;  %v4031_v3 = vadd.s32 4294967192, %v3910_v45 }
 0x17d   :  { %969 = vadd.xlane.f32.xlu2 %v968_v63  ;;  %966 = vadd.xlane.f32.xlu1 %v965_v2  ;;  %v1884_v63 = vperm.slane %v1604_v30, %v3980_v23  ;;  %v4009_v2 = vadd.s32 4294967208, %v3910_v45  ;;  %v974_v30 = vsel %vm538_vm0, %v2972_v38, 0.0  ;;  %v1316_v38 = vpack.c.bf16 %v3574_v42, %v3576_v43 }
 0x17e   :  { %963 = vadd.xlane.f32.xlu0 %v962_v34  ;;  %v3266_v34 = vld [vmem:[%s5149_s0 + $0x250] sm:$0xff]   ;;  %v2070_v43 = vperm.slane %v1692_v39, %v3910_v45  ;;  %v2071_v60 = vperm.slane %v1693_v15, %v3924_v13  ;;  %v4054_v39 = vld [vmem:[%s5149_s0 + $0x260] sm:$0xff]  }
 0x17f   :  { %v1886_v53 = vsel %vm1885_vm8, %v1884_v63, %v1882_v16  ;;  %v2980_v63 = vunpack.c.h.bf16 %v3266_v34  ;;  %v2979_v42 = vunpack.c.l.bf16 %v3266_v34  ;;  %v1608_v16 = vunpack.c.l.b16 %v4025_v17 }
 0x180   :  { %v844_v14 = vpop.xlane.xlu2 %843  ;;  %v841_v49 = vpop.xlane.xlu1 %840  ;;  %v1890_v21 = vsel %vm1889_vm9, %v1888_v29, %v1886_v53  ;;  %v1613_v47 = vunpack.c.h.b16 %v1316_v38  ;;  %v1896_v56 = vperm.slane %v1607_v24, %v4009_v2 }
 0x181   :  { %v838_v12 = vpop.xlane.xlu0 %837  ;;  %v1358_v33 = vpack.c.bf16 %v844_v14, %v841_v49  ;;  %v1894_v57 = vsel %vm5161_vm10, %v1892_v62, %v1890_v21  ;;  %v986_v15 = vsel %vm538_vm0, %v2980_v63, 0.0  ;;  %v1609_v49 = vunpack.c.h.b16 %v4025_v17  ;;  %v3267_v17 = vld [vmem:[%s5149_s0 + $0x258] sm:$0xff]  }
 0x182   :  { %v1357_v58 = vpack.c.bf16 %v838_v12, %v835_v41  ;;  %v983_v34 = vsel %vm538_vm0, %v2979_v42, 0.0  ;;  %v1900_v63 = vperm.slane %v1608_v16, %v4021_v11  ;;  %v1916_v42 = vperm.slane %v1613_v47, %v3924_v13 }
 0x183   :  { %v2984_v47 = vunpack.c.h.bf16 %v3267_v17 }
 0x184   :  { %v1694_v41 = vunpack.c.l.b16 %v1357_v58  ;;  %v1695_v1 = vunpack.c.h.b16 %v1357_v58 }
 0x185   :  { %978 = vadd.xlane.f32.xlu2 %v977_v10  ;;  %975 = vadd.xlane.f32.xlu1 %v974_v30  ;;  %v2976_v10 = vunpack.c.h.bf16 %v3986_v61  ;;  %v1612_v30 = vunpack.c.l.b16 %v1316_v38  ;;  %v1696_v61 = vunpack.c.l.b16 %v1358_v33  ;;  %v1614_v38 = vunpack.c.l.b16 %v4036_v32 }
 0x186   :  { %972 = vadd.xlane.f32.xlu0 %v971_v46  ;;  %v2073_v29 = vperm.slane %v1694_v41, %v3935_v54  ;;  %v4046_v46 = vadd.s32 4294967184, %v3910_v45  ;;  %v2072_v41 = vsel %vm5155_vm1, %v2071_v60, %v2070_v43  ;;  %v2075_v24 = vperm.slane %v1695_v1, %v3948_v55 }
 0x187   :  { %v980_v62 = vsel %vm538_vm0, %v2976_v10, 0.0  ;;  %v1915_v21 = vperm.slane %v1612_v30, %v3910_v45  ;;  %v1898_v43 = vsel %vm5157_vm11, %v1896_v56, %v1894_v57  ;;  %v4070_v60 = vpack.c.bf16 %v3578_v44, %v3559_v31 }
 0x188   :  { %v853_v12 = vpop.xlane.xlu2 %852  ;;  %v850_v53 = vpop.xlane.xlu1 %849  ;;  %v1697_v1 = vunpack.c.h.b16 %v1358_v33  ;;  %v2987_v10 = vunpack.c.l.bf16 %v4054_v39  ;;  %v2077_v16 = vperm.slane %v1696_v61, %v3961_v59  ;;  %v1318_v56 = vpack.c.bf16 %v3605_v7, %v3586_v52 }
 0x189   :  { %v847_v14 = vpop.xlane.xlu0 %846  ;;  %v2983_v44 = vunpack.c.l.bf16 %v3267_v17  ;;  %v1902_v33 = vsel %vm1901_vm12, %v1900_v63, %v1898_v43  ;;  %v4083_v61 = vadd.s32 4294967176, %v3910_v45  ;;  %v992_v63 = vsel %vm538_vm0, %v2984_v47, 0.0 }
 0x18a   :  { %v1359_v58 = vpack.c.bf16 %v850_v53, %v847_v14  ;;  %v2074_v53 = vsel %vm1861_vm2, %v2073_v29, %v2072_v41  ;;  %v1615_v14 = vunpack.c.h.b16 %v4036_v32  ;;  %v1918_v29 = vperm.slane %v1614_v38, %v3935_v54 }
 0x18b   :  { %v2076_v57 = vsel %vm1865_vm3, %v2075_v24, %v2074_v53  ;;  %v1917_v32 = vsel %vm5155_vm1, %v1916_v42, %v1915_v21  ;;  %v1610_v38 = vunpack.c.l.b16 %v4070_v60  ;;  %v2079_v41 = vperm.slane %v1697_v1, %v3971_v40  ;;  %v3269_v21 = vld [vmem:[%s5149_s0 + $0x268] sm:$0xff]  }
 0x18c   :  { %v1698_v30 = vunpack.c.l.b16 %v1359_v58  ;;  %v1699_v52 = vunpack.c.h.b16 %v1359_v58  ;;  %v995_v24 = vsel %vm538_vm0, %v2987_v10, 0.0  ;;  %v1919_v42 = vsel %vm1861_vm2, %v1918_v29, %v1917_v32 }
 0x18d   :  { %987 = vadd.xlane.f32.xlu2 %v986_v15  ;;  %984 = vadd.xlane.f32.xlu1 %v983_v34  ;;  %v1904_v15 = vperm.slane %v1609_v49, %v4031_v3  ;;  %v1920_v53 = vperm.slane %v1615_v14, %v3948_v55  ;;  %v1616_v43 = vunpack.c.l.b16 %v1318_v56  ;;  %v989_v58 = vsel %vm538_vm0, %v2983_v44, 0.0 }
 0x18e   :  { %981 = vadd.xlane.f32.xlu0 %v980_v62  ;;  %v2078_v62 = vsel %vm1869_vm4, %v2077_v16, %v2076_v57  ;;  %v2081_v17 = vperm.slane %v1698_v30, %v3966_v25  ;;  %v1319_v1 = vpack.c.bf16 %v3601_v5, %v3603_v6  ;;  %v1617_v10 = vunpack.c.h.b16 %v1318_v56 }
 0x18f   :  { %v2083_v47 = vperm.slane %v1699_v52, %v3977_v0  ;;  %v2991_v44 = vunpack.c.l.bf16 %v3269_v21  ;;  %v1906_v5 = vsel %vm5159_vm13, %v1904_v15, %v1902_v33  ;;  %v1611_v6 = vunpack.c.h.b16 %v4070_v60 }
 0x190   :  { %v862_v31 = vpop.xlane.xlu2 %861  ;;  %v859_v34 = vpop.xlane.xlu1 %858  ;;  %v1922_v56 = vperm.slane %v1616_v43, %v3961_v59  ;;  %v2988_v32 = vunpack.c.h.bf16 %v4054_v39  ;;  %v1618_v52 = vunpack.c.l.b16 %v1319_v1 }
 0x191   :  { %v856_v7 = vpop.xlane.xlu0 %855  ;;  %v1361_v16 = vpack.c.bf16 %v862_v31, %v859_v34  ;;  %v1908_v34 = vperm.slane %v1610_v38, %v4046_v46 }
 0x192   :  { %v1360_v49 = vpack.c.bf16 %v856_v7, %v853_v12  ;;  %v2080_v12 = vsel %vm1873_vm5, %v2079_v41, %v2078_v62  ;;  %v2992_v7 = vunpack.c.h.bf16 %v3269_v21  ;;  %v1921_v41 = vsel %vm1865_vm3, %v1920_v53, %v1919_v42  ;;  %v4120_v42 = vld [vmem:[%s5149_s0 + $0x278] sm:$0xff]  }
 0x193   :  { %v2082_v14 = vsel %vm1877_vm6, %v2081_v17, %v2080_v12  ;;  %v1924_v17 = vperm.slane %v1617_v10, %v3971_v40  ;;  %v1001_v21 = vsel %vm538_vm0, %v2991_v44, 0.0  ;;  %v1912_v53 = vperm.slane %v1611_v6, %v4083_v61 }
 0x194   :  { %v1700_v30 = vunpack.c.l.b16 %v1360_v49  ;;  %v1701_v57 = vunpack.c.h.b16 %v1360_v49  ;;  %v2084_v49 = vsel %vm5160_vm7, %v2083_v47, %v2082_v14  ;;  %v1004_v60 = vsel %vm538_vm0, %v2992_v7, 0.0 }
 0x195   :  { %996 = vadd.xlane.f32.xlu2 %v995_v24  ;;  %993 = vadd.xlane.f32.xlu1 %v992_v63  ;;  %v1702_v24 = vunpack.c.l.b16 %v1361_v16  ;;  %v1324_v63 = vpack.c.bf16 %v3659_v9, %v3640_v48  ;;  %v1923_v43 = vsel %vm1869_vm4, %v1922_v56, %v1921_v41  ;;  %v998_v10 = vsel %vm538_vm0, %v2988_v32, 0.0  ;;  %v3270_v48 = vld [vmem:[%s5149_s0 + $0x270] sm:$0xff]  }
 0x196   :  { %v2085_v29 = vperm.slane %v1700_v30, %v3980_v23  ;;  %990 = vadd.xlane.f32.xlu0 %v989_v58  ;;  %v2087_v33 = vperm.slane %v1701_v57, %v3998_v50  ;;  %v1703_v58 = vunpack.c.h.b16 %v1361_v16  ;;  %v1910_v9 = vsel %vm1909_vm14, %v1908_v34, %v1906_v5 }
 0x197   :  { %v1619_v30 = vunpack.c.h.b16 %v1319_v1  ;;  %v2089_v12 = vperm.slane %v1702_v24, %v4006_v22  ;;  %v1926_v57 = vperm.slane %v1618_v52, %v3966_v25  ;;  %v4133_v7 = vpack.c.bf16 %v3615_v19, %v3617_v20 }
 0x198   :  { %v871_v31 = vpop.xlane.xlu2 %870  ;;  %v868_v62 = vpop.xlane.xlu1 %867  ;;  %v2086_v39 = vsel %vm1885_vm8, %v2085_v29, %v2084_v49  ;;  %v2999_v14 = vunpack.c.l.bf16 %v4120_v42  ;;  %v1925_v29 = vsel %vm1873_vm5, %v1924_v17, %v1923_v43  ;;  %v4140_v1 = vpack.c.bf16 %v3655_v4, %v3657_v8 }
 0x199   :  { %v865_v15 = vpop.xlane.xlu0 %864  ;;  %v2088_v16 = vsel %vm1889_vm9, %v2087_v33, %v2086_v39  ;;  %v1628_v44 = vunpack.c.l.b16 %v1324_v63  ;;  %v2996_v5 = vunpack.c.h.bf16 %v3270_v48  ;;  %v1629_v6 = vunpack.c.h.b16 %v1324_v63 }
 0x19a   :  { %v1362_v38 = vpack.c.bf16 %v868_v62, %v865_v15  ;;  %v2091_v56 = vperm.slane %v1703_v58, %v4009_v2  ;;  %v2995_v20 = vunpack.c.l.bf16 %v3270_v48  ;;  %v4144_v34 = vsel %vm1913_vm15, %v1912_v53, %v1910_v9 }
 0x19b   :  { %v1928_v41 = vperm.slane %v1619_v30, %v3977_v0  ;;  %v2090_v52 = vsel %vm5161_vm10, %v2089_v12, %v2088_v16  ;;  %v1927_v8 = vsel %vm1877_vm6, %v1926_v57, %v1925_v29  ;;  %v1620_v62 = vunpack.c.l.b16 %v4133_v7 }
 0x19c   :  { %v1704_v47 = vunpack.c.l.b16 %v1362_v38  ;;  %v1705_v32 = vunpack.c.h.b16 %v1362_v38  ;;  %v1013_v33 = vsel %vm538_vm0, %v2999_v14, 0.0  ;;  %v1630_v15 = vunpack.c.l.b16 %v4140_v1  ;;  %v3272_v38 = vld [vmem:[%s5149_s0 + $0x280] sm:$0xff]  }
 0x19d   :  { %1005 = vadd.xlane.f32.xlu2 %v1004_v60  ;;  %1002 = vadd.xlane.f32.xlu1 %v1001_v21  ;;  %v1946_v60 = vperm.slane %v1628_v44, %v3910_v45  ;;  %v1010_v39 = vsel %vm538_vm0, %v2996_v5, 0.0  ;;  %v1947_v21 = vperm.slane %v1629_v6, %v3924_v13  ;;  %v2092_v53 = vsel %vm5157_vm11, %v2091_v56, %v2090_v52 }
 0x19e   :  { %999 = vadd.xlane.f32.xlu0 %v998_v10  ;;  %v2093_v24 = vperm.slane %v1704_v47, %v4021_v11  ;;  %v2095_v43 = vperm.slane %v1705_v32, %v4031_v3  ;;  %v1007_v58 = vsel %vm538_vm0, %v2995_v20, 0.0  ;;  %v1326_v10 = vpack.c.bf16 %v3669_v27, %v3671_v28 }
 0x19f   :  { %v1621_v30 = vunpack.c.h.b16 %v4133_v7  ;;  %v3004_v57 = vunpack.c.h.bf16 %v3272_v38  ;;  %v1930_v16 = vperm.slane %v1620_v62, %v3980_v23  ;;  %v3003_v44 = vunpack.c.l.bf16 %v3272_v38 }
 0x1a0   :  { %v880_v19 = vpop.xlane.xlu2 %879  ;;  %v877_v4 = vpop.xlane.xlu1 %876  ;;  %v2094_v48 = vsel %vm1901_vm12, %v2093_v24, %v2092_v53  ;;  %v1631_v27 = vunpack.c.h.b16 %v4140_v1  ;;  %v1949_v28 = vperm.slane %v1630_v15, %v3935_v54  ;;  %v3000_v7 = vunpack.c.h.bf16 %v4120_v42 }
 0x1a1   :  { %v1364_v17 = vpack.c.bf16 %v880_v19, %v877_v4  ;;  %v874_v49 = vpop.xlane.xlu0 %873  ;;  %v2096_v5 = vsel %vm5159_vm13, %v2095_v43, %v2094_v48  ;;  %v1948_v56 = vsel %vm5155_vm1, %v1947_v21, %v1946_v60  ;;  %v1632_v32 = vunpack.c.l.b16 %v1326_v10 }
 0x1a2   :  { %v1363_v63 = vpack.c.bf16 %v874_v49, %v871_v31  ;;  %v4176_v19 = vpack.c.bf16 %v3686_v51, %v3667_v26  ;;  %v1022_v42 = vsel %vm538_vm0, %v3004_v57, 0.0  ;;  %v1932_v49 = vperm.slane %v1621_v30, %v3998_v50  ;;  %v4191_v51 = vld [vmem:[%s5149_s0 + $0x290] sm:$0xff]  }
 0x1a3   :  { %v1708_v12 = vunpack.c.l.b16 %v1364_v17  ;;  %v1709_v47 = vunpack.c.h.b16 %v1364_v17  ;;  %v1929_v17 = vsel %vm5160_vm7, %v1928_v41, %v1927_v8  ;;  %v1019_v26 = vsel %vm538_vm0, %v3003_v44, 0.0  ;;  %v3273_v41 = vld [vmem:[%s5149_s0 + $0x288] sm:$0xff]   ;;  %v5221_v44 = vld [vmem:[#allocation8_spill] sm:$0xff] }
 0x1a4   :  { %v1706_v31 = vunpack.c.l.b16 %v1363_v63  ;;  %v1707_v9 = vunpack.c.h.b16 %v1363_v63  ;;  %v1321_v15 = vpack.c.bf16 %v3632_v37, %v3613_v18  ;;  %v1951_v60 = vperm.slane %v1631_v27, %v3948_v55 }
 0x1a5   :  { %1014 = vadd.xlane.f32.xlu2 %v1013_v33  ;;  %1011 = vadd.xlane.f32.xlu1 %v1010_v39  ;;  %v2101_v24 = vperm.slane %v1708_v12, %v3910_v45  ;;  %v2102_v1 = vperm.slane %v1709_v47, %v3924_v13  ;;  %v1633_v63 = vunpack.c.h.b16 %v1326_v10  ;;  %v1016_v39 = vsel %vm538_vm0, %v3000_v7, 0.0 }
 0x1a6   :  { %v2097_v14 = vperm.slane %v1706_v31, %v4046_v46  ;;  %v2099_v29 = vperm.slane %v1707_v9, %v4083_v61  ;;  %1008 = vadd.xlane.f32.xlu0 %v1007_v58  ;;  %v1950_v8 = vsel %vm1861_vm2, %v1949_v28, %v1948_v56  ;;  %v1953_v38 = vperm.slane %v1632_v32, %v3961_v59 }
 0x1a7   :  { %v1931_v43 = vsel %vm1885_vm8, %v1930_v16, %v1929_v17  ;;  %v1634_v18 = vunpack.c.l.b16 %v4176_v19  ;;  %v2103_v37 = vsel %vm5155_vm1, %v2102_v1, %v2101_v24  ;;  %v3011_v58 = vunpack.c.l.bf16 %v4191_v51 }
 0x1a8   :  { %v889_v6 = vpop.xlane.xlu2 %888  ;;  %v2098_v20 = vsel %vm1909_vm14, %v2097_v14, %v2096_v5  ;;  %v886_v52 = vpop.xlane.xlu1 %885  ;;  %v4208_v10 = vpack.c.bf16 %v3628_v35, %v3630_v36  ;;  %v3008_v9 = vunpack.c.h.bf16 %v3273_v41  ;;  %v1622_v30 = vunpack.c.l.b16 %v1321_v15 }
 0x1a9   :  { %v4182_v4 = vsel %vm1913_vm15, %v2099_v29, %v2098_v20  ;;  %v883_v62 = vpop.xlane.xlu0 %882  ;;  %v1952_v12 = vsel %vm1865_vm3, %v1951_v60, %v1950_v8  ;;  %v1955_v47 = vperm.slane %v1633_v63, %v3971_v40  ;;  %v3007_v16 = vunpack.c.l.bf16 %v3273_v41  ;;  %v5220_v29 = vld [vmem:[#allocation9_spill] sm:$0xff] }
 0x1aa   :  { %v1365_v33 = vpack.c.bf16 %v886_v52, %v883_v62  ;;  %v1954_v14 = vsel %vm1869_vm4, %v1953_v38, %v1952_v12  ;;  %v1328_v27 = vpack.c.bf16 %v5221_v44, %v5220_v29  ;;  %v1635_v35 = vunpack.c.h.b16 %v4176_v19  ;;  %v3275_v19 = vld [vmem:[%s5149_s0 + $0x298] sm:$0xff]  }
 0x1ab   :  { %v1957_v5 = vperm.slane %v1634_v18, %v3966_v25  ;;  %v1031_v20 = vsel %vm538_vm0, %v3011_v58, 0.0  ;;  %v1933_v52 = vsel %vm1889_vm9, %v1932_v49, %v1931_v43  ;;  %v1624_v24 = vunpack.c.l.b16 %v4208_v10  ;;  %v5222_v12 = vld [vmem:[#allocation12_spill] sm:$0xff] }
 0x1ac   :  { %v1710_v21 = vunpack.c.l.b16 %v1365_v33  ;;  %v1711_v53 = vunpack.c.h.b16 %v1365_v33  ;;  %v1028_v62 = vsel %vm538_vm0, %v3008_v9, 0.0  ;;  %v1934_v60 = vperm.slane %v1622_v30, %v4006_v22 }
 0x1ad   :  { %1023 = vadd.xlane.f32.xlu2 %v1022_v42  ;;  %1020 = vadd.xlane.f32.xlu1 %v1019_v26  ;;  %v1623_v42 = vunpack.c.h.b16 %v1321_v15  ;;  %v1025_v26 = vsel %vm538_vm0, %v3007_v16, 0.0  ;;  %v1956_v63 = vsel %vm1873_vm5, %v1955_v47, %v1954_v14  ;;  %v1636_v41 = vunpack.c.l.b16 %v1328_v27  ;;  %v5223_v47 = vld [vmem:[#allocation11_spill] sm:$0xff] }
 0x1ae   :  { %v2104_v48 = vperm.slane %v1710_v21, %v3935_v54  ;;  %v2106_v31 = vperm.slane %v1711_v53, %v3948_v55  ;;  %1017 = vadd.xlane.f32.xlu0 %v1016_v39  ;;  %v1959_v8 = vperm.slane %v1635_v35, %v3977_v0  ;;  %v3016_v38 = vunpack.c.h.bf16 %v3275_v19 }
 0x1af   :  { %v3015_v43 = vunpack.c.l.bf16 %v3275_v19  ;;  %v1625_v18 = vunpack.c.h.b16 %v4208_v10  ;;  %v1935_v9 = vsel %vm5161_vm10, %v1934_v60, %v1933_v52  ;;  %v1637_v30 = vunpack.c.h.b16 %v1328_v27  ;;  %v3276_v19 = vld [vmem:[%s5149_s0 + $0x2a0] sm:$0xff]  }
 0x1b0   :  { %v898_v57 = vpop.xlane.xlu2 %897  ;;  %v2105_v36 = vsel %vm1861_vm2, %v2104_v48, %v2103_v37  ;;  %v895_v28 = vpop.xlane.xlu1 %894  ;;  %v1936_v37 = vperm.slane %v1623_v42, %v4009_v2  ;;  %v1961_v29 = vperm.slane %v1636_v41, %v3980_v23 }
 0x1b1   :  { %v2107_v7 = vsel %vm1865_vm3, %v2106_v31, %v2105_v36  ;;  %v1367_v56 = vpack.c.bf16 %v898_v57, %v895_v28  ;;  %v892_v32 = vpop.xlane.xlu0 %891  ;;  %v3012_v31 = vunpack.c.h.bf16 %v4191_v51  ;;  %v1329_v57 = vpack.c.bf16 %v5223_v47, %v5222_v12  ;;  %v5224_v28 = vld [vmem:[#allocation32_spill] sm:$0xff]  ;;  %v5225_v51 = vld [vmem:[#allocation31_spill] sm:$0xff] }
 0x1b2   :  { %v1366_v1 = vpack.c.bf16 %v892_v32, %v889_v6  ;;  %v1958_v6 = vsel %vm1877_vm6, %v1957_v5, %v1956_v63  ;;  %v1040_v36 = vsel %vm538_vm0, %v3016_v38, 0.0  ;;  %v1340_v5 = vpack.c.bf16 %v5225_v51, %v5224_v28 }
 0x1b3   :  { %v1714_v17 = vunpack.c.l.b16 %v1367_v56  ;;  %v1715_v33 = vunpack.c.h.b16 %v1367_v56  ;;  %v1960_v10 = vsel %vm5160_vm7, %v1959_v8, %v1958_v6  ;;  %v1037_v32 = vsel %vm538_vm0, %v3015_v43, 0.0  ;;  %v5228_v43 = vld [vmem:[#allocation36_spill] sm:$0xff] }
 0x1b4   :  { %v1712_v39 = vunpack.c.l.b16 %v1366_v1  ;;  %v1713_v49 = vunpack.c.h.b16 %v1366_v1  ;;  %v1937_v52 = vsel %vm5157_vm11, %v1936_v37, %v1935_v9  ;;  %v1963_v42 = vperm.slane %v1637_v30, %v3998_v50 }
 0x1b5   :  { %1032 = vadd.xlane.f32.xlu2 %v1031_v20  ;;  %1029 = vadd.xlane.f32.xlu1 %v1028_v62  ;;  %v2112_v15 = vperm.slane %v1714_v17, %v3966_v25  ;;  %v2114_v58 = vperm.slane %v1715_v33, %v3977_v0  ;;  %v1938_v20 = vperm.slane %v1624_v24, %v4021_v11  ;;  %v1034_v62 = vsel %vm538_vm0, %v3012_v31, 0.0 }
 0x1b6   :  { %v2108_v21 = vperm.slane %v1712_v39, %v3961_v59  ;;  %v2110_v53 = vperm.slane %v1713_v49, %v3971_v40  ;;  %1026 = vadd.xlane.f32.xlu0 %v1025_v26  ;;  %v1638_v17 = vunpack.c.l.b16 %v1329_v57  ;;  %v4264_v60 = vperm.slane %v1625_v18, %v4031_v3  ;;  %v5229_v18 = vld [vmem:[#allocation35_spill] sm:$0xff] }
 0x1b7   :  { %v1962_v24 = vsel %vm1885_vm8, %v1961_v29, %v1960_v10  ;;  %v1639_v63 = vunpack.c.h.b16 %v1329_v57  ;;  %v1660_v49 = vunpack.c.l.b16 %v1340_v5  ;;  %v3020_v8 = vunpack.c.h.bf16 %v3276_v19 }
 0x1b8   :  { %v907_v48 = vpop.xlane.xlu2 %906  ;;  %v2109_v16 = vsel %vm1869_vm4, %v2108_v21, %v2107_v7  ;;  %v904_v14 = vpop.xlane.xlu1 %903  ;;  %v3277_v7 = vld [vmem:[%s5149_s0 + $0x2a8] sm:$0xff]   ;;  %v4270_v38 = vsel %vm1901_vm12, %v1938_v20, %v1937_v52  ;;  %v1341_v37 = vpack.c.bf16 %v5229_v18, %v5228_v43  ;;  %v3019_v31 = vunpack.c.l.bf16 %v3276_v19 }
 0x1b9   :  { %v2111_v44 = vsel %vm1873_vm5, %v2110_v53, %v2109_v16  ;;  %v901_v35 = vpop.xlane.xlu0 %900  ;;  %v3023_v39 = vunpack.c.l.bf16 %v3277_v7  ;;  %v5227_v21 = vld [vmem:[#allocation6_spill] sm:$0xff]  ;;  %v1964_v9 = vsel %vm1889_vm9, %v1963_v42, %v1962_v24  ;;  %v1965_v30 = vperm.slane %v1638_v17, %v4006_v22 }
 0x1ba   :  { %v2113_v27 = vsel %vm1877_vm6, %v2112_v15, %v2111_v44  ;;  %v1368_v56 = vpack.c.bf16 %v904_v14, %v901_v35  ;;  %v5226_v15 = vld [vmem:[#allocation7_spill] sm:$0xff]  ;;  %v1661_v12 = vunpack.c.h.b16 %v1340_v5  ;;  %v1967_v16 = vperm.slane %v1639_v63, %v4009_v2  ;;  %v5230_v35 = vld [vmem:[#allocation14_spill] sm:$0xff] }
 0x1bb   :  { %v2115_v1 = vsel %vm5160_vm7, %v2114_v58, %v2113_v27  ;;  %v4274_v53 = vpack.c.bf16 %v5227_v21, %v5226_v15  ;;  %v1049_v44 = vsel %vm538_vm0, %v3023_v39, 0.0  ;;  %v2008_v51 = vperm.slane %v1660_v49, %v3910_v45  ;;  %v5232_v19 = vld [vmem:[#allocation34_spill] sm:$0xff]  ;;  %v5235_v63 = vld [vmem:[#allocation15_spill] sm:$0xff] }
 0x1bc   :  { %v1716_v33 = vunpack.c.l.b16 %v1368_v56  ;;  %v1717_v26 = vunpack.c.h.b16 %v1368_v56  ;;  %v1046_v5 = vsel %vm538_vm0, %v3020_v8, 0.0  ;;  %v4293_v56 = vld [vmem:[%s5149_s0 + $0x2c8] sm:$0xff]   ;;  %v1043_v52 = vsel %vm538_vm0, %v3019_v31, 0.0 }
 0x1bd   :  { %1041 = vadd.xlane.f32.xlu2 %v1040_v36  ;;  %1038 = vadd.xlane.f32.xlu1 %v1037_v32  ;;  %v5231_v36 = vld [vmem:[#allocation13_spill] sm:$0xff]  ;;  %v1662_v32 = vunpack.c.l.b16 %v1341_v37  ;;  %v5234_v24 = vld [vmem:[#allocation10_spill] sm:$0xff]  ;;  %v1663_v49 = vunpack.c.h.b16 %v1341_v37 }
 0x1be   :  { %v2116_v41 = vperm.slane %v1716_v33, %v3980_v23  ;;  %v2118_v6 = vperm.slane %v1717_v26, %v3998_v50  ;;  %1035 = vadd.xlane.f32.xlu0 %v1034_v62  ;;  %v4286_v28 = vpack.c.bf16 %v5231_v36, %v5230_v35  ;;  %v2009_v62 = vperm.slane %v1661_v12, %v3924_v13 }
 0x1bf   :  { %v1966_v26 = vsel %vm5161_vm10, %v1965_v30, %v1964_v9  ;;  %v1330_v39 = vpack.c.bf16 %v5235_v63, %v5234_v24  ;;  %v2011_v18 = vperm.slane %v1662_v32, %v3935_v54 }
 0x1c0   :  { %v916_v58 = vpop.xlane.xlu2 %915  ;;  %v2117_v47 = vsel %vm1885_vm8, %v2116_v41, %v2115_v1  ;;  %v913_v57 = vpop.xlane.xlu1 %912  ;;  %v3280_v1 = vld [vmem:[%s5149_s0 + $0x2c0] sm:$0xff]   ;;  %v3039_v41 = vunpack.c.l.bf16 %v4293_v56  ;;  %v1642_v43 = vunpack.c.l.b16 %v4286_v28  ;;  %v1643_v37 = vunpack.c.h.b16 %v4286_v28 }
 0x1c1   :  { %v2119_v14 = vsel %vm1889_vm9, %v2118_v6, %v2117_v47  ;;  %v1370_v29 = vpack.c.bf16 %v916_v58, %v913_v57  ;;  %v910_v10 = vpop.xlane.xlu0 %909  ;;  %v3036_v21 = vunpack.c.h.bf16 %v3280_v1  ;;  %v3035_v9 = vunpack.c.l.bf16 %v3280_v1 }
 0x1c2   :  { %v1369_v27 = vpack.c.bf16 %v910_v10, %v907_v48  ;;  %v5233_v48 = vld [vmem:[#allocation39_spill] sm:$0xff]  ;;  %v2010_v30 = vsel %vm5155_vm1, %v2009_v62, %v2008_v51  ;;  %v1641_v10 = vunpack.c.h.b16 %v1330_v39  ;;  %v1073_v36 = vsel %vm538_vm0, %v3039_v41, 0.0  ;;  %v3288_v51 = vld [vmem:[%s5149_s0 + $0x300] sm:$0xff]   ;;  %v5238_v41 = vld [vmem:[#allocation18_spill] sm:$0xff] }
 0x1c3   :  { %v1720_v7 = vunpack.c.l.b16 %v1370_v29  ;;  %v1721_v20 = vunpack.c.h.b16 %v1370_v29  ;;  %v1342_v42 = vpack.c.bf16 %v5233_v48, %v5232_v19  ;;  %v1640_v29 = vunpack.c.l.b16 %v1330_v39 }
 0x1c4   :  { %v1718_v17 = vunpack.c.l.b16 %v1369_v27  ;;  %v1719_v33 = vunpack.c.h.b16 %v1369_v27  ;;  %v2013_v27 = vperm.slane %v1663_v49, %v3948_v55  ;;  %v1070_v28 = vsel %vm538_vm0, %v3036_v21, 0.0 }
 0x1c5   :  { %1050 = vadd.xlane.f32.xlu2 %v1049_v44  ;;  %1047 = vadd.xlane.f32.xlu1 %v1046_v5  ;;  %v2124_v6 = vperm.slane %v1720_v7, %v4021_v11  ;;  %v2126_v58 = vperm.slane %v1721_v20, %v4031_v3  ;;  %v1664_v12 = vunpack.c.l.b16 %v1342_v42  ;;  %v5236_v7 = vld [vmem:[#allocation38_spill] sm:$0xff]  ;;  %v5237_v20 = vld [vmem:[#allocation37_spill] sm:$0xff]  ;;  %v1067_v62 = vsel %vm538_vm0, %v3035_v9, 0.0 }
 0x1c6   :  { %v2120_v8 = vperm.slane %v1718_v17, %v4006_v22  ;;  %v2122_v15 = vperm.slane %v1719_v33, %v4009_v2  ;;  %1044 = vadd.xlane.f32.xlu0 %v1043_v52  ;;  %v1343_v52 = vpack.c.bf16 %v5237_v20, %v5236_v7  ;;  %v1665_v19 = vunpack.c.h.b16 %v1342_v42 }
 0x1c7   :  { %v2015_v48 = vperm.slane %v1664_v12, %v3961_v59  ;;  %v1968_v24 = vsel %vm5157_vm11, %v1967_v16, %v1966_v26  ;;  %v4331_v63 = vperm.slane %v1642_v43, %v4046_v46  ;;  %v1969_v39 = vperm.slane %v1640_v29, %v4021_v11  ;;  %v5240_v29 = vld [vmem:[#allocation42_spill] sm:$0xff] }
 0x1c8   :  { %v925_v31 = vpop.xlane.xlu2 %924  ;;  %v2121_v47 = vsel %vm5161_vm10, %v2120_v8, %v2119_v14  ;;  %v922_v57 = vpop.xlane.xlu1 %921  ;;  %v2012_v14 = vsel %vm1861_vm2, %v2011_v18, %v2010_v30  ;;  %v3068_v49 = vunpack.c.h.bf16 %v3288_v51  ;;  %v3067_v21 = vunpack.c.l.bf16 %v3288_v51  ;;  %v4361_v51 = vld [vmem:[%s5149_s0 + $0x308] sm:$0xff]  }
 0x1c9   :  { %v2123_v44 = vsel %vm5157_vm11, %v2122_v15, %v2121_v47  ;;  %v919_v35 = vpop.xlane.xlu0 %918  ;;  %v4341_v18 = vperm.slane %v1643_v37, %v4083_v61  ;;  %v1971_v16 = vperm.slane %v1641_v10, %v4031_v3  ;;  %v2014_v26 = vsel %vm1865_vm3, %v2013_v27, %v2012_v14 }
 0x1ca   :  { %v2125_v5 = vsel %vm1901_vm12, %v2124_v6, %v2123_v44  ;;  %v1371_v32 = vpack.c.bf16 %v922_v57, %v919_v35  ;;  %v5239_v6 = vld [vmem:[#allocation17_spill] sm:$0xff]  ;;  %v1666_v9 = vunpack.c.l.b16 %v1343_v52  ;;  %v2016_v30 = vsel %vm1869_vm4, %v2015_v48, %v2014_v26 }
 0x1cb   :  { %v2127_v1 = vsel %vm5159_vm13, %v2126_v58, %v2125_v5  ;;  %v4336_v8 = vpack.c.bf16 %v5239_v6, %v5238_v41  ;;  %v3040_v58 = vunpack.c.h.bf16 %v4293_v56  ;;  %v2017_v12 = vperm.slane %v1665_v19, %v3971_v40  ;;  %v5241_v44 = vld [vmem:[#allocation41_spill] sm:$0xff] }
 0x1cc   :  { %v1722_v17 = vunpack.c.l.b16 %v1371_v32  ;;  %v1723_v33 = vunpack.c.h.b16 %v1371_v32  ;;  %v1344_v35 = vpack.c.bf16 %v5241_v44, %v5240_v29  ;;  %v1118_v27 = vsel %vm538_vm0, %v3068_v49, 0.0 }
 0x1cd   :  { %1074 = vadd.xlane.f32.xlu2 %v1073_v36  ;;  %1071 = vadd.xlane.f32.xlu1 %v1070_v28  ;;  %v1970_v56 = vsel %vm1901_vm12, %v1969_v39, %v1968_v24  ;;  %v1644_v5 = vunpack.c.l.b16 %v4336_v8  ;;  %v1115_v28 = vsel %vm538_vm0, %v3067_v21, 0.0  ;;  %v1667_v14 = vunpack.c.h.b16 %v1343_v52  ;;  %v5242_v24 = vld [vmem:[#allocation40_spill] sm:$0xff]  ;;  %v5243_v39 = vld [vmem:[#allocation45_spill] sm:$0xff] }
 0x1ce   :  { %v2128_v42 = vperm.slane %v1722_v17, %v4046_v46  ;;  %v2130_v15 = vperm.slane %v1723_v33, %v4083_v61  ;;  %1068 = vadd.xlane.f32.xlu0 %v1067_v62  ;;  %v3296_v62 = vld [vmem:[%s5149_s0 + $0x340] sm:$0xff]   ;;  %v2019_v19 = vperm.slane %v1666_v9, %v3966_v25  ;;  %v1668_v33 = vunpack.c.l.b16 %v1344_v35 }
 0x1cf   :  { %v1345_v49 = vpack.c.bf16 %v5243_v39, %v5242_v24  ;;  %v3071_v41 = vunpack.c.l.bf16 %v4361_v51  ;;  %v3100_v21 = vunpack.c.h.bf16 %v3296_v62  ;;  %v1645_v26 = vunpack.c.h.b16 %v4336_v8 }
 0x1d0   :  { %v934_v43 = vpop.xlane.xlu2 %933  ;;  %v2129_v47 = vsel %vm1909_vm14, %v2128_v42, %v2127_v1  ;;  %v931_v57 = vpop.xlane.xlu1 %930  ;;  %v1076_v1 = vsel %vm538_vm0, %v3040_v58, 0.0  ;;  %v5245_v58 = vld [vmem:[#allocation21_spill] sm:$0xff]  ;;  %v1669_v44 = vunpack.c.h.b16 %v1344_v35  ;;  %v2023_v8 = vperm.slane %v1668_v33, %v3980_v23  ;;  %v3297_v35 = vld [vmem:[%s5149_s0 + $0x348] sm:$0xff]  }
 0x1d1   :  { %v4352_v37 = vsel %vm1913_vm15, %v2130_v15, %v2129_v47  ;;  %v1373_v10 = vpack.c.bf16 %v934_v43, %v931_v57  ;;  %v928_v36 = vpop.xlane.xlu0 %927  ;;  %v5244_v43 = vld [vmem:[#allocation16_spill] sm:$0xff]  ;;  %v3099_v47 = vunpack.c.l.bf16 %v3296_v62  ;;  %v1972_v57 = vsel %vm5159_vm13, %v1971_v16, %v1970_v56 }
 0x1d2   :  { %v1372_v32 = vpack.c.bf16 %v928_v36, %v925_v31  ;;  %v2018_v31 = vsel %vm1873_vm5, %v2017_v12, %v2016_v30  ;;  %v4379_v9 = vpack.c.bf16 %v5245_v58, %v5244_v43  ;;  %v2021_v30 = vperm.slane %v1667_v14, %v3977_v0 }
 0x1d3   :  { %v1726_v7 = vunpack.c.l.b16 %v1373_v10  ;;  %v1727_v20 = vunpack.c.h.b16 %v1373_v10  ;;  %v2020_v29 = vsel %vm1877_vm6, %v2019_v19, %v2018_v31  ;;  %v1670_v14 = vunpack.c.l.b16 %v1345_v49 }
 0x1d4   :  { %v1724_v48 = vunpack.c.l.b16 %v1372_v32  ;;  %v1725_v17 = vunpack.c.h.b16 %v1372_v32  ;;  %v1166_v16 = vsel %vm538_vm0, %v3100_v21, 0.0  ;;  %v1978_v56 = vperm.slane %v1645_v26, %v3924_v13 }
 0x1d5   :  { %1119 = vadd.xlane.f32.xlu2 %v1118_v27  ;;  %v2135_v52 = vperm.slane %v1726_v7, %v3935_v54  ;;  %1116 = vadd.xlane.f32.xlu1 %v1115_v28  ;;  %v2137_v6 = vperm.slane %v1727_v20, %v3948_v55  ;;  %v1977_v27 = vperm.slane %v1644_v5, %v3910_v45  ;;  %v1121_v7 = vsel %vm538_vm0, %v3071_v41, 0.0  ;;  %v5249_v41 = vld [vmem:[#allocation19_spill] sm:$0xff] }
 0x1d6   :  { %v2132_v42 = vperm.slane %v1724_v48, %v3910_v45  ;;  %v2133_v15 = vperm.slane %v1725_v17, %v3924_v13  ;;  %1077 = vadd.xlane.f32.xlu0 %v1076_v1  ;;  %v1646_v5 = vunpack.c.l.b16 %v4379_v9  ;;  %v2022_v62 = vsel %vm5160_vm7, %v2021_v30, %v2020_v29  ;;  %v5246_v48 = vld [vmem:[#allocation44_spill] sm:$0xff]  ;;  %v5247_v17 = vld [vmem:[#allocation43_spill] sm:$0xff] }
 0x1d7   :  { %v1163_v19 = vsel %vm538_vm0, %v3099_v47, 0.0  ;;  %v2025_v31 = vperm.slane %v1669_v44, %v3998_v50  ;;  %v4401_v33 = vpack.c.bf16 %v5247_v17, %v5246_v48  ;;  %v3104_v21 = vunpack.c.h.bf16 %v3297_v35  ;;  %v3304_v17 = vld [vmem:[%s5149_s0 + $0x380] sm:$0xff]  }
 0x1d8   :  { %v943_v12 = vpop.xlane.xlu2 %942  ;;  %v2134_v10 = vsel %vm5155_vm1, %v2133_v15, %v2132_v42  ;;  %v940_v36 = vpop.xlane.xlu1 %939  ;;  %v2024_v42 = vsel %vm1885_vm8, %v2023_v8, %v2022_v62  ;;  %v1671_v15 = vunpack.c.h.b16 %v1345_v49  ;;  %v2027_v26 = vperm.slane %v1670_v14, %v4006_v22 }
 0x1d9   :  { %v2136_v32 = vsel %vm1861_vm2, %v2135_v52, %v2134_v10  ;;  %v937_v28 = vpop.xlane.xlu0 %936  ;;  %v5248_v52 = vld [vmem:[#allocation20_spill] sm:$0xff]  ;;  %v3103_v30 = vunpack.c.l.bf16 %v3297_v35  ;;  %v1974_v47 = vsel %vm1909_vm14, %v4331_v63, %v1972_v57  ;;  %v1979_v29 = vsel %vm5155_vm1, %v1978_v56, %v1977_v27 }
 0x1da   :  { %v2138_v20 = vsel %vm1865_vm3, %v2137_v6, %v2136_v32  ;;  %v1374_v1 = vpack.c.bf16 %v940_v36, %v937_v28  ;;  %v4405_v6 = vpack.c.bf16 %v5249_v41, %v5248_v52  ;;  %v1647_v44 = vunpack.c.h.b16 %v4379_v9  ;;  %v5250_v56 = vld [vmem:[#allocation48_spill] sm:$0xff] }
 0x1db   :  { %v3072_v49 = vunpack.c.h.bf16 %v4361_v51  ;;  %v1980_v36 = vperm.slane %v1646_v5, %v3935_v54  ;;  %v2026_v8 = vsel %vm1889_vm9, %v2025_v31, %v2024_v42  ;;  %v1672_v32 = vunpack.c.l.b16 %v4401_v33  ;;  %v5251_v5 = vld [vmem:[#allocation47_spill] sm:$0xff] }
 0x1dc   :  { %v1728_v24 = vunpack.c.l.b16 %v1374_v1  ;;  %v1729_v39 = vunpack.c.h.b16 %v1374_v1  ;;  %v2029_v14 = vperm.slane %v1671_v15, %v4009_v2  ;;  %v1172_v9 = vsel %vm538_vm0, %v3104_v21, 0.0 }
 0x1dd   :  { %1122 = vadd.xlane.f32.xlu2 %v1121_v7  ;;  %1167 = vadd.xlane.f32.xlu1 %v1166_v16  ;;  %v1648_v1 = vunpack.c.l.b16 %v4405_v6  ;;  %v2028_v51 = vsel %vm5161_vm10, %v2027_v26, %v2026_v8  ;;  %v1169_v35 = vsel %vm538_vm0, %v3103_v30, 0.0  ;;  %v1347_v62 = vpack.c.bf16 %v5251_v5, %v5250_v56 }
 0x1de   :  { %v2139_v43 = vperm.slane %v1728_v24, %v3961_v59  ;;  %v2141_v58 = vperm.slane %v1729_v39, %v3971_v40  ;;  %1164 = vadd.xlane.f32.xlu0 %v1163_v19  ;;  %v1124_v48 = vsel %vm538_vm0, %v3072_v49, 0.0  ;;  %v1982_v24 = vperm.slane %v1647_v44, %v3948_v55 }
 0x1df   :  { %vm5156_vm1 = vcmask 1041409   ;;  %v1673_v41 = vunpack.c.h.b16 %v4401_v33  ;;  %v2031_v42 = vperm.slane %v1672_v32, %v4021_v11  ;;  %v2030_v15 = vsel %vm5157_vm11, %v2029_v14, %v2028_v51  ;;  %v5252_v32 = vld [vmem:[#allocation24_spill] sm:$0xff] }
 0x1e0   :  { %v952_v10 = vpop.xlane.xlu2 %951  ;;  %v2140_v28 = vsel %vm1869_vm4, %v2139_v43, %v2138_v20  ;;  %v949_v7 = vpop.xlane.xlu1 %948  ;;  %v4429_v20 = vld [vmem:[%s5149_s0 + $0x3c0] sm:$0xff]   ;;  %v3132_v30 = vunpack.c.h.bf16 %v3304_v17  ;;  %v1674_v44 = vunpack.c.l.b16 %v1347_v62  ;;  %v3131_v49 = vunpack.c.l.bf16 %v3304_v17 }
 0x1e1   :  { %v2142_v63 = vsel %vm1873_vm5, %v2141_v58, %v2140_v28  ;;  %v1376_v57 = vpack.c.bf16 %v952_v10, %v949_v7  ;;  %v946_v27 = vpop.xlane.xlu0 %945  ;;  %v3163_v21 = vunpack.c.l.bf16 %v4429_v20  ;;  %v5253_v28 = vld [vmem:[#allocation23_spill] sm:$0xff] }
 0x1e2   :  { %v1375_v16 = vpack.c.bf16 %v946_v27, %v943_v12  ;;  %v1981_v12 = vsel %vm1861_vm2, %v1980_v36, %v1979_v29  ;;  %v1649_v29 = vunpack.c.h.b16 %v4405_v6  ;;  %v1984_v36 = vperm.slane %v1648_v1, %v3961_v59 }
 0x1e3   :  { %v1732_v19 = vunpack.c.l.b16 %v1376_v57  ;;  %v1733_v31 = vunpack.c.h.b16 %v1376_v57  ;;  %v1983_v8 = vsel %vm1865_vm3, %v1982_v24, %v1981_v12  ;;  %v1335_v7 = vpack.c.bf16 %v5253_v28, %v5252_v32 }
 0x1e4   :  { %v1730_v39 = vunpack.c.l.b16 %v1375_v16  ;;  %v1731_v52 = vunpack.c.h.b16 %v1375_v16  ;;  %v2033_v27 = vperm.slane %v1673_v41, %v4031_v3  ;;  %v1259_v16 = vsel %vm538_vm0, %v3163_v21, 0.0 }
 0x1e5   :  { %1173 = vadd.xlane.f32.xlu2 %v1172_v9  ;;  %1170 = vadd.xlane.f32.xlu1 %v1169_v35  ;;  %v2147_v26 = vperm.slane %v1732_v19, %v3980_v23  ;;  %v2149_v33 = vperm.slane %v1733_v31, %v3998_v50  ;;  %v2032_v9 = vsel %vm1901_vm12, %v2031_v42, %v2030_v15  ;;  %v1675_v35 = vunpack.c.h.b16 %v1347_v62 }
 0x1e6   :  { %v2143_v43 = vperm.slane %v1730_v39, %v3966_v25  ;;  %v2145_v58 = vperm.slane %v1731_v52, %v3977_v0  ;;  %1125 = vadd.xlane.f32.xlu0 %v1124_v48  ;;  %v1214_v5 = vsel %vm538_vm0, %v3132_v30, 0.0  ;;  %v1976_v19 = vsel %vm1913_vm15, %v4341_v18, %v1974_v47 }
 0x1e7   :  { %v2035_v31 = vperm.slane %v1674_v44, %v4046_v46  ;;  %v1211_v17 = vsel %vm538_vm0, %v3131_v49, 0.0  ;;  %v1986_v62 = vperm.slane %v1649_v29, %v3971_v40  ;;  %v1650_v12 = vunpack.c.l.b16 %v1335_v7 }
 0x1e8   :  { %v961_v10 = vpop.xlane.xlu2 %960  ;;  %v2144_v14 = vsel %vm1877_vm6, %v2143_v43, %v2142_v63  ;;  %v958_v57 = vpop.xlane.xlu1 %957  ;;  %v3282_v63 = vld [vmem:[%s5149_s0 + $0x2d0] sm:$0xff]   ;;  %v1985_v52 = vsel %vm1869_vm4, %v1984_v36, %v1983_v8  ;;  %v1651_v41 = vunpack.c.h.b16 %v1335_v7  ;;  %v2034_v42 = vsel %vm5159_vm13, %v2033_v27, %v2032_v9  ;;  %v5254_v36 = vld [vmem:[#allocation46_spill] sm:$0xff] }
 0x1e9   :  { %v2146_v6 = vsel %vm5160_vm7, %v2145_v58, %v2144_v14  ;;  %v955_v51 = vpop.xlane.xlu0 %954  ;;  %v3044_v15 = vunpack.c.h.bf16 %v3282_v63  ;;  %v2037_v18 = vperm.slane %v1675_v35, %v4083_v61  ;;  %v1626_v43 = vunpack.c.l.b16 %v4274_v53  ;;  %v5255_v8 = vld [vmem:[#allocation51_spill] sm:$0xff]  ;;  %v5256_v35 = vld [vmem:[#allocation50_spill] sm:$0xff] }
 0x1ea   :  { %v2148_v1 = vsel %vm1885_vm8, %v2147_v26, %v2146_v6  ;;  %v1377_v56 = vpack.c.bf16 %v958_v57, %v955_v51  ;;  %v3043_v26 = vunpack.c.l.bf16 %v3282_v63  ;;  %v2381_v58 = vsel %vm5156_vm1, %v1976_v19, %v4144_v34 }
 0x1eb   :  { %v2150_v48 = vsel %vm1889_vm9, %v2149_v33, %v2148_v1  ;;  %v2036_v30 = vsel %vm1909_vm14, %v2035_v31, %v2034_v42  ;;  %v3164_v44 = vunpack.c.h.bf16 %v4429_v20  ;;  %v1987_v33 = vsel %vm1873_vm5, %v1986_v62, %v1985_v52  ;;  %v5257_v1 = vld [vmem:[#allocation49_spill] sm:$0xff]  ;;  %v3305_v31 = vld [vmem:[%s5149_s0 + $0x388] sm:$0xff]   ;;  %v5261_v42 = vld [vmem:[#allocation27_spill] sm:$0xff] }
 0x1ec   :  { %v1734_v24 = vunpack.c.l.b16 %v1377_v56  ;;  %v1735_v39 = vunpack.c.h.b16 %v1377_v56  ;;  %v1988_v49 = vperm.slane %v1650_v12, %v3966_v25  ;;  %v1348_v32 = vpack.c.bf16 %v5255_v8, %v5254_v36 }
 0x1ed   :  { %1260 = vadd.xlane.f32.xlu2 %v1259_v16  ;;  %1215 = vadd.xlane.f32.xlu1 %v1214_v5  ;;  %v4484_v14 = vperm.slane %v1651_v41, %v3977_v0  ;;  %v1082_v9 = vsel %vm538_vm0, %v3044_v15, 0.0  ;;  %vm5158_vm1 = vcmask 1042434   ;;  %v2038_v20 = vsel %vm1913_vm15, %v2037_v18, %v2036_v30  ;;  %v4493_v16 = vld [vmem:[%s5149_s0 + $0x3c8] sm:$0xff]  }
 0x1ee   :  { %v2151_v47 = vperm.slane %v1734_v24, %v4006_v22  ;;  %v2153_v21 = vperm.slane %v1735_v39, %v4009_v2  ;;  %1212 = vadd.xlane.f32.xlu0 %v1211_v17  ;;  %v1079_v51 = vsel %vm538_vm0, %v3043_v26, 0.0  ;;  %v1349_v56 = vpack.c.bf16 %v5257_v1, %v5256_v35  ;;  %v5258_v24 = vld [vmem:[#allocation26_spill] sm:$0xff]  ;;  %v5259_v39 = vld [vmem:[#allocation25_spill] sm:$0xff] }
 0x1ef   :  { %v1262_v19 = vsel %vm538_vm0, %v3164_v44, 0.0  ;;  %v1989_v12 = vsel %vm1877_vm6, %v1988_v49, %v1987_v33  ;;  %v4504_v52 = vpack.c.bf16 %v5259_v39, %v5258_v24  ;;  %v5260_v41 = vld [vmem:[#allocation22_spill] sm:$0xff]  ;;  %v3167_v18 = vunpack.c.l.bf16 %v4493_v16 }
 0x1f0   :  { %v970_v29 = vpop.xlane.xlu2 %969  ;;  %v2152_v28 = vsel %vm5161_vm10, %v2151_v47, %v2150_v48  ;;  %v967_v7 = vpop.xlane.xlu1 %966  ;;  %v1676_v48 = vunpack.c.l.b16 %v1348_v32  ;;  %v1336_v15 = vpack.c.bf16 %v5261_v42, %v5260_v41  ;;  %v3136_v30 = vunpack.c.h.bf16 %v3305_v31  ;;  %v5265_v41 = vld [vmem:[#allocation52_spill] sm:$0xff]  ;;  %v5266_v42 = vld [vmem:[#allocation57_spill] sm:$0xff] }
 0x1f1   :  { %v2154_v34 = vsel %vm5157_vm11, %v2153_v21, %v2152_v28  ;;  %v1379_v57 = vpack.c.bf16 %v970_v29, %v967_v7  ;;  %v964_v27 = vpop.xlane.xlu0 %963  ;;  %v2383_v29 = vsel %vm5158_vm1, %v2038_v20, %v2381_v58  ;;  %v1678_v44 = vunpack.c.l.b16 %v1349_v56 }
 0x1f2   :  { %v1378_v6 = vpack.c.bf16 %v964_v27, %v961_v10  ;;  %v1677_v10 = vunpack.c.h.b16 %v1348_v32  ;;  %v3135_v36 = vunpack.c.l.bf16 %v3305_v31  ;;  %v2039_v8 = vperm.slane %v1676_v48, %v3910_v45  ;;  %v5263_v27 = vld [vmem:[#allocation53_spill] sm:$0xff] }
 0x1f3   :  { %v1738_v5 = vunpack.c.l.b16 %v1379_v57  ;;  %v1739_v63 = vunpack.c.h.b16 %v1379_v57  ;;  %vm2384_vm11 = vcmask 1043459   ;;  %v5262_v57 = vld [vmem:[#allocation54_spill] sm:$0xff]  ;;  %v1265_v58 = vsel %vm538_vm0, %v3167_v18, 0.0 }
 0x1f4   :  { %v1736_v17 = vunpack.c.l.b16 %v1378_v6  ;;  %v1737_v62 = vunpack.c.h.b16 %v1378_v6  ;;  %v2040_v32 = vperm.slane %v1677_v10, %v3924_v13  ;;  %vm2386_vm1 = vcmask 1044484  }
 0x1f5   :  { %1083 = vadd.xlane.f32.xlu2 %v1082_v9  ;;  %1080 = vadd.xlane.f32.xlu1 %v1079_v51  ;;  %v2159_v47 = vperm.slane %v1738_v5, %v4046_v46  ;;  %v2161_v33 = vperm.slane %v1739_v63, %v4083_v61  ;;  %v1350_v9 = vpack.c.bf16 %v5263_v27, %v5262_v57  ;;  %v1679_v20 = vunpack.c.h.b16 %v1349_v56 }
 0x1f6   :  { %v2155_v21 = vperm.slane %v1736_v17, %v4021_v11  ;;  %v2157_v26 = vperm.slane %v1737_v62, %v4031_v3  ;;  %1263 = vadd.xlane.f32.xlu0 %v1262_v19  ;;  %v1220_v5 = vsel %vm538_vm0, %v3136_v30, 0.0  ;;  %v2042_v63 = vperm.slane %v1678_v44, %v3935_v54 }
 0x1f7   :  { %v1217_v19 = vsel %vm538_vm0, %v3135_v36, 0.0  ;;  %v2385_v48 = vsel %vm2384_vm11, %v4182_v4, %v2383_v29  ;;  %v1652_v10 = vunpack.c.l.b16 %v1336_v15  ;;  %v1653_v56 = vunpack.c.h.b16 %v1336_v15 }
 0x1f8   :  { %v979_v49 = vpop.xlane.xlu2 %978  ;;  %v2156_v28 = vsel %vm1901_vm12, %v2155_v21, %v2154_v34  ;;  %v976_v7 = vpop.xlane.xlu1 %975  ;;  %v3290_v34 = vld [vmem:[%s5149_s0 + $0x310] sm:$0xff]   ;;  %v1627_v24 = vunpack.c.h.b16 %v4274_v53  ;;  %v1680_v39 = vunpack.c.l.b16 %v1350_v9  ;;  %v1351_v18 = vpack.c.bf16 %v5266_v42, %v5265_v41 }
 0x1f9   :  { %v2158_v6 = vsel %vm5159_vm13, %v2157_v26, %v2156_v28  ;;  %v973_v51 = vpop.xlane.xlu0 %972  ;;  %vm5264_vm13 = vcmask 130112   ;;  %v1991_v21 = vsel %vm5160_vm7, %v4484_v14, %v1989_v12  ;;  %v2044_v4 = vperm.slane %v1679_v20, %v3948_v55 }
 0x1fa   :  { %v2160_v35 = vsel %vm1909_vm14, %v2159_v47, %v2158_v6  ;;  %v1380_v1 = vpack.c.bf16 %v976_v7, %v973_v51  ;;  %v2041_v17 = vsel %vm5264_vm13, %v2040_v32, %v2039_v8  ;;  %v3076_v47 = vunpack.c.h.bf16 %v3290_v34 }
 0x1fb   :  { %v2162_v31 = vsel %vm1913_vm15, %v2161_v33, %v2160_v35  ;;  %v3075_v15 = vunpack.c.l.bf16 %v3290_v34  ;;  %v3168_v26 = vunpack.c.h.bf16 %v4493_v16  ;;  %v1654_v30 = vunpack.c.l.b16 %v4504_v52 }
 0x1fc   :  { %v4533_v62 = vsel %vm2386_vm1, %v2162_v31, %v2385_v48  ;;  %v2043_v29 = vsel %vm1861_vm2, %v2042_v63, %v2041_v17  ;;  %v1740_v44 = vunpack.c.l.b16 %v1380_v1  ;;  %v1741_v33 = vunpack.c.h.b16 %v1380_v1  ;;  %v4555_v1 = vld [vmem:[%s5149_s0 + $0x2d8] sm:$0xff]   ;;  %v5268_v48 = vld [vmem:[#allocation55_spill] sm:$0xff] }
 0x1fd   :  { %1266 = vadd.xlane.f32.xlu2 %v1265_v58  ;;  %1221 = vadd.xlane.f32.xlu1 %v1220_v5  ;;  %v1655_v8 = vunpack.c.h.b16 %v4504_v52  ;;  %v1992_v32 = vperm.slane %v1652_v10, %v3980_v23  ;;  %v1994_v28 = vperm.slane %v1653_v56, %v3998_v50  ;;  %v1681_v14 = vunpack.c.h.b16 %v1350_v9  ;;  %v5267_v31 = vld [vmem:[#allocation56_spill] sm:$0xff]  ;;  %v5274_v52 = vld [vmem:[#allocation63_spill] sm:$0xff] }
 0x1fe   :  { %1218 = vadd.xlane.f32.xlu0 %v1217_v19  ;;  %v2046_v7 = vperm.slane %v1680_v39, %v3961_v59  ;;  %v1682_v57 = vunpack.c.l.b16 %v1351_v18  ;;  %v1130_v6 = vsel %vm538_vm0, %v3076_v47, 0.0  ;;  %v2045_v51 = vsel %vm1865_vm3, %v2044_v4, %v2043_v29  ;;  %v3298_v19 = vld [vmem:[%s5149_s0 + $0x350] sm:$0xff]  }
 0x1ff   :  { %v1127_v20 = vsel %vm538_vm0, %v3075_v15, 0.0  ;;  %v1268_v35 = vsel %vm538_vm0, %v3168_v26, 0.0  ;;  %v2163_v9 = vperm.slane %v1740_v44, %v3910_v45  ;;  %v2164_v5 = vperm.slane %v1741_v33, %v3924_v13 }
 0x200   :  { %v988_v36 = vpop.xlane.xlu2 %987  ;;  %v985_v12 = vpop.xlane.xlu1 %984  ;;  %v1352_v10 = vpack.c.bf16 %v5268_v48, %v5267_v31  ;;  %v2047_v39 = vsel %vm1869_vm4, %v2046_v7, %v2045_v51  ;;  %v1683_v41 = vunpack.c.h.b16 %v1351_v18  ;;  %v2050_v42 = vperm.slane %v1682_v57, %v3966_v25  ;;  %v5270_v7 = vld [vmem:[#allocation29_spill] sm:$0xff]  ;;  %v3306_v31 = vld [vmem:[%s5149_s0 + $0x390] sm:$0xff]  }
 0x201   :  { %v1382_v27 = vpack.c.bf16 %v988_v36, %v985_v12  ;;  %v982_v16 = vpop.xlane.xlu0 %981  ;;  %v3047_v47 = vunpack.c.l.bf16 %v4555_v1  ;;  %v3108_v29 = vunpack.c.h.bf16 %v3298_v19  ;;  %v1993_v44 = vsel %vm1885_vm8, %v1992_v32, %v1991_v21  ;;  %v5269_v12 = vld [vmem:[#allocation30_spill] sm:$0xff]  ;;  %v5272_v21 = vld [vmem:[#allocation59_spill] sm:$0xff] }
 0x202   :  { %v1381_v58 = vpack.c.bf16 %v982_v16, %v979_v49  ;;  %v2048_v49 = vperm.slane %v1681_v14, %v3971_v40  ;;  %v2165_v33 = vsel %vm5264_vm13, %v2164_v5, %v2163_v9  ;;  %v3107_v14 = vunpack.c.l.bf16 %v3298_v19 }
 0x203   :  { %v1744_v34 = vunpack.c.l.b16 %v1382_v27  ;;  %v1745_v63 = vunpack.c.h.b16 %v1382_v27  ;;  %v4576_v57 = vpack.c.bf16 %v5270_v7, %v5269_v12  ;;  %v1684_v16 = vunpack.c.l.b16 %v1352_v10  ;;  %v5273_v12 = vld [vmem:[#allocation58_spill] sm:$0xff] }
 0x204   :  { %v1742_v56 = vunpack.c.l.b16 %v1381_v58  ;;  %v1743_v17 = vunpack.c.h.b16 %v1381_v58  ;;  %v2049_v27 = vsel %vm1873_vm5, %v2048_v49, %v2047_v39  ;;  %v2052_v58 = vperm.slane %v1683_v41, %v3977_v0 }
 0x205   :  { %1131 = vadd.xlane.f32.xlu2 %v1130_v6  ;;  %1128 = vadd.xlane.f32.xlu1 %v1127_v20  ;;  %v2170_v4 = vperm.slane %v1744_v34, %v3961_v59  ;;  %v2172_v36 = vperm.slane %v1745_v63, %v3971_v40  ;;  %v5271_v20 = vld [vmem:[#allocation60_spill] sm:$0xff]  ;;  %v1085_v5 = vsel %vm538_vm0, %v3047_v47, 0.0  ;;  %v2051_v34 = vsel %vm1877_vm6, %v2050_v42, %v2049_v27 }
 0x206   :  { %v2166_v15 = vperm.slane %v1742_v56, %v3935_v54  ;;  %v2168_v26 = vperm.slane %v1743_v17, %v3948_v55  ;;  %1269 = vadd.xlane.f32.xlu0 %v1268_v35  ;;  %v1353_v32 = vpack.c.bf16 %v5272_v21, %v5271_v20  ;;  %v1178_v49 = vsel %vm538_vm0, %v3108_v29, 0.0 }
 0x207   :  { %v1996_v48 = vperm.slane %v1654_v30, %v4006_v22  ;;  %v1995_v56 = vsel %vm1889_vm9, %v1994_v28, %v1993_v44  ;;  %v1175_v39 = vsel %vm538_vm0, %v3107_v14, 0.0  ;;  %v1685_v41 = vunpack.c.h.b16 %v1352_v10 }
 0x208   :  { %v997_v18 = vpop.xlane.xlu2 %996  ;;  %v2167_v6 = vsel %vm1861_vm2, %v2166_v15, %v2165_v33  ;;  %v994_v51 = vpop.xlane.xlu1 %993  ;;  %v2054_v42 = vperm.slane %v1684_v16, %v3980_v23  ;;  %v1998_v15 = vperm.slane %v1655_v8, %v4009_v2  ;;  %v1686_v29 = vunpack.c.l.b16 %v1353_v32 }
 0x209   :  { %v2169_v35 = vsel %vm1865_vm3, %v2168_v26, %v2167_v6  ;;  %v991_v9 = vpop.xlane.xlu0 %990  ;;  %v2053_v26 = vsel %vm5160_vm7, %v2052_v58, %v2051_v34  ;;  %v3140_v30 = vunpack.c.h.bf16 %v3306_v31  ;;  %v1656_v28 = vunpack.c.l.b16 %v4576_v57 }
 0x20a   :  { %v2171_v63 = vsel %vm1869_vm4, %v2170_v4, %v2169_v35  ;;  %v1383_v19 = vpack.c.bf16 %v994_v51, %v991_v9  ;;  %v3139_v33 = vunpack.c.l.bf16 %v3306_v31  ;;  %v1657_v14 = vunpack.c.h.b16 %v4576_v57  ;;  %v4623_v31 = vld [vmem:[%s5149_s0 + $0x318] sm:$0xff]  }
 0x20b   :  { %v2173_v17 = vsel %vm1873_vm5, %v2172_v36, %v2171_v63  ;;  %v1997_v36 = vsel %vm5161_vm10, %v1996_v48, %v1995_v56  ;;  %v1354_v8 = vpack.c.bf16 %v5274_v52, %v5273_v12  ;;  %v3048_v27 = vunpack.c.h.bf16 %v4555_v1  ;;  %v5275_v63 = vld [vmem:[#allocation28_spill] sm:$0xff]  ;;  %v5276_v1 = vld [vmem:[#allocation33_spill] sm:$0xff] }
 0x20c   :  { %v1746_v47 = vunpack.c.l.b16 %v1383_v19  ;;  %v1747_v4 = vunpack.c.h.b16 %v1383_v19  ;;  %v2056_v16 = vperm.slane %v1685_v41, %v3998_v50  ;;  %v2055_v6 = vsel %vm1885_vm8, %v2054_v42, %v2053_v26  ;;  %v3314_v41 = vld [vmem:[%s5149_s0 + $0x3d0] sm:$0xff]  }
 0x20d   :  { %1086 = vadd.xlane.f32.xlu2 %v1085_v5  ;;  %1179 = vadd.xlane.f32.xlu1 %v1178_v49  ;;  %v1687_v51 = vunpack.c.h.b16 %v1353_v32  ;;  %v2058_v21 = vperm.slane %v1686_v29, %v4006_v22  ;;  %v1226_v5 = vsel %vm538_vm0, %v3140_v30, 0.0  ;;  %v2000_v34 = vperm.slane %v1656_v28, %v4021_v11  ;;  %v5277_v29 = vld [vmem:[#allocation62_spill] sm:$0xff]  ;;  %v5278_v30 = vld [vmem:[#allocation61_spill] sm:$0xff] }
 0x20e   :  { %v2174_v44 = vperm.slane %v1746_v47, %v3966_v25  ;;  %v2176_v10 = vperm.slane %v1747_v4, %v3977_v0  ;;  %1176 = vadd.xlane.f32.xlu0 %v1175_v39  ;;  %v4617_v19 = vpack.c.bf16 %v5276_v1, %v5275_v63  ;;  %v1223_v32 = vsel %vm538_vm0, %v3139_v33, 0.0 }
 0x20f   :  { %v1688_v48 = vunpack.c.l.b16 %v1354_v8  ;;  %v1088_v39 = vsel %vm538_vm0, %v3048_v27, 0.0  ;;  %v2057_v42 = vsel %vm1889_vm9, %v2056_v16, %v2055_v6  ;;  %v1355_v28 = vpack.c.bf16 %v5278_v30, %v5277_v29 }
 0x210   :  { %v1006_v7 = vpop.xlane.xlu2 %1005  ;;  %v2175_v58 = vsel %vm1877_vm6, %v2174_v44, %v2173_v17  ;;  %v1003_v20 = vpop.xlane.xlu1 %1002  ;;  %v2059_v26 = vsel %vm5161_vm10, %v2058_v21, %v2057_v42  ;;  %v1689_v44 = vunpack.c.h.b16 %v1354_v8  ;;  %vm5279_vm13 = vcmask 786112  }
 0x211   :  { %v2177_v35 = vsel %vm5160_vm7, %v2176_v10, %v2175_v58  ;;  %v1385_v9 = vpack.c.bf16 %v1006_v7, %v1003_v20  ;;  %v1000_v57 = vpop.xlane.xlu0 %999  ;;  %v3079_v10 = vunpack.c.l.bf16 %v4623_v31  ;;  %v3172_v7 = vunpack.c.h.bf16 %v3314_v41  ;;  %vm5280_vm7 = vmmov %vm5279_vm13 }
 0x212   :  { %v1384_v49 = vpack.c.bf16 %v1000_v57, %v997_v18  ;;  %v2060_v18 = vperm.slane %v1687_v51, %v4009_v2  ;;  %v1999_v27 = vsel %vm5279_vm13, %v1998_v15, %v1997_v36  ;;  %v2062_v16 = vperm.slane %v1688_v48, %v4021_v11 }
 0x213   :  { %v1750_v56 = vunpack.c.l.b16 %v1385_v9  ;;  %v1751_v17 = vunpack.c.h.b16 %v1385_v9  ;;  %v3171_v58 = vunpack.c.l.bf16 %v3314_v41  ;;  %v2001_v8 = vsel %vm1901_vm12, %v2000_v34, %v1999_v27 }
 0x214   :  { %v1748_v47 = vunpack.c.l.b16 %v1384_v49  ;;  %v1749_v4 = vunpack.c.h.b16 %v1384_v49  ;;  %v2002_v20 = vperm.slane %v1657_v14, %v4031_v3  ;;  %v1658_v21 = vunpack.c.l.b16 %v4617_v19 }
 0x215   :  { %1227 = vadd.xlane.f32.xlu2 %v1226_v5  ;;  %1224 = vadd.xlane.f32.xlu1 %v1223_v32  ;;  %v2182_v33 = vperm.slane %v1750_v56, %v4006_v22  ;;  %v2184_v6 = vperm.slane %v1751_v17, %v4009_v2  ;;  %v2061_v5 = vsel %vm5280_vm7, %v2060_v18, %v2059_v26  ;;  %v1690_v63 = vunpack.c.l.b16 %v1355_v28 }
 0x216   :  { %v2178_v12 = vperm.slane %v1748_v47, %v3980_v23  ;;  %v2180_v52 = vperm.slane %v1749_v4, %v3998_v50  ;;  %1089 = vadd.xlane.f32.xlu0 %v1088_v39  ;;  %v1133_v1 = vsel %vm538_vm0, %v3079_v10, 0.0  ;;  %v2064_v49 = vperm.slane %v1689_v44, %v4031_v3 }
 0x217   :  { %v1274_v14 = vsel %vm538_vm0, %v3172_v7, 0.0  ;;  %v1659_v48 = vunpack.c.h.b16 %v4617_v19  ;;  %v2063_v56 = vsel %vm1901_vm12, %v2062_v16, %v2061_v5  ;;  %v1271_v39 = vsel %vm538_vm0, %v3171_v58, 0.0 }
 0x218   :  { %v1015_v51 = vpop.xlane.xlu2 %1014  ;;  %v2179_v9 = vsel %vm1885_vm8, %v2178_v12, %v2177_v35  ;;  %v1012_v57 = vpop.xlane.xlu1 %1011  ;;  %v3299_v35 = vld [vmem:[%s5149_s0 + $0x358] sm:$0xff]   ;;  %v2004_v41 = vperm.slane %v1658_v21, %v4046_v46  ;;  %v1691_v42 = vunpack.c.h.b16 %v1355_v28  ;;  %v1942_v4 = vperm.slane %v1626_v43, %v4046_v46 }
 0x219   :  { %v2181_v15 = vsel %vm1889_vm9, %v2180_v52, %v2179_v9  ;;  %v1009_v36 = vpop.xlane.xlu0 %1008  ;;  %v2066_v26 = vperm.slane %v1690_v63, %v4046_v46  ;;  %v3112_v19 = vunpack.c.h.bf16 %v3299_v35  ;;  %vm5281_vm13 = vcmask 917312   ;;  %v3284_v63 = vld [vmem:[%s5149_s0 + $0x2e0] sm:$0xff]  }
 0x21a   :  { %v2183_v32 = vsel %vm5161_vm10, %v2182_v33, %v2181_v15  ;;  %v1386_v34 = vpack.c.bf16 %v1012_v57, %v1009_v36  ;;  %v2065_v29 = vsel %vm5281_vm13, %v2064_v49, %v2063_v56  ;;  %v3111_v10 = vunpack.c.l.bf16 %v3299_v35 }
 0x21b   :  { %v2185_v17 = vsel %vm5280_vm7, %v2184_v6, %v2183_v32  ;;  %vm5282_vm7 = vmmov %vm5281_vm13  ;;  %v2006_v43 = vperm.slane %v1659_v48, %v4083_v61  ;;  %v3080_v52 = vunpack.c.h.bf16 %v4623_v31  ;;  %v1944_v7 = vperm.slane %v1627_v24, %v4083_v61  ;;  %v3307_v24 = vld [vmem:[%s5149_s0 + $0x398] sm:$0xff]  }
 0x21c   :  { %v1752_v18 = vunpack.c.l.b16 %v1386_v34  ;;  %v1753_v47 = vunpack.c.h.b16 %v1386_v34  ;;  %v1941_v28 = vsel %vm5282_vm7, %v4264_v60, %v4270_v38  ;;  %vm5283_vm10 = vmmov %vm5282_vm7  ;;  %v2068_v16 = vperm.slane %v1691_v42, %v4083_v61 }
 0x21d   :  { %1134 = vadd.xlane.f32.xlu2 %v1133_v1  ;;  %1275 = vadd.xlane.f32.xlu1 %v1274_v14  ;;  %v2003_v33 = vsel %vm5283_vm10, %v2002_v20, %v2001_v8  ;;  %v2067_v60 = vsel %vm1909_vm14, %v2066_v26, %v2065_v29  ;;  %vm5284_vm13 = vmmov %vm5282_vm7  ;;  %v1184_v21 = vsel %vm538_vm0, %v3112_v19, 0.0  ;;  %v1943_v31 = vsel %vm1909_vm14, %v1942_v4, %v1941_v28  ;;  %v3315_v28 = vld [vmem:[%s5149_s0 + $0x3d8] sm:$0xff]  }
 0x21e   :  { %v2186_v30 = vperm.slane %v1752_v18, %v4021_v11  ;;  %v2188_v44 = vperm.slane %v1753_v47, %v4031_v3  ;;  %1272 = vadd.xlane.f32.xlu0 %v1271_v39  ;;  %v2005_v27 = vsel %vm1909_vm14, %v2004_v41, %v2003_v33  ;;  %v1181_v53 = vsel %vm538_vm0, %v3111_v10, 0.0 }
 0x21f   :  { %v2007_v57 = vsel %vm1913_vm15, %v2006_v43, %v2005_v27  ;;  %v1136_v5 = vsel %vm538_vm0, %v3080_v52, 0.0  ;;  %v2069_v15 = vsel %vm1913_vm15, %v2068_v16, %v2067_v60  ;;  %v3143_v34 = vunpack.c.l.bf16 %v3307_v24 }
 0x220   :  { %v1024_v12 = vpop.xlane.xlu2 %1023  ;;  %v2187_v6 = vsel %vm1901_vm12, %v2186_v30, %v2185_v17  ;;  %v1021_v58 = vpop.xlane.xlu1 %1020  ;;  %vm5285_vm10 = vcmask 1041409   ;;  %v3052_v56 = vunpack.c.h.bf16 %v3284_v63  ;;  %v3051_v39 = vunpack.c.l.bf16 %v3284_v63 }
 0x221   :  { %v2189_v38 = vsel %vm5284_vm13, %v2188_v44, %v2187_v6  ;;  %v1388_v8 = vpack.c.bf16 %v1024_v12, %v1021_v58  ;;  %v1018_v20 = vpop.xlane.xlu0 %1017  ;;  %vm5286_vm7 = vcmask 1042434   ;;  %v1229_v30 = vsel %vm538_vm0, %v3143_v34, 0.0 }
 0x222   :  { %v1387_v9 = vpack.c.bf16 %v1018_v20, %v1015_v51  ;;  %v1945_v51 = vsel %vm1913_vm15, %v1944_v7, %v1943_v31  ;;  %v1094_v10 = vsel %vm538_vm0, %v3052_v56, 0.0  ;;  %v3176_v7 = vunpack.c.h.bf16 %v3315_v28 }
 0x223   :  { %v1756_v49 = vunpack.c.l.b16 %v1388_v8  ;;  %v1757_v32 = vunpack.c.h.b16 %v1388_v8  ;;  %v2394_v14 = vsel %vm5285_vm10, %v2007_v57, %v1945_v51  ;;  %v3175_v6 = vunpack.c.l.bf16 %v3315_v28 }
 0x224   :  { %v1754_v36 = vunpack.c.l.b16 %v1387_v9  ;;  %v1755_v1 = vunpack.c.h.b16 %v1387_v9  ;;  %v2395_v41 = vsel %vm5286_vm7, %v2069_v15, %v2394_v14  ;;  %v3144_v60 = vunpack.c.h.bf16 %v3307_v24 }
 0x225   :  { %1185 = vadd.xlane.f32.xlu2 %v1184_v21  ;;  %1182 = vadd.xlane.f32.xlu1 %v1181_v53  ;;  %v2396_v47 = vsel %vm2384_vm11, %v4352_v37, %v2395_v41  ;;  %v2194_v4 = vperm.slane %v1756_v49, %v3910_v45  ;;  %v2195_v26 = vperm.slane %v1757_v32, %v3924_v13  ;;  %v1091_v37 = vsel %vm538_vm0, %v3051_v39, 0.0 }
 0x226   :  { %v2190_v35 = vperm.slane %v1754_v36, %v4046_v46  ;;  %v2192_v48 = vperm.slane %v1755_v1, %v4083_v61  ;;  %1137 = vadd.xlane.f32.xlu0 %v1136_v5  ;;  %vm5287_vm11 = vcmask 130112   ;;  %v1280_v9 = vsel %vm538_vm0, %v3176_v7, 0.0  ;;  %v3300_v5 = vld [vmem:[%s5149_s0 + $0x360] sm:$0xff]  }
 0x227   :  { %v2196_v52 = vsel %vm5287_vm11, %v2195_v26, %v2194_v4  ;;  %v1277_v57 = vsel %vm538_vm0, %v3175_v6, 0.0  ;;  %v1232_v24 = vsel %vm538_vm0, %v3144_v60, 0.0  ;;  %v3292_v36 = vld [vmem:[%s5149_s0 + $0x320] sm:$0xff]   ;;  %v3115_v49 = vunpack.c.l.bf16 %v3300_v5  ;;  %vm5289_vm13 = vmmov %vm5287_vm11 }
 0x228   :  { %v1033_v17 = vpop.xlane.xlu2 %1032  ;;  %v2191_v42 = vsel %vm1909_vm14, %v2190_v35, %v2189_v38  ;;  %v1030_v18 = vpop.xlane.xlu1 %1029  ;;  %v3084_v35 = vunpack.c.h.bf16 %v3292_v36  ;;  %vm5290_vm10 = vmmov %vm5287_vm11 }
 0x229   :  { %v2193_v19 = vsel %vm1913_vm15, %v2192_v48, %v2191_v42  ;;  %v1027_v29 = vpop.xlane.xlu0 %1026  ;;  %vm5291_vm7 = vmmov %vm5290_vm10 }
 0x22a   :  { %v1389_v44 = vpack.c.bf16 %v1030_v18, %v1027_v29  ;;  %v4709_v33 = vsel %vm2386_vm1, %v2193_v19, %v2396_v47  ;;  %v1187_v47 = vsel %vm538_vm0, %v3115_v49, 0.0  ;;  %v1142_v19 = vsel %vm538_vm0, %v3084_v35, 0.0  ;;  %v3285_v29 = vld [vmem:[%s5149_s0 + $0x2e8] sm:$0xff]   ;;  %vm5292_vm11 = vmmov %vm5291_vm7 }
 0x22b   :  { %vm5288_vm1 = vcmask 523712  }
 0x22c   :  { %v1758_v43 = vunpack.c.l.b16 %v1389_v44  ;;  %v1759_v12 = vunpack.c.h.b16 %v1389_v44 }
 0x22d   :  { %1230 = vadd.xlane.f32.xlu2 %v1229_v30  ;;  %1095 = vadd.xlane.f32.xlu1 %v1094_v10 }
 0x22e   :  { %v2197_v27 = vperm.slane %v1758_v43, %v3935_v54  ;;  %v2199_v16 = vperm.slane %v1759_v12, %v3948_v55  ;;  %1092 = vadd.xlane.f32.xlu0 %v1091_v37  ;;  %v3055_v37 = vunpack.c.l.bf16 %v3285_v29 }
 0x230   :  { %v1042_v58 = vpop.xlane.xlu2 %1041  ;;  %v2198_v38 = vsel %vm1861_vm2, %v2197_v27, %v2196_v52  ;;  %v1039_v8 = vpop.xlane.xlu1 %1038  ;;  %v3329_v52 = vld [vmem:[%s5149_s0 + $0x2a8] sm:$0xff]  }
 0x231   :  { %v2200_v20 = vsel %vm1865_vm3, %v2199_v16, %v2198_v38  ;;  %v1391_v21 = vpack.c.bf16 %v1042_v58, %v1039_v8  ;;  %v1036_v31 = vpop.xlane.xlu0 %1035  ;;  %v3024_v7 = vunpack.c.h.bf16 %v3329_v52  ;;  %v3116_v16 = vunpack.c.h.bf16 %v3300_v5 }
 0x232   :  { %v1390_v53 = vpack.c.bf16 %v1036_v31, %v1033_v17  ;;  %v3083_v17 = vunpack.c.l.bf16 %v3292_v36  ;;  %v1097_v8 = vsel %vm538_vm0, %v3055_v37, 0.0  ;;  %v3308_v31 = vld [vmem:[%s5149_s0 + $0x3a0] sm:$0xff]  }
 0x233   :  { %v1762_v63 = vunpack.c.l.b16 %v1391_v21  ;;  %v1763_v15 = vunpack.c.h.b16 %v1391_v21  ;;  %v1052_v21 = vsel %vm538_vm0, %v3024_v7, 0.0  ;;  %v3301_v7 = vld [vmem:[%s5149_s0 + $0x368] sm:$0xff]  }
 0x234   :  { %v1760_v1 = vunpack.c.l.b16 %v1390_v53  ;;  %v1761_v51 = vunpack.c.h.b16 %v1390_v53  ;;  %v1139_v44 = vsel %vm538_vm0, %v3083_v17, 0.0  ;;  %v3148_v53 = vunpack.c.h.bf16 %v3308_v31 }
 0x235   :  { %1281 = vadd.xlane.f32.xlu2 %v1280_v9  ;;  %1278 = vadd.xlane.f32.xlu1 %v1277_v57  ;;  %v2205_v32 = vperm.slane %v1762_v63, %v3966_v25  ;;  %v2207_v48 = vperm.slane %v1763_v15, %v3977_v0  ;;  %v1190_v9 = vsel %vm538_vm0, %v3116_v16, 0.0  ;;  %v3147_v57 = vunpack.c.l.bf16 %v3308_v31 }
 0x236   :  { %v2201_v34 = vperm.slane %v1760_v1, %v3961_v59  ;;  %v2203_v14 = vperm.slane %v1761_v51, %v3971_v40  ;;  %1233 = vadd.xlane.f32.xlu0 %v1232_v24  ;;  %v3056_v24 = vunpack.c.h.bf16 %v3285_v29  ;;  %v1238_v49 = vsel %vm538_vm0, %v3148_v53, 0.0 }
 0x237   :  { %v3120_v16 = vunpack.c.h.bf16 %v3301_v7 }
 0x238   :  { %v4730_v56 = vpop.xlane.xlu2 %1050  ;;  %v2202_v39 = vsel %vm1869_vm4, %v2201_v34, %v2200_v20  ;;  %v1048_v41 = vpop.xlane.xlu1 %1047  ;;  %v1235_v34 = vsel %vm538_vm0, %v3147_v57, 0.0  ;;  %v1100_v17 = vsel %vm538_vm0, %v3056_v24, 0.0 }
 0x239   :  { %v2204_v42 = vsel %vm1873_vm5, %v2203_v14, %v2202_v39  ;;  %v1045_v18 = vpop.xlane.xlu0 %1044  ;;  %v3293_v14 = vld [vmem:[%s5149_s0 + $0x328] sm:$0xff]   ;;  %v3316_v39 = vld [vmem:[%s5149_s0 + $0x3e0] sm:$0xff]  }
 0x23a   :  { %v2206_v4 = vsel %vm1877_vm6, %v2205_v32, %v2204_v42  ;;  %v1392_v26 = vpack.c.bf16 %v1048_v41, %v1045_v18  ;;  %v3087_v18 = vunpack.c.l.bf16 %v3293_v14 }
 0x23b   :  { %v2208_v30 = vsel %vm5288_vm1, %v2207_v48, %v2206_v4  ;;  %vm5293_vm1 = vmmov %vm5291_vm7 }
 0x23c   :  { %v1764_v10 = vunpack.c.l.b16 %v1392_v26  ;;  %v1765_v28 = vunpack.c.h.b16 %v1392_v26  ;;  %v3180_v26 = vunpack.c.h.bf16 %v3316_v39 }
 0x23d   :  { %1188 = vadd.xlane.f32.xlu2 %v1187_v47  ;;  %1143 = vadd.xlane.f32.xlu1 %v1142_v19 }
 0x23e   :  { %v2209_v43 = vperm.slane %v1764_v10, %v3980_v23  ;;  %v2211_v12 = vperm.slane %v1765_v28, %v3998_v50  ;;  %1140 = vadd.xlane.f32.xlu0 %v1139_v44  ;;  %v1286_v52 = vsel %vm538_vm0, %v3180_v26, 0.0 }
 0x240   :  { %v1075_v27 = vpop.xlane.xlu2 %1074  ;;  %v2210_v6 = vsel %vm1885_vm8, %v2209_v43, %v2208_v30  ;;  %v1072_v58 = vpop.xlane.xlu1 %1071  ;;  %v3179_v30 = vunpack.c.l.bf16 %v3316_v39  ;;  %v1145_v43 = vsel %vm538_vm0, %v3087_v18, 0.0 }
 0x241   :  { %v4749_v60 = vsel %vm1889_vm9, %v2211_v12, %v2210_v6  ;;  %v1069_v38 = vpop.xlane.xlu0 %1068  ;;  %v3119_v6 = vunpack.c.l.bf16 %v3301_v7 }
 0x242   :  { %v1396_v20 = vpack.c.bf16 %v1072_v58, %v1069_v38 }
 0x244   :  { %v1772_v5 = vunpack.c.l.b16 %v1396_v20  ;;  %v1773_v63 = vunpack.c.h.b16 %v1396_v20 }
 0x245   :  { %1098 = vadd.xlane.f32.xlu2 %v1097_v8  ;;  %1053 = vadd.xlane.f32.xlu1 %v1052_v21  ;;  %v3088_v8 = vunpack.c.h.bf16 %v3293_v14 }
 0x246   :  { %1191 = vadd.xlane.f32.xlu0 %v1190_v9  ;;  %v2225_v35 = vperm.slane %v1772_v5, %v3910_v45  ;;  %v2226_v48 = vperm.slane %v1773_v63, %v3924_v13  ;;  %v1196_v5 = vsel %vm538_vm0, %v3120_v16, 0.0  ;;  %v1193_v63 = vsel %vm538_vm0, %v3119_v6, 0.0  ;;  %v3309_v6 = vld [vmem:[%s5149_s0 + $0x3a8] sm:$0xff]  }
 0x248   :  { %v1120_v15 = vpop.xlane.xlu2 %1119  ;;  %v1117_v36 = vpop.xlane.xlu1 %1116  ;;  %v2227_v19 = vsel %vm5289_vm13, %v2226_v48, %v2225_v35  ;;  %v3278_v35 = vld [vmem:[%s5149_s0 + $0x2b0] sm:$0xff]   ;;  %vm5300_vm13 = vcmask 786112  }
 0x249   :  { %v1404_v1 = vpack.c.bf16 %v1120_v15, %v1117_v36  ;;  %v1078_v51 = vpop.xlane.xlu0 %1077  ;;  %v3028_v26 = vunpack.c.h.bf16 %v3278_v35 }
 0x24a   :  { %v1397_v32 = vpack.c.bf16 %v1078_v51, %v1075_v27  ;;  %v1283_v27 = vsel %vm538_vm0, %v3179_v30, 0.0  ;;  %v1148_v51 = vsel %vm538_vm0, %v3088_v8, 0.0  ;;  %v3151_v8 = vunpack.c.l.bf16 %v3309_v6 }
 0x24b   :  { %v1788_v20 = vunpack.c.l.b16 %v1404_v1  ;;  %v1789_v21 = vunpack.c.h.b16 %v1404_v1  ;;  %v1058_v16 = vsel %vm538_vm0, %v3028_v26, 0.0 }
 0x24c   :  { %v1774_v41 = vunpack.c.l.b16 %v1397_v32  ;;  %v1775_v42 = vunpack.c.h.b16 %v1397_v32 }
 0x24d   :  { %1239 = vadd.xlane.f32.xlu2 %v1238_v49  ;;  %1236 = vadd.xlane.f32.xlu1 %v1235_v34  ;;  %v3286_v49 = vld [vmem:[%s5149_s0 + $0x2f0] sm:$0xff]   ;;  %v2256_v1 = vperm.slane %v1788_v20, %v3910_v45  ;;  %v2257_v32 = vperm.slane %v1789_v21, %v3924_v13 }
 0x24e   :  { %v2228_v47 = vperm.slane %v1774_v41, %v3935_v54  ;;  %v2230_v4 = vperm.slane %v1775_v42, %v3948_v55  ;;  %1101 = vadd.xlane.f32.xlu0 %v1100_v17  ;;  %v3059_v42 = vunpack.c.l.bf16 %v3286_v49  ;;  %v3060_v21 = vunpack.c.h.bf16 %v3286_v49  ;;  %v3317_v49 = vld [vmem:[%s5149_s0 + $0x3e8] sm:$0xff]  }
 0x250   :  { %v1123_v29 = vpop.xlane.xlu2 %1122  ;;  %v2229_v44 = vsel %vm1861_vm2, %v2228_v47, %v2227_v19  ;;  %v1168_v10 = vpop.xlane.xlu1 %1167  ;;  %v2258_v19 = vsel %vm5291_vm7, %v2257_v32, %v2256_v1  ;;  %v1103_v7 = vsel %vm538_vm0, %v3059_v42, 0.0  ;;  %vm5302_vm7 = vmmov %vm5300_vm13 }
 0x251   :  { %v4773_v28 = vsel %vm1865_vm3, %v2230_v4, %v2229_v44  ;;  %v1165_v37 = vpop.xlane.xlu0 %1164  ;;  %v3027_v44 = vunpack.c.l.bf16 %v3278_v35 }
 0x252   :  { %v1412_v12 = vpack.c.bf16 %v1168_v10, %v1165_v37 }
 0x254   :  { %v1804_v58 = vunpack.c.l.b16 %v1412_v12  ;;  %v1805_v38 = vunpack.c.h.b16 %v1412_v12 }
 0x255   :  { %1146 = vadd.xlane.f32.xlu2 %v1145_v43  ;;  %1287 = vadd.xlane.f32.xlu1 %v1286_v52 }
 0x256   :  { %1284 = vadd.xlane.f32.xlu0 %v1283_v27  ;;  %v2287_v15 = vperm.slane %v1804_v58, %v3910_v45  ;;  %v2288_v24 = vperm.slane %v1805_v38, %v3924_v13  ;;  %v1055_v58 = vsel %vm538_vm0, %v3027_v44, 0.0  ;;  %v3152_v38 = vunpack.c.h.bf16 %v3309_v6 }
 0x258   :  { %v1174_v31 = vpop.xlane.xlu2 %1173  ;;  %v1171_v9 = vpop.xlane.xlu1 %1170  ;;  %v2289_v18 = vsel %vm5290_vm10, %v2288_v24, %v2287_v15  ;;  %v3294_v15 = vld [vmem:[%s5149_s0 + $0x330] sm:$0xff]  }
 0x259   :  { %v1413_v53 = vpack.c.bf16 %v1174_v31, %v1171_v9  ;;  %v1126_v57 = vpop.xlane.xlu0 %1125  ;;  %v3092_v6 = vunpack.c.h.bf16 %v3294_v15 }
 0x25a   :  { %v1405_v36 = vpack.c.bf16 %v1126_v57, %v1123_v29  ;;  %v1244_v57 = vsel %vm538_vm0, %v3152_v38, 0.0 }
 0x25b   :  { %v1806_v34 = vunpack.c.l.b16 %v1413_v53  ;;  %v1807_v14 = vunpack.c.h.b16 %v1413_v53 }
 0x25c   :  { %v1790_v48 = vunpack.c.l.b16 %v1405_v36  ;;  %v1791_v17 = vunpack.c.h.b16 %v1405_v36 }
 0x25d   :  { %1197 = vadd.xlane.f32.xlu2 %v1196_v5  ;;  %v2290_v39 = vperm.slane %v1806_v34, %v3935_v54  ;;  %v2292_v41 = vperm.slane %v1807_v14, %v3948_v55  ;;  %1194 = vadd.xlane.f32.xlu1 %v1193_v63  ;;  %v1241_v63 = vsel %vm538_vm0, %v3151_v8, 0.0  ;;  %v3091_v34 = vunpack.c.l.bf16 %v3294_v15 }
 0x25e   :  { %v2259_v47 = vperm.slane %v1790_v48, %v3935_v54  ;;  %v2261_v4 = vperm.slane %v1791_v17, %v3948_v55  ;;  %1149 = vadd.xlane.f32.xlu0 %v1148_v51  ;;  %v1106_v51 = vsel %vm538_vm0, %v3060_v21, 0.0  ;;  %v3184_v14 = vunpack.c.h.bf16 %v3317_v49 }
 0x25f   :  { %v2291_v29 = vsel %vm1861_vm2, %v2290_v39, %v2289_v18  ;;  %v1154_v15 = vsel %vm538_vm0, %v3092_v6, 0.0 }
 0x260   :  { %v1261_v30 = vpop.xlane.xlu2 %1260  ;;  %v4802_v10 = vsel %vm1865_vm3, %v2292_v41, %v2291_v29  ;;  %v2260_v37 = vsel %vm1861_vm2, %v2259_v47, %v2258_v19  ;;  %v1216_v43 = vpop.xlane.xlu1 %1215  ;;  %v3183_v41 = vunpack.c.l.bf16 %v3317_v49  ;;  %v1292_v19 = vsel %vm538_vm0, %v3184_v14, 0.0  ;;  %v3302_v29 = vld [vmem:[%s5149_s0 + $0x370] sm:$0xff]  }
 0x261   :  { %v4806_v12 = vsel %vm1865_vm3, %v2261_v4, %v2260_v37  ;;  %v1213_v52 = vpop.xlane.xlu0 %1212  ;;  %v1151_v4 = vsel %vm538_vm0, %v3091_v34, 0.0  ;;  %v3279_v34 = vld [vmem:[%s5149_s0 + $0x2b8] sm:$0xff]  }
 0x262   :  { %v1420_v27 = vpack.c.bf16 %v1216_v43, %v1213_v52  ;;  %v1289_v44 = vsel %vm538_vm0, %v3183_v41, 0.0  ;;  %v3124_v52 = vunpack.c.h.bf16 %v3302_v29 }
 0x264   :  { %v1820_v35 = vunpack.c.l.b16 %v1420_v27  ;;  %v1821_v48 = vunpack.c.h.b16 %v1420_v27 }
 0x265   :  { %1104 = vadd.xlane.f32.xlu2 %v1103_v7  ;;  %1059 = vadd.xlane.f32.xlu1 %v1058_v16  ;;  %v3123_v16 = vunpack.c.l.bf16 %v3302_v29 }
 0x266   :  { %1056 = vadd.xlane.f32.xlu0 %v1055_v58 }
 0x268   :  { %v1084_v20 = vpop.xlane.xlu2 %1083  ;;  %v1081_v31 = vpop.xlane.xlu1 %1080 }
 0x269   :  { %v1398_v9 = vpack.c.bf16 %v1084_v20, %v1081_v31  ;;  %v1264_v53 = vpop.xlane.xlu0 %1263 }
 0x26a   :  { %v1428_v5 = vpack.c.bf16 %v1264_v53, %v1261_v30  ;;  %v2318_v30 = vperm.slane %v1820_v35, %v3910_v45 }
 0x26b   :  { %v1776_v24 = vunpack.c.l.b16 %v1398_v9  ;;  %v1777_v36 = vunpack.c.h.b16 %v1398_v9 }
 0x26c   :  { %v1836_v38 = vunpack.c.l.b16 %v1428_v5  ;;  %v1837_v8 = vunpack.c.h.b16 %v1428_v5  ;;  %v3287_v5 = vld [vmem:[%s5149_s0 + $0x2f8] sm:$0xff]  }
 0x26d   :  { %1245 = vadd.xlane.f32.xlu2 %v1244_v57  ;;  %v2232_v1 = vperm.slane %v1776_v24, %v3961_v59  ;;  %v2234_v32 = vperm.slane %v1777_v36, %v3971_v40  ;;  %1242 = vadd.xlane.f32.xlu1 %v1241_v63  ;;  %v1202_v63 = vsel %vm538_vm0, %v3124_v52, 0.0  ;;  %v1199_v36 = vsel %vm538_vm0, %v3123_v16, 0.0 }
 0x26e   :  { %1107 = vadd.xlane.f32.xlu0 %v1106_v51  ;;  %v2349_v51 = vperm.slane %v1836_v38, %v3910_v45  ;;  %v2350_v49 = vperm.slane %v1837_v8, %v3924_v13  ;;  %v3064_v8 = vunpack.c.h.bf16 %v3287_v5 }
 0x26f   :  { %v2233_v17 = vsel %vm1869_vm4, %v2232_v1, %v4773_v28  ;;  %v2319_v28 = vperm.slane %v1821_v48, %v3924_v13  ;;  %v3032_v13 = vunpack.c.h.bf16 %v3279_v34 }
 0x270   :  { %v1267_v39 = vpop.xlane.xlu2 %1266  ;;  %v4828_v42 = vsel %vm1873_vm5, %v2234_v32, %v2233_v17  ;;  %v1222_v18 = vpop.xlane.xlu1 %1221 }
 0x271   :  { %v1219_v47 = vpop.xlane.xlu0 %1218  ;;  %v2320_v58 = vsel %vm5292_vm11, %v2319_v28, %v2318_v30 }
 0x272   :  { %v1421_v26 = vpack.c.bf16 %v1222_v18, %v1219_v47  ;;  %v2351_v18 = vsel %vm5293_vm1, %v2350_v49, %v2349_v51  ;;  %v1112_v49 = vsel %vm538_vm0, %v3064_v8, 0.0  ;;  %vm5306_vm1 = vmmov %vm5302_vm7 }
 0x274   :  { %v1822_v37 = vunpack.c.l.b16 %v1421_v26  ;;  %v1823_v43 = vunpack.c.h.b16 %v1421_v26  ;;  %v3031_v26 = vunpack.c.l.bf16 %v3279_v34 }
 0x275   :  { %1152 = vadd.xlane.f32.xlu2 %v1151_v4  ;;  %1293 = vadd.xlane.f32.xlu1 %v1292_v19 }
 0x276   :  { %v2321_v7 = vperm.slane %v1822_v37, %v3935_v54  ;;  %v2323_v27 = vperm.slane %v1823_v43, %v3948_v55  ;;  %1290 = vadd.xlane.f32.xlu0 %v1289_v44  ;;  %v1064_v37 = vsel %vm538_vm0, %v3032_v13, 0.0  ;;  %v1061_v43 = vsel %vm538_vm0, %v3031_v26, 0.0 }
 0x278   :  { %v1132_v20 = vpop.xlane.xlu2 %1131  ;;  %v2322_v21 = vsel %vm1861_vm2, %v2321_v7, %v2320_v58  ;;  %v1129_v31 = vpop.xlane.xlu1 %1128 }
 0x279   :  { %v4843_v9 = vsel %vm1865_vm3, %v2323_v27, %v2322_v21  ;;  %v1406_v53 = vpack.c.bf16 %v1132_v20, %v1129_v31  ;;  %v1270_v57 = vpop.xlane.xlu0 %1269 }
 0x27a   :  { %v1429_v24 = vpack.c.bf16 %v1270_v57, %v1267_v39  ;;  %v3063_v39 = vunpack.c.l.bf16 %v3287_v5 }
 0x27b   :  { %v1792_v1 = vunpack.c.l.b16 %v1406_v53  ;;  %v1793_v32 = vunpack.c.h.b16 %v1406_v53 }
 0x27c   :  { %v1838_v14 = vunpack.c.l.b16 %v1429_v24  ;;  %v1839_v35 = vunpack.c.h.b16 %v1429_v24 }
 0x27d   :  { %1203 = vadd.xlane.f32.xlu2 %v1202_v63  ;;  %v2263_v48 = vperm.slane %v1792_v1, %v3961_v59  ;;  %v2265_v17 = vperm.slane %v1793_v32, %v3971_v40  ;;  %1200 = vadd.xlane.f32.xlu1 %v1199_v36 }
 0x27e   :  { %v2352_v41 = vperm.slane %v1838_v14, %v3935_v54  ;;  %v2354_v45 = vperm.slane %v1839_v35, %v3948_v55  ;;  %1155 = vadd.xlane.f32.xlu0 %v1154_v15  ;;  %v1109_v55 = vsel %vm538_vm0, %v3063_v39, 0.0  ;;  %v3295_v15 = vld [vmem:[%s5149_s0 + $0x338] sm:$0xff]  }
 0x27f   :  { %v2264_v47 = vsel %vm1869_vm4, %v2263_v48, %v4806_v12  ;;  %v3310_v12 = vld [vmem:[%s5149_s0 + $0x3b0] sm:$0xff]   ;;  %v3095_v35 = vunpack.c.l.bf16 %v3295_v15 }
 0x280   :  { %v1087_v4 = vpop.xlane.xlu2 %1086  ;;  %v4864_v19 = vsel %vm1873_vm5, %v2265_v17, %v2264_v47  ;;  %v2353_v29 = vsel %vm1861_vm2, %v2352_v41, %v2351_v18  ;;  %v1180_v30 = vpop.xlane.xlu1 %1179  ;;  %v3156_v27 = vunpack.c.h.bf16 %v3310_v12  ;;  %v3155_v58 = vunpack.c.l.bf16 %v3310_v12 }
 0x281   :  { %v4868_v28 = vsel %vm1865_vm3, %v2354_v45, %v2353_v29  ;;  %v1177_v54 = vpop.xlane.xlu0 %1176  ;;  %vm5294_vm2 = vcmask 523712  }
 0x282   :  { %v1414_v44 = vpack.c.bf16 %v1180_v30, %v1177_v54  ;;  %v1250_v63 = vsel %vm538_vm0, %v3156_v27, 0.0  ;;  %v1247_v36 = vsel %vm538_vm0, %v3155_v58, 0.0  ;;  %v1157_v30 = vsel %vm538_vm0, %v3095_v35, 0.0  ;;  %vm5295_vm3 = vmmov %vm5294_vm2 }
 0x284   :  { %v1808_v52 = vunpack.c.l.b16 %v1414_v44  ;;  %v1809_v7 = vunpack.c.h.b16 %v1414_v44 }
 0x285   :  { %1110 = vadd.xlane.f32.xlu2 %v1109_v55  ;;  %1065 = vadd.xlane.f32.xlu1 %v1064_v37 }
 0x286   :  { %v2294_v16 = vperm.slane %v1808_v52, %v3961_v59  ;;  %v2296_v6 = vperm.slane %v1809_v7, %v3971_v40  ;;  %1062 = vadd.xlane.f32.xlu0 %v1061_v43 }
 0x288   :  { %v1228_v38 = vpop.xlane.xlu2 %1227  ;;  %v2295_v20 = vsel %vm1869_vm4, %v2294_v16, %v4802_v10  ;;  %v1225_v21 = vpop.xlane.xlu1 %1224  ;;  %v3318_v10 = vld [vmem:[%s5149_s0 + $0x3f0] sm:$0xff]   ;;  %v3096_v16 = vunpack.c.h.bf16 %v3295_v15 }
 0x289   :  { %v4881_v31 = vsel %vm1873_vm5, %v2296_v6, %v2295_v20  ;;  %v1422_v53 = vpack.c.bf16 %v1228_v38, %v1225_v21  ;;  %v1090_v57 = vpop.xlane.xlu0 %1089  ;;  %v3188_v39 = vunpack.c.h.bf16 %v3318_v10  ;;  %v3187_v13 = vunpack.c.l.bf16 %v3318_v10 }
 0x28a   :  { %v1399_v24 = vpack.c.bf16 %v1090_v57, %v1087_v4 }
 0x28b   :  { %v1824_v51 = vunpack.c.l.b16 %v1422_v53  ;;  %v1825_v5 = vunpack.c.h.b16 %v1422_v53  ;;  %v1298_v55 = vsel %vm538_vm0, %v3188_v39, 0.0  ;;  %v1295_v44 = vsel %vm538_vm0, %v3187_v13, 0.0 }
 0x28c   :  { %v1778_v1 = vunpack.c.l.b16 %v1399_v24  ;;  %v1779_v32 = vunpack.c.h.b16 %v1399_v24  ;;  %v1160_v24 = vsel %vm538_vm0, %v3096_v16, 0.0 }
 0x28d   :  { %1251 = vadd.xlane.f32.xlu2 %v1250_v63  ;;  %v2325_v34 = vperm.slane %v1824_v51, %v3961_v59  ;;  %v2327_v14 = vperm.slane %v1825_v5, %v3971_v40  ;;  %1248 = vadd.xlane.f32.xlu1 %v1247_v36 }
 0x28e   :  { %v2236_v48 = vperm.slane %v1778_v1, %v3966_v25  ;;  %v2238_v17 = vperm.slane %v1779_v32, %v3977_v0  ;;  %1113 = vadd.xlane.f32.xlu0 %v1112_v49 }
 0x28f   :  { %v2326_v41 = vsel %vm1869_vm4, %v2325_v34, %v4843_v9  ;;  %v3303_v9 = vld [vmem:[%s5149_s0 + $0x378] sm:$0xff]  }
 0x290   :  { %v1135_v45 = vpop.xlane.xlu2 %1134  ;;  %v4899_v18 = vsel %vm1873_vm5, %v2327_v14, %v2326_v41  ;;  %v2237_v47 = vsel %vm1877_vm6, %v2236_v48, %v4828_v42  ;;  %v1276_v4 = vpop.xlane.xlu1 %1275  ;;  %v3128_v42 = vunpack.c.h.bf16 %v3303_v9  ;;  %v3127_v7 = vunpack.c.l.bf16 %v3303_v9 }
 0x291   :  { %v4904_v26 = vsel %vm5294_vm2, %v2238_v17, %v2237_v47  ;;  %v1273_v29 = vpop.xlane.xlu0 %1272 }
 0x292   :  { %v1430_v54 = vpack.c.bf16 %v1276_v4, %v1273_v29  ;;  %v1208_v21 = vsel %vm538_vm0, %v3128_v42, 0.0  ;;  %v1205_v57 = vsel %vm538_vm0, %v3127_v7, 0.0 }
 0x294   :  { %v1840_v37 = vunpack.c.l.b16 %v1430_v54  ;;  %v1841_v12 = vunpack.c.h.b16 %v1430_v54 }
 0x295   :  { %1158 = vadd.xlane.f32.xlu2 %v1157_v30  ;;  %1299 = vadd.xlane.f32.xlu1 %v1298_v55 }
 0x296   :  { %v2356_v43 = vperm.slane %v1840_v37, %v3961_v59  ;;  %v2358_v52 = vperm.slane %v1841_v12, %v3971_v40  ;;  %1296 = vadd.xlane.f32.xlu0 %v1295_v44  ;;  %v3319_v59 = vld [vmem:[%s5149_s0 + $0x3f8] sm:$0xff]  }
 0x297   :  { %v3191_v49 = vunpack.c.l.bf16 %v3319_v59  ;;  %v3192_v9 = vunpack.c.h.bf16 %v3319_v59 }
 0x298   :  { %v1186_v27 = vpop.xlane.xlu2 %1185  ;;  %v2357_v6 = vsel %vm1869_vm4, %v2356_v43, %v4868_v28  ;;  %v1183_v58 = vpop.xlane.xlu1 %1182  ;;  %v3311_v28 = vld [vmem:[%s5149_s0 + $0x3b8] sm:$0xff]   ;;  %vm5296_vm4 = vmmov %vm5294_vm2 }
 0x299   :  { %v2359_v38 = vsel %vm1873_vm5, %v2358_v52, %v2357_v6  ;;  %v1415_v8 = vpack.c.bf16 %v1186_v27, %v1183_v58  ;;  %v1138_v20 = vpop.xlane.xlu0 %1137  ;;  %v3160_v32 = vunpack.c.h.bf16 %v3311_v28  ;;  %v3159_v35 = vunpack.c.l.bf16 %v3311_v28  ;;  %vm5297_vm5 = vmmov %vm5294_vm2 }
 0x29a   :  { %v1407_v53 = vpack.c.bf16 %v1138_v20, %v1135_v45  ;;  %v1301_v13 = vsel %vm538_vm0, %v3191_v49, 0.0  ;;  %v1304_v16 = vsel %vm538_vm0, %v3192_v9, 0.0 }
 0x29b   :  { %v1810_v40 = vunpack.c.l.b16 %v1415_v8  ;;  %v1811_v63 = vunpack.c.h.b16 %v1415_v8  ;;  %v1256_v4 = vsel %vm538_vm0, %v3160_v32, 0.0  ;;  %v1253_v29 = vsel %vm538_vm0, %v3159_v35, 0.0  ;;  %vm5298_vm0 = vmmov %vm5294_vm2 }
 0x29c   :  { %v1794_v36 = vunpack.c.l.b16 %v1407_v53  ;;  %v1795_v15 = vunpack.c.h.b16 %v1407_v53  ;;  %vm5307_vm2 = vcmask 917312  }
 0x29d   :  { %1209 = vadd.xlane.f32.xlu2 %v1208_v21  ;;  %v2298_v51 = vperm.slane %v1810_v40, %v3966_v25  ;;  %v2300_v5 = vperm.slane %v1811_v63, %v3977_v0  ;;  %1206 = vadd.xlane.f32.xlu1 %v1205_v57 }
 0x29e   :  { %v2267_v10 = vperm.slane %v1794_v36, %v3966_v25  ;;  %v2269_v1 = vperm.slane %v1795_v15, %v3977_v0  ;;  %1161 = vadd.xlane.f32.xlu0 %v1160_v24 }
 0x29f   :  { %v2299_v34 = vsel %vm1877_vm6, %v2298_v51, %v4881_v31 }
 0x2a0   :  { %v1231_v14 = vpop.xlane.xlu2 %1230  ;;  %v4933_v48 = vsel %vm5295_vm3, %v2300_v5, %v2299_v34  ;;  %v2268_v17 = vsel %vm1877_vm6, %v2267_v10, %v4864_v19  ;;  %v1096_v39 = vpop.xlane.xlu1 %1095  ;;  %vm2388_vm3 = vcmask 1045509  }
 0x2a1   :  { %v2270_v41 = vsel %vm5296_vm4, %v2269_v1, %v2268_v17  ;;  %v1093_v45 = vpop.xlane.xlu0 %1092  ;;  %vm5308_vm4 = vmmov %vm5307_vm2 }
 0x2a2   :  { %v1400_v47 = vpack.c.bf16 %v1096_v39, %v1093_v45 }
 0x2a4   :  { %v1780_v31 = vunpack.c.l.b16 %v1400_v47  ;;  %v1781_v30 = vunpack.c.h.b16 %v1400_v47 }
 0x2a5   :  { %1302 = vadd.xlane.f32.xlu2 %v1301_v13  ;;  %1257 = vadd.xlane.f32.xlu1 %v1256_v4 }
 0x2a6   :  { %v2240_v54 = vperm.slane %v1780_v31, %v3980_v23  ;;  %v2242_v55 = vperm.slane %v1781_v30, %v3998_v50  ;;  %1254 = vadd.xlane.f32.xlu0 %v1253_v29 }
 0x2a8   :  { %v1282_v19 = vpop.xlane.xlu2 %1281  ;;  %v2241_v44 = vsel %vm1885_vm8, %v2240_v54, %v4904_v26  ;;  %v1279_v37 = vpop.xlane.xlu1 %1278 }
 0x2a9   :  { %v2243_v12 = vsel %vm1889_vm9, %v2242_v55, %v2241_v44  ;;  %v1431_v42 = vpack.c.bf16 %v1282_v19, %v1279_v37  ;;  %v1234_v43 = vpop.xlane.xlu0 %1233 }
 0x2aa   :  { %v1423_v52 = vpack.c.bf16 %v1234_v43, %v1231_v14 }
 0x2ab   :  { %v1842_v7 = vunpack.c.l.b16 %v1431_v42  ;;  %v1843_v27 = vunpack.c.h.b16 %v1431_v42 }
 0x2ac   :  { %v1826_v6 = vunpack.c.l.b16 %v1423_v52  ;;  %v1827_v58 = vunpack.c.h.b16 %v1423_v52 }
 0x2ad   :  { %v2360_v8 = vperm.slane %v1842_v7, %v3966_v25  ;;  %v2362_v20 = vperm.slane %v1843_v27, %v3977_v0 }
 0x2ae   :  { %v2329_v21 = vperm.slane %v1826_v6, %v3966_v25  ;;  %v2331_v26 = vperm.slane %v1827_v58, %v3977_v0  ;;  %1305 = vadd.xlane.f32.xlu0 %v1304_v16 }
 0x2af   :  { %v2361_v53 = vsel %vm1877_vm6, %v2360_v8, %v2359_v38 }
 0x2b0   :  { %v1189_v57 = vpop.xlane.xlu2 %1188  ;;  %v2363_v59 = vsel %vm5297_vm5, %v2362_v20, %v2361_v53  ;;  %v2330_v40 = vsel %vm1877_vm6, %v2329_v21, %v4899_v18  ;;  %v1144_v63 = vpop.xlane.xlu1 %1143  ;;  %vm5299_vm6 = vcmask 720512  }
 0x2b1   :  { %v2332_v24 = vsel %vm5298_vm0, %v2331_v26, %v2330_v40  ;;  %v1141_v28 = vpop.xlane.xlu0 %1140  ;;  %vm5301_vm10 = vmmov %vm5299_vm6 }
 0x2b2   :  { %v1408_v36 = vpack.c.bf16 %v1144_v63, %v1141_v28  ;;  %vm5305_vm11 = vmmov %vm5299_vm6 }
 0x2b3   :  { %vm5309_vm5 = vmmov %vm5299_vm6 }
 0x2b4   :  { %v1796_v15 = vunpack.c.l.b16 %v1408_v36  ;;  %v1797_v51 = vunpack.c.h.b16 %v1408_v36  ;;  %vm5310_vm0 = vmmov %vm5307_vm2 }
 0x2b6   :  { %v2271_v25 = vperm.slane %v1796_v15, %v3980_v23  ;;  %v2273_v0 = vperm.slane %v1797_v51, %v3998_v50 }
 0x2b8   :  { %v1099_v5 = vpop.xlane.xlu2 %1098  ;;  %v2272_v38 = vsel %vm1885_vm8, %v2271_v25, %v2270_v41  ;;  %v1054_v49 = vpop.xlane.xlu1 %1053 }
 0x2b9   :  { %v2274_v10 = vsel %vm1889_vm9, %v2273_v0, %v2272_v38  ;;  %v1393_v1 = vpack.c.bf16 %v1054_v49, %v4730_v56  ;;  %v1192_v18 = vpop.xlane.xlu0 %1191 }
 0x2ba   :  { %v1416_v32 = vpack.c.bf16 %v1192_v18, %v1189_v57 }
 0x2bb   :  { %v1766_v34 = vunpack.c.l.b16 %v1393_v1  ;;  %v1767_v14 = vunpack.c.h.b16 %v1393_v1 }
 0x2bc   :  { %v1812_v35 = vunpack.c.l.b16 %v1416_v32  ;;  %v1813_v17 = vunpack.c.h.b16 %v1416_v32 }
 0x2bd   :  { %v2213_v39 = vperm.slane %v1766_v34, %v4006_v22  ;;  %v2215_v45 = vperm.slane %v1767_v14, %v4009_v2 }
 0x2be   :  { %v2302_v13 = vperm.slane %v1812_v35, %v3980_v23  ;;  %v2304_v47 = vperm.slane %v1813_v17, %v3998_v50 }
 0x2bf   :  { %v2214_v41 = vsel %vm5299_vm6, %v2213_v39, %v4749_v60 }
 0x2c0   :  { %v1240_v4 = vpop.xlane.xlu2 %1239  ;;  %v4968_v56 = vsel %vm5300_vm13, %v2215_v45, %v2214_v41  ;;  %v2303_v29 = vsel %vm1885_vm8, %v2302_v13, %v4933_v48  ;;  %v1237_v31 = vpop.xlane.xlu1 %1236  ;;  %vm5311_vm13 = vmmov %vm5310_vm0 }
 0x2c1   :  { %v2305_v30 = vsel %vm1889_vm9, %v2304_v47, %v2303_v29  ;;  %v1424_v54 = vpack.c.bf16 %v1240_v4, %v1237_v31  ;;  %v1102_v55 = vpop.xlane.xlu0 %1101  ;;  %v2672_v47 = vld [vmem:[%s5150_s1 + $0x38] sm:$0xff]  ;;  %v2670_v31 = vld [vmem:[%s5150_s1 + $0x28] sm:$0xff] }
 0x2c2   :  { %v1401_v19 = vpack.c.bf16 %v1102_v55, %v1099_v5  ;;  %2501 = vmatpush.bf16.msra.mxu0 %v2672_v47 }
 0x2c3   :  { %v1828_v9 = vunpack.c.l.b16 %v1424_v54  ;;  %v1829_v44 = vunpack.c.h.b16 %v1424_v54 }
 0x2c4   :  { %v1782_v37 = vunpack.c.l.b16 %v1401_v19  ;;  %v1783_v42 = vunpack.c.h.b16 %v1401_v19 }
 0x2c5   :  { %v2333_v43 = vperm.slane %v1828_v9, %v3980_v23  ;;  %v2335_v60 = vperm.slane %v1829_v44, %v3998_v50  ;;  %v2669_v9 = vld [vmem:[%s5150_s1 + $0x20] sm:$0xff]  ;;  %v2679_v44 = vld [vmem:[%s5150_s1 + $0x70] sm:$0xff] }
 0x2c6   :  { %v2244_v52 = vperm.slane %v1782_v37, %v4006_v22  ;;  %v2246_v7 = vperm.slane %v1783_v42, %v4009_v2 }
 0x2c7   :  { %v2334_v48 = vsel %vm1885_vm8, %v2333_v43, %v2332_v24  ;;  %v2668_v43 = vld [vmem:[%s5150_s1 + $0x18] sm:$0xff] }
 0x2c8   :  { %v1147_v27 = vpop.xlane.xlu2 %1146  ;;  %v4979_v16 = vsel %vm1889_vm9, %v2335_v60, %v2334_v48  ;;  %v2245_v6 = vsel %vm5301_vm10, %v2244_v52, %v2243_v12  ;;  %v1288_v58 = vpop.xlane.xlu1 %1287  ;;  %v2678_v60 = vld [vmem:[%s5150_s1 + $0x68] sm:$0xff]  ;;  %vm5312_vm10 = vmmov %vm5306_vm1 }
 0x2c9   :  { %v4983_v8 = vsel %vm5302_vm7, %v2246_v7, %v2245_v6  ;;  %v1285_v20 = vpop.xlane.xlu0 %1284 }
 0x2ca   :  { %v1432_v21 = vpack.c.bf16 %v1288_v58, %v1285_v20  ;;  %v2667_v58 = vld [vmem:[%s5150_s1 + $0x10] sm:$0xff]  ;;  %v2677_v20 = vld [vmem:[%s5150_s1 + $0x60] sm:$0xff] }
 0x2cc   :  { %v1844_v26 = vunpack.c.l.b16 %v1432_v21  ;;  %v1845_v53 = vunpack.c.h.b16 %v1432_v21 }
 0x2ce   :  { %v2364_v57 = vperm.slane %v1844_v26, %v3980_v23  ;;  %v2366_v40 = vperm.slane %v1845_v53, %v3998_v50 }
 0x2d0   :  { %v1198_v63 = vpop.xlane.xlu2 %1197  ;;  %v2365_v24 = vsel %vm1885_vm8, %v2364_v57, %v2363_v59  ;;  %v1195_v28 = vpop.xlane.xlu1 %1194  ;;  %vm5303_vm8 = vmmov %vm5299_vm6  ;;  %vm2390_vm6 = vcmask 1046534  }
 0x2d1   :  { %v4989_v36 = vsel %vm1889_vm9, %v2366_v40, %v2365_v24  ;;  %v1417_v12 = vpack.c.bf16 %v1198_v63, %v1195_v28  ;;  %v1150_v15 = vpop.xlane.xlu0 %1149  ;;  %vm5304_vm9 = vmmov %vm5302_vm7  ;;  %v2666_v28 = vld [vmem:[%s5150_s1 + $0x8] sm:$0xff] }
 0x2d2   :  { %v1409_v51 = vpack.c.bf16 %v1150_v15, %v1147_v27  ;;  %vm5313_vm7 = vmmov %vm5310_vm0 }
 0x2d3   :  { %v1814_v25 = vunpack.c.l.b16 %v1417_v12  ;;  %v1815_v0 = vunpack.c.h.b16 %v1417_v12  ;;  %v2676_v12 = vld [vmem:[%s5150_s1 + $0x58] sm:$0xff] }
 0x2d4   :  { %v1798_v5 = vunpack.c.l.b16 %v1409_v51  ;;  %v1799_v38 = vunpack.c.h.b16 %v1409_v51 }
 0x2d5   :  { %v2306_v49 = vperm.slane %v1814_v25, %v4006_v22  ;;  %v2308_v23 = vperm.slane %v1815_v0, %v4009_v2 }
 0x2d6   :  { %v2275_v50 = vperm.slane %v1798_v5, %v4006_v22  ;;  %v2277_v1 = vperm.slane %v1799_v38, %v4009_v2 }
 0x2d7   :  { %v2307_v59 = vsel %vm5303_vm8, %v2306_v49, %v2305_v30  ;;  %v2680_v30 = vld [vmem:[%s5150_s1 + $0x78] sm:$0xff]  ;;  %vm2392_vm8 = vcmask 1047559  }
 0x2d8   :  { %v1105_v18 = vpop.xlane.xlu2 %1104  ;;  %v4997_v32 = vsel %vm5304_vm9, %v2308_v23, %v2307_v59  ;;  %v2276_v34 = vsel %vm5305_vm11, %v2275_v50, %v2274_v10  ;;  %v1060_v14 = vpop.xlane.xlu1 %1059  ;;  %v2671_v10 = vld [vmem:[%s5150_s1 + $0x30] sm:$0xff]  ;;  %2514 = vmatpush.bf16.msra.mxu1 %v2680_v30  ;;  %v2665_v23 = vld [vmem:[%s5150_s1] sm:$0xff]  ;;  %vm5314_vm9 = vmmov %vm5309_vm5 }
 0x2d9   :  { %v5001_v35 = vsel %vm5306_vm1, %v2277_v1, %v2276_v34  ;;  %v1057_v17 = vpop.xlane.xlu0 %1056  ;;  %2502 = vmatpush.bf16.msra.mxu0 %v2671_v10  ;;  %v2675_v50 = vld [vmem:[%s5150_s1 + $0x50] sm:$0xff]  ;;  %v2674_v10 = vld [vmem:[%s5150_s1 + $0x48] sm:$0xff]  ;;  %vm5315_vm11 = vmmov %vm5306_vm1 }
 0x2da   :  { %v1394_v55 = vpack.c.bf16 %v1060_v14, %v1057_v17  ;;  %vm5316_vm1 = vmmov %vm5310_vm0 }
 0x2dc   :  { %2515 = vmatpush.bf16.msra.mxu1 %v2679_v44  ;;  %v1768_v42 = vunpack.c.l.b16 %v1394_v55  ;;  %v1769_v52 = vunpack.c.h.b16 %v1394_v55 }
 0x2dd   :  { %2503 = vmatpush.bf16.msra.mxu0 %v2670_v31 }
 0x2de   :  { %v2217_v48 = vperm.slane %v1768_v42, %v4021_v11  ;;  %v2219_v53 = vperm.slane %v1769_v52, %v4031_v3 }
 0x2e0   :  { %v5003_v39 = vpop.xlane.xlu2 %1245  ;;  %v5005_v45 = vpop.xlane.xlu1 %1242  ;;  %2516 = vmatpush.bf16.msra.mxu1 %v2678_v60  ;;  %v2218_v57 = vsel %vm1901_vm12, %v2217_v48, %v4968_v56 }
 0x2e1   :  { %v1108_v13 = vpop.xlane.xlu0 %1107  ;;  %2504 = vmatpush.bf16.msra.mxu0 %v2669_v9  ;;  %v2220_v25 = vsel %vm5307_vm2, %v2219_v53, %v2218_v57  ;;  %v1425_v60 = vpack.c.bf16 %v5003_v39, %v5005_v45 }
 0x2e2   :  { %v1402_v27 = vpack.c.bf16 %v1108_v13, %v1105_v18 }
 0x2e3   :  { %v1831_v39 = vunpack.c.h.b16 %v1425_v60 }
 0x2e4   :  { %2517 = vmatpush.bf16.msra.mxu1 %v2677_v20  ;;  %v1784_v40 = vunpack.c.l.b16 %v1402_v27  ;;  %v1785_v56 = vunpack.c.h.b16 %v1402_v27 }
 0x2e5   :  { %2505 = vmatpush.bf16.msra.mxu0 %v2668_v43 }
 0x2e6   :  { %v2248_v5 = vperm.slane %v1784_v40, %v4021_v11  ;;  %v2250_v14 = vperm.slane %v1785_v56, %v4031_v3 }
 0x2e8   :  { %v5010_v41 = vpop.xlane.xlu2 %1152  ;;  %v5012_v4 = vpop.xlane.xlu1 %1293  ;;  %2518 = vmatpush.bf16.msra.mxu1 %v2676_v12  ;;  %v2249_v17 = vsel %vm1901_vm12, %v2248_v5, %v4983_v8 }
 0x2e9   :  { %v5017_v29 = vpop.xlane.xlu0 %1290  ;;  %2506 = vmatpush.bf16.msra.mxu0 %v2667_v58  ;;  %v2251_v55 = vsel %vm5308_vm4, %v2250_v14, %v2249_v17  ;;  %v1830_v58 = vunpack.c.l.b16 %v1425_v60 }
 0x2eb   :  { %v2337_v45 = vperm.slane %v1830_v58, %v4006_v22 }
 0x2ec   :  { %2519 = vmatpush.bf16.msra.mxu1 %v2675_v50 }
 0x2ed   :  { %2507 = vmatpush.bf16.msra.mxu0 %v2666_v28  ;;  %v2338_v5 = vsel %vm5309_vm5, %v2337_v45, %v4979_v16 }
 0x2f0   :  { %v1204_v54 = vpop.xlane.xlu2 %1203  ;;  %v1201_v19 = vpop.xlane.xlu1 %1200  ;;  %2520 = vmatpush.bf16.msra.mxu1 %v2674_v10 }
 0x2f1   :  { %v1156_v37 = vpop.xlane.xlu0 %1155  ;;  %2508 = vmatpush.bf16.msra.mxu0 %v2665_v23  ;;  %v1418_v9 = vpack.c.bf16 %v1204_v54, %v1201_v19 }
 0x2f2   :  { %v1410_v8 = vpack.c.bf16 %v1156_v37, %v5010_v41 }
 0x2f3   :  { %v1816_v27 = vunpack.c.l.b16 %v1418_v9  ;;  %v1817_v54 = vunpack.c.h.b16 %v1418_v9 }
 0x2f4   :  { %v1801_v41 = vunpack.c.h.b16 %v1410_v8 }
 0x2f5   :  { %v2310_v19 = vperm.slane %v1816_v27, %v4021_v11  ;;  %v2312_v40 = vperm.slane %v1817_v54, %v4031_v3 }
 0x2f6   :  { %v2281_v28 = vperm.slane %v1801_v41, %v4031_v3 }
 0x2f8   :  { %v1111_v7 = vpop.xlane.xlu2 %1110  ;;  %v1066_v6 = vpop.xlane.xlu1 %1065 }
 0x2f9   :  { %v1063_v21 = vpop.xlane.xlu0 %1062 }
 0x2fa   :  { %v1395_v26 = vpack.c.bf16 %v1066_v6, %v1063_v21  ;;  %v1800_v6 = vunpack.c.l.b16 %v1410_v8 }
 0x2fc   :  { %v1770_v63 = vunpack.c.l.b16 %v1395_v26  ;;  %v1771_v24 = vunpack.c.h.b16 %v1395_v26  ;;  %v2279_v20 = vperm.slane %v1800_v6, %v4021_v11 }
 0x2fe   :  { %v2221_v15 = vperm.slane %v1770_v63, %v4046_v46  ;;  %v2223_v51 = vperm.slane %v1771_v24, %v4083_v61  ;;  %v2311_v24 = vsel %vm1901_vm12, %v2310_v19, %v4997_v32 }
 0x2ff   :  { %v2313_v32 = vsel %vm5310_vm0, %v2312_v40, %v2311_v24 }
 0x300   :  { %v1252_v0 = vpop.xlane.xlu2 %1251  ;;  %v2222_v38 = vsel %vm1909_vm14, %v2221_v15, %v2220_v25  ;;  %v1249_v49 = vpop.xlane.xlu1 %1248 }
 0x301   :  { %v1114_v1 = vpop.xlane.xlu0 %1113  ;;  %v2224_v59 = vsel %vm1913_vm15, %v2223_v51, %v2222_v38  ;;  %v1426_v21 = vpack.c.bf16 %v1252_v0, %v1249_v49  ;;  %v2280_v51 = vsel %vm1901_vm12, %v2279_v20, %v5001_v35 }
 0x302   :  { %v1403_v18 = vpack.c.bf16 %v1114_v1, %v1111_v7  ;;  %v5067_v34 = vsel %vm2388_vm3, %v2224_v59, %v4533_v62  ;;  %v2673_v62 = vld [vmem:[%s5150_s1 + $0x40] sm:$0xff]  ;;  %v2282_v50 = vsel %vm5311_vm13, %v2281_v28, %v2280_v51 }
 0x303   :  { %2521 = vmatpush.bf16.msra.mxu1 %v2673_v62  ;;  %v1832_v25 = vunpack.c.l.b16 %v1426_v21  ;;  %v1833_v1 = vunpack.c.h.b16 %v1426_v21 }
 0x304   :  { %v1786_v13 = vunpack.c.l.b16 %v1403_v18  ;;  %v1787_v47 = vunpack.c.h.b16 %v1403_v18 }
 0x305   :  { %v2341_v16 = vperm.slane %v1832_v25, %v4021_v11  ;;  %v2343_v8 = vperm.slane %v1833_v1, %v4031_v3 }
 0x306   :  { %v2252_v31 = vperm.slane %v1786_v13, %v4046_v46  ;;  %v2254_v30 = vperm.slane %v1787_v47, %v4083_v61 }
 0x308   :  { %v1159_v44 = vpop.xlane.xlu2 %1158  ;;  %v2253_v42 = vsel %vm1909_vm14, %v2252_v31, %v2251_v55  ;;  %v1300_v43 = vpop.xlane.xlu1 %1299 }
 0x309   :  { %v1297_v52 = vpop.xlane.xlu0 %1296  ;;  %v2255_v7 = vsel %vm1913_vm15, %v2254_v30, %v2253_v42 }
 0x30a   :  { %v2398_v48 = vsel %vm2388_vm3, %v2255_v7, %v4709_v33  ;;  %v1433_v33 = vpack.c.bf16 %v5012_v4, %v5017_v29  ;;  %v2339_v4 = vperm.slane %v1831_v39, %v4009_v2  ;;  %v1434_v18 = vpack.c.bf16 %v1300_v43, %v1297_v52 }
 0x30c   :  { %v1846_v35 = vunpack.c.l.b16 %v1433_v33  ;;  %v2340_v55 = vsel %vm5312_vm10, %v2339_v4, %v2338_v5  ;;  %v1847_v9 = vunpack.c.h.b16 %v1433_v33  ;;  %v1848_v43 = vunpack.c.l.b16 %v1434_v18 }
 0x30d   :  { %v2342_v42 = vsel %vm1901_vm12, %v2341_v16, %v2340_v55  ;;  %v1849_v6 = vunpack.c.h.b16 %v1434_v18 }
 0x30e   :  { %v2344_v58 = vsel %vm5313_vm7, %v2343_v8, %v2342_v42  ;;  %v2372_v54 = vperm.slane %v1848_v43, %v4021_v11 }
 0x310   :  { %v1210_v37 = vpop.xlane.xlu2 %1209  ;;  %v1207_v26 = vpop.xlane.xlu1 %1206 }
 0x311   :  { %v1419_v53 = vpack.c.bf16 %v1210_v37, %v1207_v26  ;;  %v1162_v57 = vpop.xlane.xlu0 %1161  ;;  %v2374_v26 = vperm.slane %v1849_v6, %v4031_v3  ;;  %v3356_v3 = vmov 8.0  }
 0x312   :  { %v1411_v63 = vpack.c.bf16 %v1162_v57, %v1159_v44  ;;  %v2368_v44 = vperm.slane %v1846_v35, %v4006_v22  ;;  %3325 = vrcp.f32 %v3356_v3 }
 0x313   :  { %v1818_v12 = vunpack.c.l.b16 %v1419_v53  ;;  %v1819_v15 = vunpack.c.h.b16 %v1419_v53 }
 0x314   :  { %v1802_v56 = vunpack.c.l.b16 %v1411_v63  ;;  %v1803_v0 = vunpack.c.h.b16 %v1411_v63  ;;  %v2369_v22 = vsel %vm5314_vm9, %v2368_v44, %v4989_v36 }
 0x315   :  { %v2314_v29 = vperm.slane %v1818_v12, %v4046_v46  ;;  %v2316_v38 = vperm.slane %v1819_v15, %v4083_v61 }
 0x316   :  { %v2283_v49 = vperm.slane %v1802_v56, %v4046_v46  ;;  %v2285_v23 = vperm.slane %v1803_v0, %v4083_v61 }
 0x317   :  { %v2315_v59 = vsel %vm1909_vm14, %v2314_v29, %v2313_v32 }
 0x318   :  { %v1258_v14 = vpop.xlane.xlu1 %1257  ;;  %v2284_v17 = vsel %vm1909_vm14, %v2283_v49, %v2282_v50  ;;  %v2317_v13 = vsel %vm1913_vm15, %v2316_v38, %v2315_v59  ;;  %v3326_v15 = vpop.eup %3325 }
 0x319   :  { %v1255_v47 = vpop.xlane.xlu0 %1254  ;;  %v2286_v10 = vsel %vm1913_vm15, %v2285_v23, %v2284_v17  ;;  %v2399_v31 = vsel %vm2390_vm6, %v2317_v13, %v2398_v48  ;;  %v2370_v48 = vperm.slane %v1847_v9, %v4009_v2  ;;  %v2546_v56 = vmul.f32 8.0, %v3326_v15 }
 0x31a   :  { %v1427_v30 = vpack.c.bf16 %v1258_v14, %v1255_v47  ;;  %v2391_v62 = vsel %vm2390_vm6, %v2286_v10, %v5067_v34  ;;  %v1303_v34 = vpop.xlane.xlu2 %1302 }
 0x31b   :  { %v2371_v2 = vsel %vm5315_vm11, %v2370_v48, %v2369_v22  ;;  %v2547_v5 = vsub.f32 1.0, %v2546_v56  ;;  %v3324_v48 = vld [vmem:[%s5153_s4] ss:$0 sm:$0xff] }
 0x31c   :  { %v1834_v60 = vunpack.c.l.b16 %v1427_v30  ;;  %v1835_v52 = vunpack.c.h.b16 %v1427_v30  ;;  %v2373_v45 = vsel %vm1901_vm12, %v2372_v54, %v2371_v2  ;;  %vm2550_vm12 = vweird.f32 %v3326_v15 }
 0x31d   :  { %v2375_v33 = vsel %vm5316_vm1, %v2374_v26, %v2373_v45  ;;  %v2548_v38 = vmul.f32 %v3326_v15, %v2547_v5 }
 0x31e   :  { %v2345_v7 = vperm.slane %v1834_v60, %v4046_v46  ;;  %v2347_v27 = vperm.slane %v1835_v52, %v4083_v61  ;;  %v3323_v60 = vld [vmem:[%s5152_s3] ss:$0 sm:$0xff] }
 0x31f   :  { %v2549_v35 = vadd.f32 %v3326_v15, %v2548_v38 }
 0x320   :  { %v2346_v19 = vsel %vm1909_vm14, %v2345_v7, %v2344_v58 }
 0x321   :  { %v1306_v41 = vpop.xlane.xlu0 %1305  ;;  %v2348_v37 = vsel %vm1913_vm15, %v2347_v27, %v2346_v19  ;;  %v2551_v59 = vsel %vm2550_vm12, %v3326_v15, %v2549_v35 }
 0x322   :  { %v1435_v20 = vpack.c.bf16 %v1306_v41, %v1303_v34  ;;  %v2393_v21 = vsel %vm2392_vm8, %v2348_v37, %v2391_v62 }
 0x323   :  { %v2401_v39 = vpack.c.b16 %v2393_v21, %v2393_v21 }
 0x324   :  { %v1850_v53 = vunpack.c.l.b16 %v1435_v20  ;;  %v1851_v57 = vunpack.c.h.b16 %v1435_v20 }
 0x325   :  { %2509 = vmatmul.bf16.vlgmr.msra.gmra.mxu0 %v2401_v39 }
 0x326   :  { %v2376_v11 = vperm.slane %v1850_v53, %v4046_v46  ;;  %v2378_v36 = vperm.slane %v1851_v57, %v4083_v61  ;;  %v3322_v61 = vld [vmem:[%s5151_s2] ss:$0 sm:$0xff] }
 0x328   :  { %v2377_v40 = vsel %vm1909_vm14, %v2376_v11, %v2375_v33 }
 0x329   :  { %v2379_v63 = vsel %vm1913_vm15, %v2378_v36, %v2377_v40 }
 0x32a   :  { %v2400_v24 = vsel %vm2392_vm8, %v2379_v63, %v2399_v31 }
 0x32b   :  { %v2402_v28 = vpack.c.b16 %v2400_v24, %v2400_v24 }
 0x32d   :  { %2522 = vmatmul.bf16.vlgmr.msra.gmra.mxu1 %v2402_v28 }
 0x3a2   :  { %v2510_v12 = vpop.f32.mrf.mxu0 }
 0x3aa   :  { %v2512_v51 = vpop.f32.mrf.mxu0  ;;  %v2523_v25 = vpop.f32.mrf.mxu1 }
 0x3ab   :  { %v2524_v46 = vadd.f32 %v2523_v25, %v2510_v12 }
 0x3ad   :  { %v2533_v0 = vmul.f32 0.0625, %v2524_v46 }
 0x3af   :  { %v2538_v4 = vadd.f32 %v3322_v61, %v2533_v0 }
 0x3b1   :  { %v2539_v29 = vrot.slane %v2538_v4, 4 }
 0x3b2   :  { %v2525_v32 = vpop.f32.mrf.mxu1 }
 0x3b3   :  { %v2540_v49 = vadd.f32 %v2539_v29, %v2538_v4 }
 0x3b5   :  { %v2541_v23 = vrot.slane %v2540_v49, 2 }
 0x3b7   :  { %v2542_v50 = vadd.f32 %v2541_v23, %v2540_v49 }
 0x3b9   :  { %v2543_v1 = vrot.slane %v2542_v50, 1 }
 0x3bb   :  { %v2544_v16 = vadd.f32 %v2543_v1, %v2542_v50 }
 0x3bd   :  { %v2552_v18 = vmul.f32 %v2551_v59, %v2544_v16 }
 0x3bf   :  { %v2553_v14 = vsub.f32 %v2538_v4, %v2552_v18 }
 0x3c1   :  { %v2554_v17 = vmul.f32 %v2553_v14, %v2553_v14  ;;  %v2577_v27 = vmul.f32 %v3323_v60, %v2553_v14 }
 0x3c3   :  { %v2555_v13 = vrot.slane %v2554_v17, 4 }
 0x3c5   :  { %v2556_v47 = vadd.f32 %v2555_v13, %v2554_v17 }
 0x3c7   :  { %v2557_v10 = vrot.slane %v2556_v47, 2 }
 0x3c9   :  { %v2558_v31 = vadd.f32 %v2557_v10, %v2556_v47 }
 0x3cb   :  { %v2559_v30 = vrot.slane %v2558_v31, 1 }
 0x3cd   :  { %v2560_v62 = vadd.f32 %v2559_v30, %v2558_v31 }
 0x3cf   :  { %v2561_v55 = vmul.f32 %v2560_v62, %v2551_v59 }
 0x3d1   :  { %v2562_v9 = vadd.f32 1e-05, %v2561_v55 }
 0x3d3   :  { %3327 = vrsqrt.f32 %v2562_v9  ;;  %vm2569_vm15 = vweird.f32 %v2562_v9 }
 0x3d9   :  { %v3328_v44 = vpop.eup %3327 }
 0x3da   :  { %v2564_v8 = vmul.f32 %v3328_v44, %v2562_v9  ;;  %vm2570_vm14 = vweird.f32 %v3328_v44 }
 0x3db   :  { %vm2571_vm2 = vmor %vm2569_vm15, %vm2570_vm14 }
 0x3dc   :  { %v2565_v42 = vmul.f32 %v3328_v44, %v2564_v8 }
 0x3de   :  { %v2566_v43 = vmul.f32 0.5, %v2565_v42 }
 0x3e0   :  { %v2567_v52 = vsub.f32 1.5, %v2566_v43 }
 0x3e2   :  { %v2568_v7 = vmul.f32 %v3328_v44, %v2567_v52 }
 0x3e4   :  { %v2572_v6 = vsel %vm2571_vm2, %v3328_v44, %v2568_v7 }
 0x3e5   :  { %v2578_v34 = vmul.f32 %v2577_v27, %v2572_v6 }
 0x3e7   :  { %v2583_v58 = vadd.f32 %v3324_v48, %v2578_v34 }
 0x3e9   :  { %2584 = vst [vmem:[#allocation3] sm:$0xff] %v2583_v58 }
 0x3ea   :  { %2595 = dma.vmem_to_hbm [thread:$0]  %s2591_s11, 128, %s2593_s14, [#allocation4]  }
 0x3eb   :  { %3354 = dma.done.wait [#allocation4], 128  }
 0x3ec   :  { %3355 = vsyncadd [#allocation4], 4294967168 }
 0x3ed   :  { %2600 = vsyncpa [#allocation4], 1 }

</bundles_post_ra>
